<compile_context>
chip_gen: v7x
topology: tpu7x:2x2x1
jax: 0.10.0
libtpu: 0.0.40
codegen_flags: <defaults>
</compile_context>

<pallas_src>
import jax
import jax.numpy as jnp
from jax.experimental import pallas as pl
from jax.experimental.pallas import tpu as pltpu

LATENT_DIM = 100
LATENT_PAD = 128            # 100 -> 128 (zero-padded K for the first matmul)
HIDDEN = (128, 256, 512, 1024)
OUT_DIM = 28 * 28           # 784
OUT_PAD = 896               # 7 * 128, lane-dense output slab
LEAKY_SLOPE = 0.2
BN_EPS = 0.8                # nn.BatchNorm1d(d, 0.8): second positional arg is eps


def _leaky_relu(x):
    return jnp.where(x > 0, x, LEAKY_SLOPE * x)


def _bn_leaky(x, gamma, beta):
    """Training-mode BatchNorm1d (biased batch variance) fused with LeakyReLU.

    x: (N, D) f32, gamma/beta: (1, D) f32.  One pass over x: E[x], E[x^2];
    then y = x*scale + shift.  eps=0.8 makes the E[x^2]-E[x]^2 form safe.
    """
    mean = jnp.mean(x, axis=0, keepdims=True)
    mean_sq = jnp.mean(x * x, axis=0, keepdims=True)
    var = mean_sq - mean * mean
    scale = gamma * jax.lax.rsqrt(var + BN_EPS)
    shift = beta - mean * scale
    return _leaky_relu(x * scale + shift)


def _mm(x_f32, w_ref):
    """bf16 x bf16 matmul on the MXU with f32 accumulation."""
    return jnp.dot(x_f32.astype(jnp.bfloat16), w_ref[...],
                   preferred_element_type=jnp.float32)


def generator_kernel(
    x_ref,                       # (N, 128) bf16, zero-padded latent
    w1_ref, b1_ref,              # (128, 128) bf16, (1, 128) f32
    w2_ref, g2_ref, be2_ref,     # (128, 256) bf16, BN affine f32  (bias dropped)
    w3_ref, g3_ref, be3_ref,     # (256, 512) bf16
    w4_ref, g4_ref, be4_ref,     # (512, 1024) bf16
    w5_ref, b5_ref,              # (1024, 896) bf16, (1, 896) f32
    o_ref,                       # (N, 896) f32
):
    # Block 1: Linear + LeakyReLU (bias kept: no BN follows)
    h = jnp.dot(x_ref[...], w1_ref[...], preferred_element_type=jnp.float32)
    h = _leaky_relu(h + b1_ref[...])

    # Blocks 2-4: Linear (bias mathematically cancelled by BN) + BN + LeakyReLU
    h = _bn_leaky(_mm(h, w2_ref), g2_ref[...], be2_ref[...])
    h = _bn_leaky(_mm(h, w3_ref), g3_ref[...], be3_ref[...])
    h = _bn_leaky(_mm(h, w4_ref), g4_ref[...], be4_ref[...])

    # Output head: Linear + Tanh (lane-dense 896-wide store; wrapper slices 784)
    o_ref[...] = jnp.tanh(_mm(h, w5_ref) + b5_ref[...])


def init_params(key):
    """Deterministic parameter init (shapes match the PyTorch module, f32)."""
    dims = (LATENT_DIM,) + HIDDEN + (OUT_DIM,)
    params = []
    keys = jax.random.split(key, len(dims) - 1)
    for li, (din, dout) in enumerate(zip(dims[:-1], dims[1:])):
        kw, kb = jax.random.split(keys[li])
        bound = 1.0 / jnp.sqrt(din)
        # Stored already-transposed: (din, dout) so the kernel does x @ W.
        w = jax.random.uniform(kw, (din, dout), jnp.float32, -bound, bound)
        b = jax.random.uniform(kb, (1, dout), jnp.float32, -bound, bound)
        params.append((w, b))
    # BatchNorm affine params for hidden layers 2..4 (gamma=1, beta=0).
    bn = [(jnp.ones((1, d), jnp.float32), jnp.zeros((1, d), jnp.float32))
          for d in HIDDEN[1:]]
    return params, bn


def generator_forward(x, params, bn):
    n = x.shape[0]
    (w1, b1), (w2, _b2), (w3, _b3), (w4, _b4), (w5, b5) = params
    (g2, be2), (g3, be3), (g4, be4) = bn

    # Zero-pad latent K 100 -> 128 (x columns + w1 rows) — mathematically a no-op.
    x_pad = jnp.pad(x, ((0, 0), (0, LATENT_PAD - LATENT_DIM))).astype(jnp.bfloat16)
    w1_pad = jnp.pad(w1, ((0, LATENT_PAD - LATENT_DIM), (0, 0)))

    # Zero-pad output head 784 -> 896 for lane-dense stores; sliced off below.
    w5_pad = jnp.pad(w5, ((0, 0), (0, OUT_PAD - OUT_DIM)))
    b5_pad = jnp.pad(b5, ((0, 0), (0, OUT_PAD - OUT_DIM)))

    bf16 = lambda a: a.astype(jnp.bfloat16)
    args = (
        x_pad,
        bf16(w1_pad), b1,
        bf16(w2), g2, be2,          # b2/b3/b4 dropped: cancelled by train-mode BN
        bf16(w3), g3, be3,
        bf16(w4), g4, be4,
        bf16(w5_pad), b5_pad,
    )

    vmem_spec = pl.BlockSpec(memory_space=pltpu.MemorySpace.VMEM)
    flat = pl.pallas_call(
        generator_kernel,
        out_shape=jax.ShapeDtypeStruct((n, OUT_PAD), jnp.float32),
        in_specs=[vmem_spec] * len(args),
        out_specs=vmem_spec,
        compiler_params=pltpu.CompilerParams(vmem_limit_bytes=48 << 20),
    )(*args)

    # PyTorch: x.reshape(len(x), 1, 28, 28)  (NCHW)
    return flat[:, :OUT_DIM].reshape(n, 1, 28, 28)


if __name__ == "__main__":
    key = jax.random.PRNGKey(0)
    kp, kx = jax.random.split(key)
    params, bn = init_params(kp)

    batch = 8
    z = jax.random.normal(kx, (batch, LATENT_DIM), jnp.float32)

    out = generator_forward(z, params, bn)
    out = jax.block_until_ready(out)
    assert out.shape == (batch, 1, 28, 28), out.shape
    assert jnp.all(jnp.isfinite(out))
    print("KERNEL_OK")
</pallas_src>

<mosaic_0001>
module attributes {stable_mosaic.version = 11 : i64} {
  func.func @generator_kernel(%arg0: memref<8x128xbf16, #tpu.memory_space<vmem>>, %arg1: memref<128x128xbf16, #tpu.memory_space<vmem>>, %arg2: memref<1x128xf32, #tpu.memory_space<vmem>>, %arg3: memref<128x256xbf16, #tpu.memory_space<vmem>>, %arg4: memref<1x256xf32, #tpu.memory_space<vmem>>, %arg5: memref<1x256xf32, #tpu.memory_space<vmem>>, %arg6: memref<256x512xbf16, #tpu.memory_space<vmem>>, %arg7: memref<1x512xf32, #tpu.memory_space<vmem>>, %arg8: memref<1x512xf32, #tpu.memory_space<vmem>>, %arg9: memref<512x1024xbf16, #tpu.memory_space<vmem>>, %arg10: memref<1x1024xf32, #tpu.memory_space<vmem>>, %arg11: memref<1x1024xf32, #tpu.memory_space<vmem>>, %arg12: memref<1024x896xbf16, #tpu.memory_space<vmem>>, %arg13: memref<1x896xf32, #tpu.memory_space<vmem>>, %arg14: memref<8x896xf32, #tpu.memory_space<vmem>>) attributes {dimension_semantics = [], scalar_prefetch = 0 : i64, scratch_operands = 0 : i64, tpu.core_type = #tpu.core_type<tc>} {
    %c0 = arith.constant 0 : index
    %c0_0 = arith.constant 0 : index
    %0 = vector.load %arg0[%c0, %c0_0] : memref<8x128xbf16, #tpu.memory_space<vmem>>, vector<8x128xbf16>
    %c0_1 = arith.constant 0 : index
    %c0_2 = arith.constant 0 : index
    %1 = vector.load %arg1[%c0_1, %c0_2] : memref<128x128xbf16, #tpu.memory_space<vmem>>, vector<128x128xbf16>
    %cst = arith.constant dense<0.000000e+00> : vector<8x128xf32>
    %2 = tpu.matmul %0, %1, %cst {dimension_numbers = #tpu.dot_dimension_numbers<[1], [0], [0], [1], [0, 0, 1, 1], [], []>} : vector<8x128xbf16>, vector<128x128xbf16>, vector<8x128xf32> -> vector<8x128xf32>
    %c0_3 = arith.constant 0 : index
    %c0_4 = arith.constant 0 : index
    %3 = vector.load %arg2[%c0_3, %c0_4] : memref<1x128xf32, #tpu.memory_space<vmem>>, vector<1x128xf32>
    %4 = vector.broadcast %3 : vector<1x128xf32> to vector<8x128xf32>
    %5 = arith.addf %2, %4 : vector<8x128xf32>
    %cst_5 = arith.constant 0.000000e+00 : f32
    %6 = vector.broadcast %cst_5 : f32 to vector<8x128xf32>
    %7 = arith.cmpf ogt, %5, %6 : vector<8x128xf32>
    %cst_6 = arith.constant 2.000000e-01 : f32
    %8 = vector.broadcast %cst_6 : f32 to vector<8x128xf32>
    %9 = arith.mulf %8, %5 : vector<8x128xf32>
    %10 = arith.select %7, %5, %9 : vector<8x128xi1>, vector<8x128xf32>
    %11 = arith.truncf %10 : vector<8x128xf32> to vector<8x128xbf16>
    %c0_7 = arith.constant 0 : index
    %c0_8 = arith.constant 0 : index
    %12 = vector.load %arg3[%c0_7, %c0_8] : memref<128x256xbf16, #tpu.memory_space<vmem>>, vector<128x256xbf16>
    %cst_9 = arith.constant dense<0.000000e+00> : vector<8x256xf32>
    %13 = tpu.matmul %11, %12, %cst_9 {dimension_numbers = #tpu.dot_dimension_numbers<[1], [0], [0], [1], [0, 0, 1, 1], [], []>} : vector<8x128xbf16>, vector<128x256xbf16>, vector<8x256xf32> -> vector<8x256xf32>
    %c0_10 = arith.constant 0 : index
    %c0_11 = arith.constant 0 : index
    %14 = vector.load %arg4[%c0_10, %c0_11] : memref<1x256xf32, #tpu.memory_space<vmem>>, vector<1x256xf32>
    %c0_12 = arith.constant 0 : index
    %c0_13 = arith.constant 0 : index
    %15 = vector.load %arg5[%c0_12, %c0_13] : memref<1x256xf32, #tpu.memory_space<vmem>>, vector<1x256xf32>
    %cst_14 = arith.constant dense<0.000000e+00> : vector<256xf32>
    %16 = vector.multi_reduction <add>, %13, %cst_14 [0] : vector<8x256xf32> to vector<256xf32>
    %17 = vector.shape_cast %16 : vector<256xf32> to vector<1x256xf32>
    %cst_15 = arith.constant 8.000000e+00 : f32
    %18 = vector.broadcast %cst_15 : f32 to vector<1x256xf32>
    %19 = arith.divf %17, %18 : vector<1x256xf32>
    %20 = arith.mulf %13, %13 : vector<8x256xf32>
    %cst_16 = arith.constant dense<0.000000e+00> : vector<256xf32>
    %21 = vector.multi_reduction <add>, %20, %cst_16 [0] : vector<8x256xf32> to vector<256xf32>
    %22 = vector.shape_cast %21 : vector<256xf32> to vector<1x256xf32>
    %cst_17 = arith.constant 8.000000e+00 : f32
    %23 = vector.broadcast %cst_17 : f32 to vector<1x256xf32>
    %24 = arith.divf %22, %23 : vector<1x256xf32>
    %25 = arith.mulf %19, %19 : vector<1x256xf32>
    %26 = arith.subf %24, %25 : vector<1x256xf32>
    %cst_18 = arith.constant 8.000000e-01 : f32
    %27 = vector.broadcast %cst_18 : f32 to vector<1x256xf32>
    %28 = arith.addf %26, %27 : vector<1x256xf32>
    %29 = math.rsqrt %28 : vector<1x256xf32>
    %30 = arith.mulf %14, %29 : vector<1x256xf32>
    %31 = arith.mulf %19, %30 : vector<1x256xf32>
    %32 = arith.subf %15, %31 : vector<1x256xf32>
    %33 = vector.broadcast %30 : vector<1x256xf32> to vector<8x256xf32>
    %34 = arith.mulf %13, %33 : vector<8x256xf32>
    %35 = vector.broadcast %32 : vector<1x256xf32> to vector<8x256xf32>
    %36 = arith.addf %34, %35 : vector<8x256xf32>
    %cst_19 = arith.constant 0.000000e+00 : f32
    %37 = vector.broadcast %cst_19 : f32 to vector<8x256xf32>
    %38 = arith.cmpf ogt, %36, %37 : vector<8x256xf32>
    %cst_20 = arith.constant 2.000000e-01 : f32
    %39 = vector.broadcast %cst_20 : f32 to vector<8x256xf32>
    %40 = arith.mulf %39, %36 : vector<8x256xf32>
    %41 = arith.select %38, %36, %40 : vector<8x256xi1>, vector<8x256xf32>
    %42 = arith.truncf %41 : vector<8x256xf32> to vector<8x256xbf16>
    %c0_21 = arith.constant 0 : index
    %c0_22 = arith.constant 0 : index
    %43 = vector.load %arg6[%c0_21, %c0_22] : memref<256x512xbf16, #tpu.memory_space<vmem>>, vector<256x512xbf16>
    %cst_23 = arith.constant dense<0.000000e+00> : vector<8x512xf32>
    %44 = tpu.matmul %42, %43, %cst_23 {dimension_numbers = #tpu.dot_dimension_numbers<[1], [0], [0], [1], [0, 0, 1, 1], [], []>} : vector<8x256xbf16>, vector<256x512xbf16>, vector<8x512xf32> -> vector<8x512xf32>
    %c0_24 = arith.constant 0 : index
    %c0_25 = arith.constant 0 : index
    %45 = vector.load %arg7[%c0_24, %c0_25] : memref<1x512xf32, #tpu.memory_space<vmem>>, vector<1x512xf32>
    %c0_26 = arith.constant 0 : index
    %c0_27 = arith.constant 0 : index
    %46 = vector.load %arg8[%c0_26, %c0_27] : memref<1x512xf32, #tpu.memory_space<vmem>>, vector<1x512xf32>
    %cst_28 = arith.constant dense<0.000000e+00> : vector<512xf32>
    %47 = vector.multi_reduction <add>, %44, %cst_28 [0] : vector<8x512xf32> to vector<512xf32>
    %48 = vector.shape_cast %47 : vector<512xf32> to vector<1x512xf32>
    %cst_29 = arith.constant 8.000000e+00 : f32
    %49 = vector.broadcast %cst_29 : f32 to vector<1x512xf32>
    %50 = arith.divf %48, %49 : vector<1x512xf32>
    %51 = arith.mulf %44, %44 : vector<8x512xf32>
    %cst_30 = arith.constant dense<0.000000e+00> : vector<512xf32>
    %52 = vector.multi_reduction <add>, %51, %cst_30 [0] : vector<8x512xf32> to vector<512xf32>
    %53 = vector.shape_cast %52 : vector<512xf32> to vector<1x512xf32>
    %cst_31 = arith.constant 8.000000e+00 : f32
    %54 = vector.broadcast %cst_31 : f32 to vector<1x512xf32>
    %55 = arith.divf %53, %54 : vector<1x512xf32>
    %56 = arith.mulf %50, %50 : vector<1x512xf32>
    %57 = arith.subf %55, %56 : vector<1x512xf32>
    %cst_32 = arith.constant 8.000000e-01 : f32
    %58 = vector.broadcast %cst_32 : f32 to vector<1x512xf32>
    %59 = arith.addf %57, %58 : vector<1x512xf32>
    %60 = math.rsqrt %59 : vector<1x512xf32>
    %61 = arith.mulf %45, %60 : vector<1x512xf32>
    %62 = arith.mulf %50, %61 : vector<1x512xf32>
    %63 = arith.subf %46, %62 : vector<1x512xf32>
    %64 = vector.broadcast %61 : vector<1x512xf32> to vector<8x512xf32>
    %65 = arith.mulf %44, %64 : vector<8x512xf32>
    %66 = vector.broadcast %63 : vector<1x512xf32> to vector<8x512xf32>
    %67 = arith.addf %65, %66 : vector<8x512xf32>
    %cst_33 = arith.constant 0.000000e+00 : f32
    %68 = vector.broadcast %cst_33 : f32 to vector<8x512xf32>
    %69 = arith.cmpf ogt, %67, %68 : vector<8x512xf32>
    %cst_34 = arith.constant 2.000000e-01 : f32
    %70 = vector.broadcast %cst_34 : f32 to vector<8x512xf32>
    %71 = arith.mulf %70, %67 : vector<8x512xf32>
    %72 = arith.select %69, %67, %71 : vector<8x512xi1>, vector<8x512xf32>
    %73 = arith.truncf %72 : vector<8x512xf32> to vector<8x512xbf16>
    %c0_35 = arith.constant 0 : index
    %c0_36 = arith.constant 0 : index
    %74 = vector.load %arg9[%c0_35, %c0_36] : memref<512x1024xbf16, #tpu.memory_space<vmem>>, vector<512x1024xbf16>
    %cst_37 = arith.constant dense<0.000000e+00> : vector<8x1024xf32>
    %75 = tpu.matmul %73, %74, %cst_37 {dimension_numbers = #tpu.dot_dimension_numbers<[1], [0], [0], [1], [0, 0, 1, 1], [], []>} : vector<8x512xbf16>, vector<512x1024xbf16>, vector<8x1024xf32> -> vector<8x1024xf32>
    %c0_38 = arith.constant 0 : index
    %c0_39 = arith.constant 0 : index
    %76 = vector.load %arg10[%c0_38, %c0_39] : memref<1x1024xf32, #tpu.memory_space<vmem>>, vector<1x1024xf32>
    %c0_40 = arith.constant 0 : index
    %c0_41 = arith.constant 0 : index
    %77 = vector.load %arg11[%c0_40, %c0_41] : memref<1x1024xf32, #tpu.memory_space<vmem>>, vector<1x1024xf32>
    %cst_42 = arith.constant dense<0.000000e+00> : vector<1024xf32>
    %78 = vector.multi_reduction <add>, %75, %cst_42 [0] : vector<8x1024xf32> to vector<1024xf32>
    %79 = vector.shape_cast %78 : vector<1024xf32> to vector<1x1024xf32>
    %cst_43 = arith.constant 8.000000e+00 : f32
    %80 = vector.broadcast %cst_43 : f32 to vector<1x1024xf32>
    %81 = arith.divf %79, %80 : vector<1x1024xf32>
    %82 = arith.mulf %75, %75 : vector<8x1024xf32>
    %cst_44 = arith.constant dense<0.000000e+00> : vector<1024xf32>
    %83 = vector.multi_reduction <add>, %82, %cst_44 [0] : vector<8x1024xf32> to vector<1024xf32>
    %84 = vector.shape_cast %83 : vector<1024xf32> to vector<1x1024xf32>
    %cst_45 = arith.constant 8.000000e+00 : f32
    %85 = vector.broadcast %cst_45 : f32 to vector<1x1024xf32>
    %86 = arith.divf %84, %85 : vector<1x1024xf32>
    %87 = arith.mulf %81, %81 : vector<1x1024xf32>
    %88 = arith.subf %86, %87 : vector<1x1024xf32>
    %cst_46 = arith.constant 8.000000e-01 : f32
    %89 = vector.broadcast %cst_46 : f32 to vector<1x1024xf32>
    %90 = arith.addf %88, %89 : vector<1x1024xf32>
    %91 = math.rsqrt %90 : vector<1x1024xf32>
    %92 = arith.mulf %76, %91 : vector<1x1024xf32>
    %93 = arith.mulf %81, %92 : vector<1x1024xf32>
    %94 = arith.subf %77, %93 : vector<1x1024xf32>
    %95 = vector.broadcast %92 : vector<1x1024xf32> to vector<8x1024xf32>
    %96 = arith.mulf %75, %95 : vector<8x1024xf32>
    %97 = vector.broadcast %94 : vector<1x1024xf32> to vector<8x1024xf32>
    %98 = arith.addf %96, %97 : vector<8x1024xf32>
    %cst_47 = arith.constant 0.000000e+00 : f32
    %99 = vector.broadcast %cst_47 : f32 to vector<8x1024xf32>
    %100 = arith.cmpf ogt, %98, %99 : vector<8x1024xf32>
    %cst_48 = arith.constant 2.000000e-01 : f32
    %101 = vector.broadcast %cst_48 : f32 to vector<8x1024xf32>
    %102 = arith.mulf %101, %98 : vector<8x1024xf32>
    %103 = arith.select %100, %98, %102 : vector<8x1024xi1>, vector<8x1024xf32>
    %104 = arith.truncf %103 : vector<8x1024xf32> to vector<8x1024xbf16>
    %c0_49 = arith.constant 0 : index
    %c0_50 = arith.constant 0 : index
    %105 = vector.load %arg12[%c0_49, %c0_50] : memref<1024x896xbf16, #tpu.memory_space<vmem>>, vector<1024x896xbf16>
    %cst_51 = arith.constant dense<0.000000e+00> : vector<8x896xf32>
    %106 = tpu.matmul %104, %105, %cst_51 {dimension_numbers = #tpu.dot_dimension_numbers<[1], [0], [0], [1], [0, 0, 1, 1], [], []>} : vector<8x1024xbf16>, vector<1024x896xbf16>, vector<8x896xf32> -> vector<8x896xf32>
    %c0_52 = arith.constant 0 : index
    %c0_53 = arith.constant 0 : index
    %107 = vector.load %arg13[%c0_52, %c0_53] : memref<1x896xf32, #tpu.memory_space<vmem>>, vector<1x896xf32>
    %108 = vector.broadcast %107 : vector<1x896xf32> to vector<8x896xf32>
    %109 = arith.addf %106, %108 : vector<8x896xf32>
    %110 = math.tanh %109 : vector<8x896xf32>
    %c0_54 = arith.constant 0 : index
    %c0_55 = arith.constant 0 : index
    %111 = vector.load %arg14[%c0_54, %c0_55] : memref<8x896xf32, #tpu.memory_space<vmem>>, vector<8x896xf32>
    tpu.vector_store %arg14[%c0_54, %c0_55], %110 {strides = array<i32>} : memref<8x896xf32, #tpu.memory_space<vmem>>, vector<8x896xf32>,
    return
  }
}

</mosaic_0001>

<bundles_post_ra>
// kernel: tpu_custom_call.1
= control target key start
LH: loop header
LB: loop body
LE: loop exit
PB: predicated region body
PF: predicated region fallthrough
CT: control target
= control target key end

     0   :  { %19 = vsyncpa [#allocation3], 0  ;;  %s9852_s0 = inlined_call_operand.hbm [shape: bf16[8,128], index: 0, kind: input, shape index: {}]   ;;  %s9853_s1 = inlined_call_operand.hbm [shape: bf16[128,128], index: 1, kind: input, shape index: {}]   ;;  %s9854_s2 = inlined_call_operand.hbm [shape: f32[1,128], index: 2, kind: input, shape index: {}]   ;;  %s9855_s3 = inlined_call_operand.hbm [shape: bf16[128,256], index: 3, kind: input, shape index: {}]   ;;  %s9856_s4 = inlined_call_operand.hbm [shape: f32[1,256], index: 4, kind: input, shape index: {}]   ;;  %s9857_s5 = inlined_call_operand.hbm [shape: f32[1,256], index: 5, kind: input, shape index: {}]   ;;  %s9858_s6 = inlined_call_operand.hbm [shape: bf16[256,512], index: 6, kind: input, shape index: {}]   ;;  %s9859_s7 = inlined_call_operand.hbm [shape: f32[1,512], index: 7, kind: input, shape index: {}]   ;;  %s9860_s8 = inlined_call_operand.hbm [shape: f32[1,512], index: 8, kind: input, shape index: {}]   ;;  %s9861_s9 = inlined_call_operand.hbm [shape: bf16[512,1024], index: 9, kind: input, shape index: {}]   ;;  %s9862_s10 = inlined_call_operand.hbm [shape: f32[1,1024], index: 10, kind: input, shape index: {}]   ;;  %s9863_s11 = inlined_call_operand.hbm [shape: f32[1,1024], index: 11, kind: input, shape index: {}]   ;;  %s9864_s12 = inlined_call_operand.hbm [shape: bf16[1024,896], index: 12, kind: input, shape index: {}]   ;;  %s9865_s13 = inlined_call_operand.hbm [shape: f32[1,896], index: 13, kind: input, shape index: {}]   ;;  %s9866_s14 = inlined_call_operand.hbm [shape: f32[8,896], index: 14, kind: output, shape index: {}]  }
   0x1   :  { %20 = vsyncpa [#allocation6], 0 }
   0x2   :  { %21 = vsyncpa [#allocation9], 0 }
   0x3   :  { %22 = vsyncpa [#allocation12], 0 }
   0x4   :  { %23 = vsyncpa [#allocation15], 0 }
   0x5   :  { %24 = vsyncpa [#allocation18], 0 }
   0x6   :  { %25 = vsyncpa [#allocation21], 0 }
   0x7   :  { %26 = vsyncpa [#allocation24], 0 }
   0x8   :  { %27 = vsyncpa [#allocation4], 0  ;;  %s9233_s29 = smov [#allocation5]   ;;  %s8885_s17 = scalar_lea.hbm %s9853_s1, 1024 }
   0x9   :  { %s43_s30 = sshll.u32 %s9233_s29, 4  ;;  %p8886_p0 = scmp.ne.s32.totalorder %s9853_s1, %s8885_s17  ;;  %s44_s30 = int_to_ptr.vmem [resolvable:$true] %s43_s30 }
   0xa   :  { %p8889_p1 = scmp.lt.u32.totalorder %s8885_s17, %s9853_s1 }
   0xc   :  { %p8891_p2 = pnand %p8889_p1, %p8886_p0 }
   0xe   :  { %8894 = shalt.err (!%p8891_p2)
}
   0xf   :  { %s8895_s22 = scalar_lea.vmem %s44_s30, 1024  ;;  %p8900_p4 = scmp.lt.s32.totalorder %s44_s30, %s44_s30 }
  0x10   :  { %p8896_p3 = scmp.ne.s32.totalorder %s44_s30, %s8895_s22  ;;  %p8901_p5 = scmp.lt.s32.totalorder %s8895_s22, %s8895_s22 }
  0x12   :  { %p8902_p6 = por %p8901_p5, %p8900_p4 }
  0x14   :  { %p8903_p7 = pnand %p8902_p6, %p8896_p3 }
  0x16   :  { %8906 = shalt.err (!%p8903_p7)
}
  0x17   :  { %s9234_s23 = smov 64   ;;  %s9235_s24 = smov 4  }
  0x18   :  { %49 = dma.hbm_to_vmem [thread:$0]  %s9853_s1, 1024, %s44_s30, [#allocation6], %s9234_s23, %s9234_s23, %s9235_s24  }
  0x19   :  { %s9236_s27 = smov [#allocation8]   ;;  %s8907_s16 = scalar_lea.hbm %s9855_s3, 2048 }
  0x1a   :  { %s65_s28 = sshll.u32 %s9236_s27, 4  ;;  %p8908_p8 = scmp.ne.s32.totalorder %s9855_s3, %s8907_s16  ;;  %s66_s28 = int_to_ptr.vmem [resolvable:$true] %s65_s28 }
  0x1b   :  { %p8911_p9 = scmp.lt.u32.totalorder %s8907_s16, %s9855_s3 }
  0x1d   :  { %p8913_p10 = pnand %p8911_p9, %p8908_p8 }
  0x1f   :  { %8916 = shalt.err (!%p8913_p10)
}
  0x20   :  { %s8917_s21 = scalar_lea.vmem %s66_s28, 2048  ;;  %p8922_p12 = scmp.lt.s32.totalorder %s66_s28, %s66_s28 }
  0x21   :  { %p8918_p11 = scmp.ne.s32.totalorder %s66_s28, %s8917_s21  ;;  %p8923_p13 = scmp.lt.s32.totalorder %s8917_s21, %s8917_s21 }
  0x23   :  { %p8924_p0 = por %p8923_p13, %p8922_p12 }
  0x25   :  { %p8925_p1 = pnand %p8924_p0, %p8918_p11 }
  0x27   :  { %8928 = shalt.err (!%p8925_p1)
}
  0x28   :  { %s9237_s1 = smov 128   ;;  %s9238_s30 = smov 8  }
  0x29   :  { %71 = dma.hbm_to_vmem [thread:$0]  %s9855_s3, 2048, %s66_s28, [#allocation9], %s9237_s1, %s9237_s1, %s9238_s30  }
  0x2a   :  { %s9239_s24 = smov [#allocation11]   ;;  %s9240_s26 = smov [#allocation14]  }
  0x2b   :  { %s88_s25 = sshll.u32 %s9239_s24, 4  ;;  %s110_s27 = sshll.u32 %s9240_s26, 4  ;;  %s89_s25 = int_to_ptr.vmem [resolvable:$true] %s88_s25  ;;  %s111_s27 = int_to_ptr.vmem [resolvable:$true] %s110_s27 }
  0x2c   :  { %s8929_s16 = scalar_lea.hbm %s9857_s5, 32 }
  0x2d   :  { %p8930_p2 = scmp.ne.s32.totalorder %s9857_s5, %s8929_s16  ;;  %p8933_p3 = scmp.lt.u32.totalorder %s8929_s16, %s9857_s5 }
  0x2f   :  { %p8935_p4 = pnand %p8933_p3, %p8930_p2 }
  0x31   :  { %8938 = shalt.err (!%p8935_p4)
}
  0x32   :  { %s8939_s3 = scalar_lea.vmem %s89_s25, 32  ;;  %p8944_p6 = scmp.lt.s32.totalorder %s89_s25, %s89_s25 }
  0x33   :  { %p8940_p5 = scmp.ne.s32.totalorder %s89_s25, %s8939_s3  ;;  %p8945_p7 = scmp.lt.s32.totalorder %s8939_s3, %s8939_s3 }
  0x35   :  { %p8946_p8 = por %p8945_p7, %p8944_p6 }
  0x37   :  { %p8947_p9 = pnand %p8946_p8, %p8940_p5 }
  0x39   :  { %8950 = shalt.err (!%p8947_p9)
}
  0x3a   :  { %91 = dma.hbm_to_vmem [thread:$0]  %s9857_s5, 32, %s89_s25, [#allocation12]  }
  0x3b   :  { %s8951_s22 = scalar_lea.hbm %s9859_s7, 64 }
  0x3c   :  { %p8952_p10 = scmp.ne.s32.totalorder %s9859_s7, %s8951_s22  ;;  %p8955_p11 = scmp.lt.u32.totalorder %s8951_s22, %s9859_s7 }
  0x3e   :  { %p8957_p12 = pnand %p8955_p11, %p8952_p10 }
  0x40   :  { %8960 = shalt.err (!%p8957_p12)
}
  0x41   :  { %s8961_s15 = scalar_lea.vmem %s111_s27, 64  ;;  %p8966_p0 = scmp.lt.s32.totalorder %s111_s27, %s111_s27 }
  0x42   :  { %p8962_p13 = scmp.ne.s32.totalorder %s111_s27, %s8961_s15  ;;  %p8967_p1 = scmp.lt.s32.totalorder %s8961_s15, %s8961_s15 }
  0x44   :  { %p8968_p2 = por %p8967_p1, %p8966_p0 }
  0x46   :  { %p8969_p3 = pnand %p8968_p2, %p8962_p13 }
  0x48   :  { %8972 = shalt.err (!%p8969_p3)
}
  0x49   :  { %113 = dma.hbm_to_vmem [thread:$0]  %s9859_s7, 64, %s111_s27, [#allocation15]  }
  0x4a   :  { %s9241_s16 = smov [#allocation17]   ;;  %s8973_s20 = scalar_lea.hbm %s9861_s9, 32768 }
  0x4b   :  { %s129_s17 = sshll.u32 %s9241_s16, 4  ;;  %p8974_p4 = scmp.ne.s32.totalorder %s9861_s9, %s8973_s20  ;;  %s130_s17 = int_to_ptr.vmem [resolvable:$true] %s129_s17 }
  0x4c   :  { %p8977_p5 = scmp.lt.u32.totalorder %s8973_s20, %s9861_s9 }
  0x4e   :  { %p8979_p6 = pnand %p8977_p5, %p8974_p4 }
  0x50   :  { %8982 = shalt.err (!%p8979_p6)
}
  0x51   :  { %s8983_s30 = scalar_lea.vmem %s130_s17, 32768  ;;  %p8988_p8 = scmp.lt.s32.totalorder %s130_s17, %s130_s17 }
  0x52   :  { %p8984_p7 = scmp.ne.s32.totalorder %s130_s17, %s8983_s30  ;;  %p8989_p9 = scmp.lt.s32.totalorder %s8983_s30, %s8983_s30 }
  0x54   :  { %p8990_p10 = por %p8989_p9, %p8988_p8 }
  0x56   :  { %p8991_p11 = pnand %p8990_p10, %p8984_p7 }
  0x58   :  { %8994 = shalt.err (!%p8991_p11)
}
  0x59   :  { %s9242_s7 = smov 512   ;;  %s9243_s27 = smov 32  }
  0x5a   :  { %135 = dma.hbm_to_vmem [thread:$0]  %s9861_s9, 32768, %s130_s17, [#allocation18], %s9242_s7, %s9242_s7, %s9243_s27  }
  0x5b   :  { %s9244_s24 = smov [#allocation20]   ;;  %s9245_s29 = smov [#allocation2]  }
  0x5c   :  { %s152_s26 = sshll.u32 %s9244_s24, 4  ;;  %s34_s15 = sshll.u32 %s9245_s29, 4  ;;  %s153_s26 = int_to_ptr.vmem [resolvable:$true] %s152_s26  ;;  %s35_s15 = int_to_ptr.vmem [resolvable:$true] %s34_s15 }
  0x5d   :  { %s8995_s16 = scalar_lea.hbm %s9863_s11, 128 }
  0x5e   :  { %p8996_p12 = scmp.ne.s32.totalorder %s9863_s11, %s8995_s16  ;;  %p8999_p13 = scmp.lt.u32.totalorder %s8995_s16, %s9863_s11 }
  0x60   :  { %p9001_p0 = pnand %p8999_p13, %p8996_p12 }
  0x62   :  { %9004 = shalt.err (!%p9001_p0)
}
  0x63   :  { %s9005_s9 = scalar_lea.vmem %s153_s26, 128  ;;  %p9010_p2 = scmp.lt.s32.totalorder %s153_s26, %s153_s26 }
  0x64   :  { %p9006_p1 = scmp.ne.s32.totalorder %s153_s26, %s9005_s9  ;;  %p9011_p3 = scmp.lt.s32.totalorder %s9005_s9, %s9005_s9 }
  0x66   :  { %p9012_p4 = por %p9011_p3, %p9010_p2 }
  0x68   :  { %p9013_p5 = pnand %p9012_p4, %p9006_p1 }
  0x6a   :  { %9016 = shalt.err (!%p9013_p5)
}
  0x6b   :  { %155 = dma.hbm_to_vmem [thread:$0]  %s9863_s11, 128, %s153_s26, [#allocation21]  }
  0x6c   :  { %s9017_s30 = scalar_lea.hbm %s9852_s0, 64 }
  0x6d   :  { %p9018_p6 = scmp.ne.s32.totalorder %s9852_s0, %s9017_s30  ;;  %p9021_p7 = scmp.lt.u32.totalorder %s9017_s30, %s9852_s0 }
  0x6f   :  { %p9023_p8 = pnand %p9021_p7, %p9018_p6 }
  0x71   :  { %9026 = shalt.err (!%p9023_p8)
}
  0x72   :  { %s9027_s24 = scalar_lea.vmem %s35_s15, 64  ;;  %p9032_p10 = scmp.lt.s32.totalorder %s35_s15, %s35_s15 }
  0x73   :  { %p9028_p9 = scmp.ne.s32.totalorder %s35_s15, %s9027_s24  ;;  %p9033_p11 = scmp.lt.s32.totalorder %s9027_s24, %s9027_s24 }
  0x75   :  { %p9034_p12 = por %p9033_p11, %p9032_p10 }
  0x77   :  { %p9035_p13 = pnand %p9034_p12, %p9028_p9 }
  0x79   :  { %9038 = shalt.err (!%p9035_p13)
}
  0x7a   :  { %37 = dma.hbm_to_vmem [thread:$0]  %s9852_s0, 64, %s35_s15, [#allocation3]  }
  0x7b   :  { %s9246_s29 = smov [#allocation7]   ;;  %s9247_s25 = smov [#allocation10]  }
  0x7c   :  { %s56_s5 = sshll.u32 %s9246_s29, 4  ;;  %s78_s16 = sshll.u32 %s9247_s25, 4  ;;  %s57_s5 = int_to_ptr.vmem [resolvable:$true] %s56_s5  ;;  %s79_s16 = int_to_ptr.vmem [resolvable:$true] %s78_s16 }
  0x7d   :  { %s9039_s20 = scalar_lea.hbm %s9854_s2, 16 }
  0x7e   :  { %p9040_p0 = scmp.ne.s32.totalorder %s9854_s2, %s9039_s20  ;;  %p9043_p1 = scmp.lt.u32.totalorder %s9039_s20, %s9854_s2 }
  0x80   :  { %p9045_p2 = pnand %p9043_p1, %p9040_p0 }
  0x82   :  { %9048 = shalt.err (!%p9045_p2)
}
  0x83   :  { %s9049_s0 = scalar_lea.vmem %s57_s5, 16  ;;  %s9053_s15 = scalar_lea.vmem %s57_s5, 32 }
  0x84   :  { %p9050_p3 = scmp.ne.s32.totalorder %s57_s5, %s9049_s0  ;;  %p9054_p4 = scmp.lt.s32.totalorder %s57_s5, %s57_s5 }
  0x85   :  { %p9055_p5 = scmp.lt.s32.totalorder %s9053_s15, %s9049_s0 }
  0x87   :  { %p9056_p6 = por %p9055_p5, %p9054_p4 }
  0x89   :  { %p9057_p7 = pnand %p9056_p6, %p9050_p3 }
  0x8b   :  { %9060 = shalt.err (!%p9057_p7)
}
  0x8c   :  { %59 = dma.hbm_to_vmem [thread:$0]  %s9854_s2, 16, %s57_s5, [#allocation6]  }
  0x8d   :  { %s9061_s27 = scalar_lea.hbm %s9856_s4, 32 }
  0x8e   :  { %p9062_p8 = scmp.ne.s32.totalorder %s9856_s4, %s9061_s27  ;;  %p9065_p9 = scmp.lt.u32.totalorder %s9061_s27, %s9856_s4 }
  0x90   :  { %p9067_p10 = pnand %p9065_p9, %p9062_p8 }
  0x92   :  { %9070 = shalt.err (!%p9067_p10)
}
  0x93   :  { %s9071_s26 = scalar_lea.vmem %s79_s16, 32  ;;  %p9076_p12 = scmp.lt.s32.totalorder %s79_s16, %s79_s16 }
  0x94   :  { %p9072_p11 = scmp.ne.s32.totalorder %s79_s16, %s9071_s26  ;;  %p9077_p13 = scmp.lt.s32.totalorder %s9071_s26, %s9071_s26 }
  0x96   :  { %p9078_p0 = por %p9077_p13, %p9076_p12 }
  0x98   :  { %p9079_p1 = pnand %p9078_p0, %p9072_p11 }
  0x9a   :  { %9082 = shalt.err (!%p9079_p1)
}
  0x9b   :  { %81 = dma.hbm_to_vmem [thread:$0]  %s9856_s4, 32, %s79_s16, [#allocation9]  }
  0x9c   :  { %s9248_s5 = smov [#allocation13]   ;;  %s9083_s20 = scalar_lea.hbm %s9858_s6, 8192 }
  0x9d   :  { %s97_s25 = sshll.u32 %s9248_s5, 4  ;;  %p9084_p2 = scmp.ne.s32.totalorder %s9858_s6, %s9083_s20  ;;  %s98_s25 = int_to_ptr.vmem [resolvable:$true] %s97_s25 }
  0x9e   :  { %p9087_p3 = scmp.lt.u32.totalorder %s9083_s20, %s9858_s6 }
  0xa0   :  { %p9089_p4 = pnand %p9087_p3, %p9084_p2 }
  0xa2   :  { %9092 = shalt.err (!%p9089_p4)
}
  0xa3   :  { %s9093_s0 = scalar_lea.vmem %s98_s25, 8192  ;;  %p9098_p6 = scmp.lt.s32.totalorder %s98_s25, %s98_s25 }
  0xa4   :  { %p9094_p5 = scmp.ne.s32.totalorder %s98_s25, %s9093_s0  ;;  %p9099_p7 = scmp.lt.s32.totalorder %s9093_s0, %s9093_s0 }
  0xa6   :  { %p9100_p8 = por %p9099_p7, %p9098_p6 }
  0xa8   :  { %p9101_p9 = pnand %p9100_p8, %p9094_p5 }
  0xaa   :  { %9104 = shalt.err (!%p9101_p9)
}
  0xab   :  { %s9249_s4 = smov 256   ;;  %s9250_s16 = smov 16  }
  0xac   :  { %103 = dma.hbm_to_vmem [thread:$0]  %s9858_s6, 8192, %s98_s25, [#allocation12], %s9249_s4, %s9249_s4, %s9250_s16  }
  0xad   :  { %s9251_s1 = smov [#allocation16]   ;;  %s9252_s7 = smov [#allocation19]  }
  0xae   :  { %s120_s30 = sshll.u32 %s9251_s1, 4  ;;  %s142_s27 = sshll.u32 %s9252_s7, 4  ;;  %s121_s30 = int_to_ptr.vmem [resolvable:$true] %s120_s30  ;;  %s143_s27 = int_to_ptr.vmem [resolvable:$true] %s142_s27 }
  0xaf   :  { %s9105_s24 = scalar_lea.hbm %s9860_s8, 64 }
  0xb0   :  { %p9106_p10 = scmp.ne.s32.totalorder %s9860_s8, %s9105_s24  ;;  %p9109_p11 = scmp.lt.u32.totalorder %s9105_s24, %s9860_s8 }
  0xb2   :  { %p9111_p12 = pnand %p9109_p11, %p9106_p10 }
  0xb4   :  { %9114 = shalt.err (!%p9111_p12)
}
  0xb5   :  { %s9115_s6 = scalar_lea.vmem %s121_s30, 64  ;;  %p9120_p0 = scmp.lt.s32.totalorder %s121_s30, %s121_s30 }
  0xb6   :  { %p9116_p13 = scmp.ne.s32.totalorder %s121_s30, %s9115_s6  ;;  %p9121_p1 = scmp.lt.s32.totalorder %s9115_s6, %s9115_s6 }
  0xb8   :  { %p9122_p2 = por %p9121_p1, %p9120_p0 }
  0xba   :  { %p9123_p3 = pnand %p9122_p2, %p9116_p13 }
  0xbc   :  { %9126 = shalt.err (!%p9123_p3)
}
  0xbd   :  { %123 = dma.hbm_to_vmem [thread:$0]  %s9860_s8, 64, %s121_s30, [#allocation15]  }
  0xbe   :  { %s9127_s20 = scalar_lea.hbm %s9862_s10, 128 }
  0xbf   :  { %p9128_p4 = scmp.ne.s32.totalorder %s9862_s10, %s9127_s20  ;;  %p9131_p5 = scmp.lt.u32.totalorder %s9127_s20, %s9862_s10 }
  0xc1   :  { %p9133_p6 = pnand %p9131_p5, %p9128_p4 }
  0xc3   :  { %9136 = shalt.err (!%p9133_p6)
}
  0xc4   :  { %s9137_s0 = scalar_lea.vmem %s143_s27, 128  ;;  %p9142_p8 = scmp.lt.s32.totalorder %s143_s27, %s143_s27 }
  0xc5   :  { %p9138_p7 = scmp.ne.s32.totalorder %s143_s27, %s9137_s0  ;;  %p9143_p9 = scmp.lt.s32.totalorder %s9137_s0, %s9137_s0 }
  0xc7   :  { %p9144_p10 = por %p9143_p9, %p9142_p8 }
  0xc9   :  { %p9145_p11 = pnand %p9144_p10, %p9138_p7 }
  0xcb   :  { %9148 = shalt.err (!%p9145_p11)
}
  0xcc   :  { %145 = dma.hbm_to_vmem [thread:$0]  %s9862_s10, 128, %s143_s27, [#allocation18]  }
  0xcd   :  { %s9253_s16 = smov [#allocation22]   ;;  %s9149_s30 = scalar_lea.hbm %s9864_s12, 57344 }
  0xce   :  { %s161_s15 = sshll.u32 %s9253_s16, 4  ;;  %p9150_p12 = scmp.ne.s32.totalorder %s9864_s12, %s9149_s30  ;;  %s162_s15 = int_to_ptr.vmem [resolvable:$true] %s161_s15 }
  0xcf   :  { %p9153_p13 = scmp.lt.u32.totalorder %s9149_s30, %s9864_s12 }
  0xd1   :  { %p9155_p0 = pnand %p9153_p13, %p9150_p12 }
  0xd3   :  { %9158 = shalt.err (!%p9155_p0)
}
  0xd4   :  { %s9159_s11 = scalar_lea.vmem %s162_s15, 57344  ;;  %p9164_p2 = scmp.lt.s32.totalorder %s162_s15, %s162_s15 }
  0xd5   :  { %p9160_p1 = scmp.ne.s32.totalorder %s162_s15, %s9159_s11  ;;  %p9165_p3 = scmp.lt.s32.totalorder %s9159_s11, %s9159_s11 }
  0xd7   :  { %p9166_p4 = por %p9165_p3, %p9164_p2 }
  0xd9   :  { %p9167_p5 = pnand %p9166_p4, %p9160_p1 }
  0xdb   :  { %9170 = shalt.err (!%p9167_p5)
}
  0xdc   :  { %s9254_s10 = smov 448   ;;  %s9255_s27 = smov 28  }
  0xdd   :  { %167 = dma.hbm_to_vmem [thread:$0]  %s9864_s12, 57344, %s162_s15, [#allocation21], %s9254_s10, %s9254_s10, %s9255_s27  }
  0xde   :  { %s9256_s29 = smov [#allocation23]   ;;  %s9171_s18 = scalar_lea.hbm %s9865_s13, 112 }
  0xdf   :  { %s174_s6 = sshll.u32 %s9256_s29, 4  ;;  %p9172_p6 = scmp.ne.s32.totalorder %s9865_s13, %s9171_s18  ;;  %s175_s6 = int_to_ptr.vmem [resolvable:$true] %s174_s6 }
  0xe0   :  { %p9175_p7 = scmp.lt.u32.totalorder %s9171_s18, %s9865_s13 }
  0xe2   :  { %p9177_p8 = pnand %p9175_p7, %p9172_p6 }
  0xe4   :  { %9180 = shalt.err (!%p9177_p8)
}
  0xe5   :  { %s9181_s17 = scalar_lea.vmem %s175_s6, 112  ;;  %s9185_s12 = scalar_lea.vmem %s175_s6, 128 }
  0xe6   :  { %p9182_p9 = scmp.ne.s32.totalorder %s175_s6, %s9181_s17  ;;  %p9186_p10 = scmp.lt.s32.totalorder %s175_s6, %s175_s6 }
  0xe7   :  { %p9187_p11 = scmp.lt.s32.totalorder %s9185_s12, %s9181_s17 }
  0xe9   :  { %p9188_p12 = por %p9187_p11, %p9186_p10 }
  0xeb   :  { %p9189_p13 = pnand %p9188_p12, %p9182_p9 }
  0xed   :  { %9192 = shalt.err (!%p9189_p13)
}
  0xee   :  { %177 = dma.hbm_to_vmem [thread:$0]  %s9865_s13, 112, %s175_s6, [#allocation24]  }
  0xef   :  { %9215 = dma.done.wait [#allocation3], 64  }
  0xf0   :  { %9216 = vsyncadd [#allocation3], 4294967232 }
  0xf1   :  { %9217 = dma.done.wait [#allocation6], 1040  }
  0xf2   :  { %9218 = vsyncadd [#allocation6], 4294966256 }
  0xf3   :  { %9219 = dma.done.wait [#allocation9], 2080  }
  0xf4   :  { %9220 = vsyncadd [#allocation9], 4294965216 }
  0xf5   :  { %9221 = dma.done.wait [#allocation12], 8224  }
  0xf6   :  { %9222 = vsyncadd [#allocation12], 4294959072 }
  0xf7   :  { %9223 = dma.done.wait [#allocation15], 128  }
  0xf8   :  { %9224 = vsyncadd [#allocation15], 4294967168 }
  0xf9   :  { %9225 = dma.done.wait [#allocation18], 32896  }
  0xfa   :  { %9226 = vsyncadd [#allocation18], 4294934400 }
  0xfb   :  { %9227 = dma.done.wait [#allocation21], 57472  }
  0xfc   :  { %9228 = vsyncadd [#allocation21], 4294909824 }
  0xfd   :  { %9229 = dma.done.wait [#allocation24], 112  }
  0xfe   :  { %9230 = vsyncadd [#allocation24], 4294967184  ;;  %v9257_v0 = vmov 0.0   ;;  %vm9258_vm0 = vmmov 0   ;;  %v8075_v1 = vld [vmem:[#allocation5] sm:$0xff]   ;;  %v8076_v2 = vld [vmem:[#allocation5 + $0x8] sm:$0xff]  }
  0xff   :  { %7968 = vmatprep.subr.bf16.mxu0 %v9257_v0  ;;  %7984 = vmatprep.mubr.msk.bf16.mxu0 %vm9258_vm0, %v9257_v0  ;;  %v8077_v3 = vld [vmem:[#allocation5 + $0x10] sm:$0xff]   ;;  %v8085_v5 = vld [vmem:[#allocation8] ss:$8 sps:$4 sm:$0xff]   ;;  %v8078_v6 = vld [vmem:[#allocation5 + $0x18] sm:$0xff]   ;;  %v9259_v26 = vmov 0   ;;  %s9261_s13 = smov [#allocation25]  }
 0x100   :  { %7969 = vmatpush3.bf16.msra.mxu0 %v8075_v1  ;;  %v8083_v4 = vld [vmem:[#allocation8 + $0x4] ss:$8 sps:$4 sm:$0xff]   ;;  %v8086_v7 = vld [vmem:[#allocation8 + $0x14] ss:$8 sps:$4 sm:$0xff]   ;;  %v8088_v8 = vld [vmem:[#allocation8 + $0x10] ss:$8 sps:$4 sm:$0xff]   ;;  %465 = vmatprep.mubr.bf16.mxu1 %v9259_v26 }
 0x101   :  { %7970 = vmatprep.subr.bf16.mxu0 %v9257_v0  ;;  %433 = vmatprep.subr.bf16.mxu1 %v8083_v4  ;;  %v8089_v9 = vld [vmem:[#allocation8 + $0x24] ss:$8 sps:$4 sm:$0xff]   ;;  %v8091_v12 = vld [vmem:[#allocation8 + $0x20] ss:$8 sps:$4 sm:$0xff]   ;;  %v8092_v13 = vld [vmem:[#allocation8 + $0x34] ss:$8 sps:$4 sm:$0xff]  }
 0x102   :  { %434 = vmatpush1.bf16.msra.mxu1 %v8085_v5  ;;  %v8079_v10 = vld [vmem:[#allocation5 + $0x20] sm:$0xff]   ;;  %v8080_v11 = vld [vmem:[#allocation5 + $0x28] sm:$0xff]   ;;  %v8094_v14 = vld [vmem:[#allocation8 + $0x30] ss:$8 sps:$4 sm:$0xff]   ;;  %s7062_s8 = sshll.u32 %s9261_s13, 4  ;;  %s7063_s8 = int_to_ptr.vmem [resolvable:$true] %s7062_s8 }
 0x103   :  { %435 = vmatprep.subr.bf16.mxu1 %v8086_v7  ;;  %v8095_v15 = vld [vmem:[#allocation8 + $0x44] ss:$8 sps:$4 sm:$0xff]   ;;  %v8097_v17 = vld [vmem:[#allocation8 + $0x40] ss:$8 sps:$4 sm:$0xff]   ;;  %v8098_v18 = vld [vmem:[#allocation8 + $0x54] ss:$8 sps:$4 sm:$0xff]   ;;  %p9198_p1 = scmp.lt.s32.totalorder %s7063_s8, %s7063_s8 }
 0x104   :  { %7971 = vmatpush3.bf16.msra.mxu0 %v8076_v2  ;;  %v8081_v16 = vld [vmem:[#allocation5 + $0x30] sm:$0xff]   ;;  %v8082_v19 = vld [vmem:[#allocation5 + $0x38] sm:$0xff]   ;;  %v8103_v23 = vld [vmem:[#allocation8 + $0x60] ss:$8 sps:$4 sm:$0xff]   ;;  %s9193_s4 = scalar_lea.vmem %s7063_s8, 896 }
 0x105   :  { %7972 = vmatprep.subr.bf16.mxu0 %v9257_v0  ;;  %v8100_v20 = vld [vmem:[#allocation8 + $0x50] ss:$8 sps:$4 sm:$0xff]   ;;  %v8101_v22 = vld [vmem:[#allocation8 + $0x64] ss:$8 sps:$4 sm:$0xff]   ;;  %v8104_v24 = vld [vmem:[#allocation8 + $0x74] ss:$8 sps:$4 sm:$0xff]   ;;  %p9194_p0 = scmp.ne.s32.totalorder %s7063_s8, %s9193_s4  ;;  %p9199_p2 = scmp.lt.s32.totalorder %s9193_s4, %s9193_s4 }
 0x106   :  { %436 = vmatpush1.bf16.msra.mxu1 %v8088_v8  ;;  %v221_v21 = vld [vmem:[#allocation2] sm:$0xf]  ;;  %v7078_v28 = vld [vmem:[#allocation7] ss:$0 sm:$0xff]  ;;  %v8107_v36 = vld [vmem:[#allocation13] ss:$16 sps:$4 sm:$0xff]  }
 0x107   :  { %437 = vmatprep.subr.bf16.mxu1 %v8089_v9  ;;  %v8106_v25 = vld [vmem:[#allocation8 + $0x70] ss:$8 sps:$4 sm:$0xff]   ;;  %v8110_v39 = vld [vmem:[#allocation13 + $0x20] ss:$16 sps:$4 sm:$0xff]   ;;  %p9200_p3 = por %p9199_p2, %p9198_p1 }
 0x108   :  { %7973 = vmatpush3.bf16.msra.mxu0 %v8077_v3  ;;  %v8109_v27 = vld [vmem:[#allocation13 + $0x4] ss:$16 sps:$4 sm:$0xff]   ;;  %v8113_v41 = vld [vmem:[#allocation13 + $0x40] ss:$16 sps:$4 sm:$0xff]   ;;  %v8157_v4 = vld [vmem:[#allocation13 + $0xc] ss:$16 sps:$4 sm:$0xff]  }
 0x109   :  { %7974 = vmatprep.subr.bf16.mxu0 %v9257_v0  ;;  %v8112_v38 = vld [vmem:[#allocation13 + $0x24] ss:$16 sps:$4 sm:$0xff]   ;;  %v8116_v43 = vld [vmem:[#allocation13 + $0x60] ss:$16 sps:$4 sm:$0xff]   ;;  %p9201_p4 = pnand %p9200_p3, %p9194_p0 }
 0x10a   :  { %438 = vmatpush1.bf16.msra.mxu1 %v8091_v12  ;;  %v8115_v40 = vld [vmem:[#allocation13 + $0x44] ss:$16 sps:$4 sm:$0xff]   ;;  %v8119_v45 = vld [vmem:[#allocation13 + $0x80] ss:$16 sps:$4 sm:$0xff]  }
 0x10b   :  { %439 = vmatprep.subr.bf16.mxu1 %v8092_v13  ;;  %v8118_v42 = vld [vmem:[#allocation13 + $0x64] ss:$16 sps:$4 sm:$0xff]   ;;  %v8122_v47 = vld [vmem:[#allocation13 + $0xa0] ss:$16 sps:$4 sm:$0xff]  }
 0x10c   :  { %7975 = vmatpush3.bf16.msra.mxu0 %v8078_v6  ;;  %v8121_v44 = vld [vmem:[#allocation13 + $0x84] ss:$16 sps:$4 sm:$0xff]   ;;  %v8125_v49 = vld [vmem:[#allocation13 + $0xc0] ss:$16 sps:$4 sm:$0xff]  }
 0x10d   :  { %7976 = vmatprep.subr.bf16.mxu0 %v9257_v0  ;;  %v8124_v46 = vld [vmem:[#allocation13 + $0xa4] ss:$16 sps:$4 sm:$0xff]   ;;  %v8128_v51 = vld [vmem:[#allocation13 + $0xe0] ss:$16 sps:$4 sm:$0xff]  }
 0x10e   :  { %440 = vmatpush1.bf16.msra.mxu1 %v8094_v14  ;;  %v8127_v48 = vld [vmem:[#allocation13 + $0xc4] ss:$16 sps:$4 sm:$0xff]   ;;  %v8131_v53 = vld [vmem:[#allocation13 + $0x100] ss:$16 sps:$4 sm:$0xff]  }
 0x10f   :  { %441 = vmatprep.subr.bf16.mxu1 %v8095_v15  ;;  %v8130_v50 = vld [vmem:[#allocation13 + $0xe4] ss:$16 sps:$4 sm:$0xff]   ;;  %v8134_v55 = vld [vmem:[#allocation13 + $0x120] ss:$16 sps:$4 sm:$0xff]  }
 0x110   :  { %7977 = vmatpush3.bf16.msra.mxu0 %v8079_v10  ;;  %v8133_v52 = vld [vmem:[#allocation13 + $0x104] ss:$16 sps:$4 sm:$0xff]   ;;  %v8137_v57 = vld [vmem:[#allocation13 + $0x140] ss:$16 sps:$4 sm:$0xff]  }
 0x111   :  { %7978 = vmatprep.subr.bf16.mxu0 %v9257_v0  ;;  %v8136_v54 = vld [vmem:[#allocation13 + $0x124] ss:$16 sps:$4 sm:$0xff]   ;;  %v8140_v59 = vld [vmem:[#allocation13 + $0x160] ss:$16 sps:$4 sm:$0xff]  }
 0x112   :  { %442 = vmatpush1.bf16.msra.mxu1 %v8097_v17  ;;  %v8139_v56 = vld [vmem:[#allocation13 + $0x144] ss:$16 sps:$4 sm:$0xff]   ;;  %v8143_v61 = vld [vmem:[#allocation13 + $0x180] ss:$16 sps:$4 sm:$0xff]  }
 0x113   :  { %443 = vmatprep.subr.bf16.mxu1 %v8098_v18  ;;  %v8142_v58 = vld [vmem:[#allocation13 + $0x164] ss:$16 sps:$4 sm:$0xff]   ;;  %v8146_v63 = vld [vmem:[#allocation13 + $0x1a0] ss:$16 sps:$4 sm:$0xff]  }
 0x114   :  { %7979 = vmatpush3.bf16.msra.mxu0 %v8080_v11  ;;  %v8145_v60 = vld [vmem:[#allocation13 + $0x184] ss:$16 sps:$4 sm:$0xff]   ;;  %v8149_v1 = vld [vmem:[#allocation13 + $0x1c0] ss:$16 sps:$4 sm:$0xff]  }
 0x115   :  { %7980 = vmatprep.subr.bf16.mxu0 %v9257_v0  ;;  %v8148_v62 = vld [vmem:[#allocation13 + $0x1a4] ss:$16 sps:$4 sm:$0xff]   ;;  %v8152_v2 = vld [vmem:[#allocation13 + $0x1e0] ss:$16 sps:$4 sm:$0xff]  }
 0x116   :  { %444 = vmatpush1.bf16.msra.mxu1 %v8100_v20  ;;  %v8154_v3 = vld [vmem:[#allocation13 + $0x1e4] ss:$16 sps:$4 sm:$0xff]  }
 0x117   :  { %445 = vmatprep.subr.bf16.mxu1 %v8101_v22 }
 0x118   :  { %7981 = vmatpush3.bf16.msra.mxu0 %v8081_v16 }
 0x119   :  { %7982 = vmatprep.subr.bf16.mxu0 %v9257_v0  ;;  %v8151_v0 = vld [vmem:[#allocation13 + $0x1c4] ss:$16 sps:$4 sm:$0xff]  }
 0x11a   :  { %446 = vmatpush1.bf16.msra.mxu1 %v8103_v23 }
 0x11b   :  { %447 = vmatprep.subr.bf16.mxu1 %v8104_v24 }
 0x11c   :  { %7983 = vmatpush3.bf16.msra.mxu0 %v8082_v19 }
 0x11e   :  { %448 = vmatpush1.bf16.msra.mxu1 %v8106_v25 }
 0x11f   :  { %7985 = vmatmul.mubr.bf16.vlgmr.msra.gmra.mrb[0].mxu0 %v221_v21  ;;  %973 = vmatprep.subr.bf16.mxu1 %v8109_v27 }
 0x1f2   :  { %v327_v29 = vpop.f32.mrb[0].mxu0 }
 0x1f3   :  { %v328_v30 = vadd.f32 %v7078_v28, %v327_v29  ;;  %v7986_v31 = vpop.f32.mrb[1].mxu0 }
 0x1f4   :  { %v330_v32 = vpop.f32.mrb[2].mxu0 }
 0x1f5   :  { %vm333_vm1 = vcmp.gt.f32.partialorder %v328_v30, 0.0  ;;  %v334_v33 = vmul.f32 0.2, %v328_v30  ;;  %v7987_v34 = vpop.f32.mrb[3].mxu0 }
 0x1f7   :  { %v335_v35 = vsel %vm333_vm1, %v328_v30, %v334_v33 }
 0x1f8   :  { %v336_v37 = vpack.c.bf16 %v335_v35, %v335_v35 }
 0x1fa   :  { %466 = vmatmul.mubr.bf16.vlgmr.msra.gmra.mrb[0].mxu1 %v336_v37 }
 0x1fb   :  { %974 = vmatpush1.bf16.msra.mxu1 %v8107_v36 }
 0x1fc   :  { %975 = vmatprep.subr.bf16.mxu1 %v8112_v38 }
 0x1ff   :  { %976 = vmatpush1.bf16.msra.mxu1 %v8110_v39 }
 0x200   :  { %977 = vmatprep.subr.bf16.mxu1 %v8115_v40 }
 0x203   :  { %978 = vmatpush1.bf16.msra.mxu1 %v8113_v41 }
 0x204   :  { %979 = vmatprep.subr.bf16.mxu1 %v8118_v42 }
 0x207   :  { %980 = vmatpush1.bf16.msra.mxu1 %v8116_v43 }
 0x208   :  { %981 = vmatprep.subr.bf16.mxu1 %v8121_v44 }
 0x20b   :  { %982 = vmatpush1.bf16.msra.mxu1 %v8119_v45  ;;  %v9260_v45 = vmov 1966171168  }
 0x20c   :  { %983 = vmatprep.subr.bf16.mxu1 %v8124_v46  ;;  %v519_v46 = vunpack.c.l.s4 %v9260_v45  ;;  %v8197_v45 = vld [vmem:[#allocation13 + $0x1c8] ss:$16 sps:$4 sm:$0xff]  }
 0x20f   :  { %984 = vmatpush1.bf16.msra.mxu1 %v8122_v47  ;;  %v521_v47 = vlaneseq }
 0x210   :  { %985 = vmatprep.subr.bf16.mxu1 %v8127_v48  ;;  %v520_v48 = vunpack.c.0.s8 %v519_v46  ;;  %v8202_v46 = vld [vmem:[#allocation13 + $0x1ec] ss:$16 sps:$4 sm:$0xff]  }
 0x213   :  { %986 = vmatpush1.bf16.msra.mxu1 %v8125_v49  ;;  %v9505_v49 = vshrl.u32 %v521_v47, 7  ;;  %v8200_v47 = vld [vmem:[#allocation13 + $0x1e8] ss:$16 sps:$4 sm:$0xff]  }
 0x214   :  { %987 = vmatprep.subr.bf16.mxu1 %v8130_v50 }
 0x217   :  { %988 = vmatpush1.bf16.msra.mxu1 %v8128_v51  ;;  %v9508_v51 = vsub.s32 %v520_v48, %v9505_v49  ;;  %v1263_v48 = vld [vmem:[#allocation17] sm:$0xff] }
 0x218   :  { %989 = vmatprep.subr.bf16.mxu1 %v8133_v52 }
 0x21b   :  { %990 = vmatpush1.bf16.msra.mxu1 %v8131_v53 }
 0x21c   :  { %991 = vmatprep.subr.bf16.mxu1 %v8136_v54 }
 0x21f   :  { %992 = vmatpush1.bf16.msra.mxu1 %v8134_v55  ;;  %v474_v55 = vld [vmem:[#allocation10] sm:$0x3] }
 0x220   :  { %993 = vmatprep.subr.bf16.mxu1 %v8139_v56 }
 0x223   :  { %994 = vmatpush1.bf16.msra.mxu1 %v8137_v57  ;;  %v9513_v57 = vsub.s32 0, %v9505_v49 }
 0x224   :  { %995 = vmatprep.subr.bf16.mxu1 %v8142_v58  ;;  %v9516_v58 = vsub.s32 1, %v9505_v49 }
 0x227   :  { %996 = vmatpush1.bf16.msra.mxu1 %v8140_v59 }
 0x228   :  { %997 = vmatprep.subr.bf16.mxu1 %v8145_v60 }
 0x22b   :  { %998 = vmatpush1.bf16.msra.mxu1 %v8143_v61 }
 0x22c   :  { %999 = vmatprep.subr.bf16.mxu1 %v8148_v62 }
 0x22f   :  { %1000 = vmatpush1.bf16.msra.mxu1 %v8146_v63 }
 0x230   :  { %1001 = vmatprep.subr.bf16.mxu1 %v8151_v0 }
 0x233   :  { %1002 = vmatpush1.bf16.msra.mxu1 %v8149_v1 }
 0x234   :  { %1003 = vmatprep.subr.bf16.mxu1 %v8154_v3 }
 0x237   :  { %1004 = vmatpush1.bf16.msra.mxu1 %v8152_v2 }
 0x238   :  { %1014 = vmatprep.subr.bf16.mxu1 %v8157_v4  ;;  %v475_v4 = vld [vmem:[#allocation11] sm:$0x3] }
 0x2cd   :  { %v467_v5 = vpop.f32.mrb[0].mxu1 }
 0x2ce   :  { %v476_v6 = vrot.slane %v467_v5, 4  ;;  %v491_v7 = vmul.f32 %v467_v5, %v467_v5  ;;  %v469_v8 = vpop.f32.mrb[1].mxu1 }
 0x2cf   :  { %v482_v9 = vrot.slane %v469_v8, 4  ;;  %v492_v10 = vmul.f32 %v469_v8, %v469_v8  ;;  %v471_v11 = vpop.f32.mrb[2].mxu1 }
 0x2d0   :  { %v477_v12 = vadd.f32 %v476_v6, %v467_v5  ;;  %v493_v13 = vrot.slane %v491_v7, 4  ;;  %v472_v14 = vpop.f32.mrb[3].mxu1 }
 0x2d1   :  { %v483_v15 = vadd.f32 %v482_v9, %v469_v8  ;;  %v499_v16 = vrot.slane %v492_v10, 4 }
 0x2d2   :  { %v478_v17 = vrot.slane %v477_v12, 2  ;;  %v494_v18 = vadd.f32 %v493_v13, %v491_v7 }
 0x2d3   :  { %v484_v19 = vrot.slane %v483_v15, 2  ;;  %v500_v20 = vadd.f32 %v499_v16, %v492_v10  ;;  %v8155_v16 = vld [vmem:[#allocation13 + $0x8] ss:$16 sps:$4 sm:$0xff]  }
 0x2d4   :  { %v479_v21 = vadd.f32 %v478_v17, %v477_v12  ;;  %v495_v22 = vrot.slane %v494_v18, 2 }
 0x2d5   :  { %v485_v23 = vadd.f32 %v484_v19, %v483_v15  ;;  %v501_v24 = vrot.slane %v500_v20, 2  ;;  %v8158_v19 = vld [vmem:[#allocation13 + $0x28] ss:$16 sps:$4 sm:$0xff]  }
 0x2d6   :  { %v480_v25 = vrot.slane %v479_v21, 1  ;;  %v496_v26 = vadd.f32 %v495_v22, %v494_v18  ;;  %v8160_v18 = vld [vmem:[#allocation13 + $0x2c] ss:$16 sps:$4 sm:$0xff]  }
 0x2d7   :  { %v486_v27 = vrot.slane %v485_v23, 1  ;;  %v502_v28 = vadd.f32 %v501_v24, %v500_v20  ;;  %v8163_v20 = vld [vmem:[#allocation13 + $0x4c] ss:$16 sps:$4 sm:$0xff]  }
 0x2d8   :  { %v481_v29 = vadd.f32 %v480_v25, %v479_v21  ;;  %v497_v30 = vrot.slane %v496_v26, 1  ;;  %v8161_v21 = vld [vmem:[#allocation13 + $0x48] ss:$16 sps:$4 sm:$0xff]   ;;  %v8166_v22 = vld [vmem:[#allocation13 + $0x6c] ss:$16 sps:$4 sm:$0xff]  }
 0x2d9   :  { %v487_v31 = vadd.f32 %v486_v27, %v485_v23  ;;  %v503_v32 = vrot.slane %v502_v28, 1  ;;  %v8164_v23 = vld [vmem:[#allocation13 + $0x68] ss:$16 sps:$4 sm:$0xff]   ;;  %v8169_v24 = vld [vmem:[#allocation13 + $0x8c] ss:$16 sps:$4 sm:$0xff]  }
 0x2da   :  { %v489_v33 = vmul.f32 0.125, %v481_v29  ;;  %v498_v34 = vadd.f32 %v497_v30, %v496_v26  ;;  %v8167_v25 = vld [vmem:[#allocation13 + $0x88] ss:$16 sps:$4 sm:$0xff]   ;;  %v8172_v26 = vld [vmem:[#allocation13 + $0xac] ss:$16 sps:$4 sm:$0xff]  }
 0x2db   :  { %v490_v35 = vmul.f32 0.125, %v487_v31  ;;  %v504_v36 = vadd.f32 %v503_v32, %v502_v28  ;;  %v8170_v27 = vld [vmem:[#allocation13 + $0xa8] ss:$16 sps:$4 sm:$0xff]   ;;  %v8175_v28 = vld [vmem:[#allocation13 + $0xcc] ss:$16 sps:$4 sm:$0xff]  }
 0x2dc   :  { %v505_v37 = vmul.f32 0.125, %v498_v34  ;;  %v507_v38 = vmul.f32 %v489_v33, %v489_v33  ;;  %v8173_v29 = vld [vmem:[#allocation13 + $0xc8] ss:$16 sps:$4 sm:$0xff]   ;;  %v8178_v30 = vld [vmem:[#allocation13 + $0xec] ss:$16 sps:$4 sm:$0xff]  }
 0x2dd   :  { %v506_v39 = vmul.f32 0.125, %v504_v36  ;;  %v508_v40 = vmul.f32 %v490_v35, %v490_v35  ;;  %v8176_v31 = vld [vmem:[#allocation13 + $0xe8] ss:$16 sps:$4 sm:$0xff]   ;;  %v8181_v32 = vld [vmem:[#allocation13 + $0x10c] ss:$16 sps:$4 sm:$0xff]  }
 0x2de   :  { %v509_v41 = vsub.f32 %v505_v37, %v507_v38  ;;  %v8184_v34 = vld [vmem:[#allocation13 + $0x12c] ss:$16 sps:$4 sm:$0xff]   ;;  %v8185_v37 = vld [vmem:[#allocation13 + $0x148] ss:$16 sps:$4 sm:$0xff]  }
 0x2df   :  { %v510_v42 = vsub.f32 %v506_v39, %v508_v40  ;;  %v8187_v36 = vld [vmem:[#allocation13 + $0x14c] ss:$16 sps:$4 sm:$0xff]   ;;  %v8188_v39 = vld [vmem:[#allocation13 + $0x168] ss:$16 sps:$4 sm:$0xff]  }
 0x2e0   :  { %v511_v43 = vadd.f32 0.8, %v509_v41  ;;  %v8190_v38 = vld [vmem:[#allocation13 + $0x16c] ss:$16 sps:$4 sm:$0xff]   ;;  %v8191_v41 = vld [vmem:[#allocation13 + $0x188] ss:$16 sps:$4 sm:$0xff]  }
 0x2e1   :  { %v512_v44 = vadd.f32 0.8, %v510_v42  ;;  %v8193_v40 = vld [vmem:[#allocation13 + $0x18c] ss:$16 sps:$4 sm:$0xff]  }
 0x2e2   :  { %8843 = vrsqrt.f32 %v511_v43  ;;  %v8196_v42 = vld [vmem:[#allocation13 + $0x1ac] ss:$16 sps:$4 sm:$0xff]   ;;  %v8194_v43 = vld [vmem:[#allocation13 + $0x1a8] ss:$16 sps:$4 sm:$0xff]  }
 0x2e3   :  { %8845 = vrsqrt.f32 %v512_v44  ;;  %v8199_v44 = vld [vmem:[#allocation13 + $0x1cc] ss:$16 sps:$4 sm:$0xff]  }
 0x2ec   :  { %v8844_v50 = vpop.eup %8843 }
 0x2ed   :  { %v8846_v52 = vpop.eup %8845 }
 0x2ee   :  { %v517_v53 = vcombine.low %v8844_v50, %v8846_v52  ;;  %v1267_v50 = vld [vmem:[#allocation17 + $0x20] sm:$0xff]  ;;  %v1264_v52 = vld [vmem:[#allocation17 + $0x8] sm:$0xff] }
 0x2f0   :  { %v524_v54 = vrot.slane %v517_v53, %v9508_v51  ;;  %v7168_v53 = vcombine.high %v1263_v48, %v1267_v50 }
 0x2f2   :  { %v531_v56 = vrot.slane %v524_v54, %v9508_v51  ;;  %v1268_v54 = vld [vmem:[#allocation17 + $0x28] sm:$0xff]  ;;  %2799 = vmatprep.subr.bf16.mxu0 %v7168_v53 }
 0x2f4   :  { %v533_v59 = vmul.f32 %v531_v56, %v474_v55  ;;  %v7167_v55 = vcombine.low %v1263_v48, %v1267_v50  ;;  %v7169_v56 = vcombine.low %v1264_v52, %v1268_v54  ;;  %v1324_v48 = vld [vmem:[#allocation17 + $0x1e8] sm:$0xff] }
 0x2f6   :  { %v538_v60 = vrot.slane %v533_v59, %v9513_v57  ;;  %v542_v61 = vrot.slane %v533_v59, %v9516_v58  ;;  %v7170_v59 = vcombine.high %v1264_v52, %v1268_v54  ;;  %2800 = vmatpush1.bf16.msra.mxu0 %v7167_v55  ;;  %v1327_v54 = vld [vmem:[#allocation17 + $0x200] sm:$0xff] }
 0x2f7   :  { %v1331_v55 = vld [vmem:[#allocation17 + $0x220] sm:$0xff] }
 0x2f8   :  { %v545_v62 = vmul.f32 %v538_v60, %v489_v33  ;;  %v546_v63 = vmul.f32 %v542_v61, %v490_v35  ;;  %v566_v0 = vmul.f32 %v538_v60, %v467_v5  ;;  %v567_v1 = vmul.f32 %v542_v61, %v469_v8  ;;  %v8179_v33 = vld [vmem:[#allocation13 + $0x108] ss:$16 sps:$4 sm:$0xff]  }
 0x2f9   :  { %v8182_v35 = vld [vmem:[#allocation13 + $0x128] ss:$16 sps:$4 sm:$0xff]  }
 0x2fa   :  { %v549_v2 = vcombine.low %v545_v62, %v546_v63  ;;  %v1271_v60 = vld [vmem:[#allocation17 + $0x40] sm:$0xff]  ;;  %v1272_v62 = vld [vmem:[#allocation17 + $0x48] sm:$0xff] }
 0x2fb   :  { %v1275_v61 = vld [vmem:[#allocation17 + $0x60] sm:$0xff] }
 0x2fc   :  { %v556_v3 = vrot.slane %v549_v2, %v9508_v51  ;;  %v7176_v63 = vcombine.high %v1271_v60, %v1275_v61 }
 0x2fe   :  { %v563_v6 = vrot.slane %v556_v3, %v9508_v51  ;;  %2801 = vmatprep.subr.bf16.mxu0 %v7176_v63 }
 0x300   :  { %v565_v7 = vsub.f32 %v475_v4, %v563_v6  ;;  %v1279_v4 = vld [vmem:[#allocation17 + $0x80] sm:$0xff] }
 0x301   :  { %v1283_v6 = vld [vmem:[#allocation17 + $0xa0] sm:$0xff] }
 0x302   :  { %v572_v9 = vrot.slane %v565_v7, %v9513_v57  ;;  %v576_v10 = vrot.slane %v565_v7, %v9516_v58  ;;  %v1280_v7 = vld [vmem:[#allocation17 + $0x88] sm:$0xff] }
 0x304   :  { %v580_v11 = vadd.f32 %v576_v10, %v567_v1  ;;  %v579_v12 = vadd.f32 %v572_v9, %v566_v0  ;;  %v1276_v0 = vld [vmem:[#allocation17 + $0x68] sm:$0xff]  ;;  %v7175_v1 = vcombine.low %v1271_v60, %v1275_v61  ;;  %v7184_v9 = vcombine.high %v1279_v4, %v1283_v6 }
 0x305   :  { %v7177_v2 = vcombine.low %v1272_v62, %v1276_v0  ;;  %v7178_v3 = vcombine.high %v1272_v62, %v1276_v0  ;;  %v1284_v10 = vld [vmem:[#allocation17 + $0xa8] sm:$0xff]  ;;  %v7231_v61 = vcombine.low %v1327_v54, %v1331_v55  ;;  %v1335_v0 = vld [vmem:[#allocation17 + $0x240] sm:$0xff] }
 0x306   :  { %vm582_vm2 = vcmp.gt.f32.partialorder %v580_v11, 0.0  ;;  %v584_v13 = vmul.f32 0.2, %v580_v11  ;;  %vm581_vm3 = vcmp.gt.f32.partialorder %v579_v12, 0.0  ;;  %v583_v14 = vmul.f32 0.2, %v579_v12  ;;  %2802 = vmatpush1.bf16.msra.mxu0 %v7175_v1 }
 0x307   :  { %2803 = vmatprep.subr.bf16.mxu0 %v7184_v9  ;;  %v1332_v60 = vld [vmem:[#allocation17 + $0x228] sm:$0xff]  ;;  %v1339_v1 = vld [vmem:[#allocation17 + $0x260] sm:$0xff] }
 0x308   :  { %v586_v15 = vsel %vm582_vm2, %v580_v11, %v584_v13  ;;  %v585_v5 = vsel %vm581_vm3, %v579_v12, %v583_v14  ;;  %v7183_v11 = vcombine.low %v1279_v4, %v1283_v6  ;;  %v7185_v12 = vcombine.low %v1280_v7, %v1284_v10  ;;  %v1287_v14 = vld [vmem:[#allocation17 + $0xc0] sm:$0xff]  ;;  %v1340_v4 = vld [vmem:[#allocation17 + $0x268] sm:$0xff] }
 0x309   :  { %v588_v8 = vpack.c.bf16 %v586_v15, %v586_v15  ;;  %v9524_v17 = vpack.c.bf16 %v585_v5, %v585_v5  ;;  %v7186_v13 = vcombine.high %v1280_v7, %v1284_v10  ;;  %v1291_v15 = vld [vmem:[#allocation17 + $0xe0] sm:$0xff]  ;;  %v1288_v5 = vld [vmem:[#allocation17 + $0xc8] sm:$0xff]  ;;  %v7239_v6 = vcombine.low %v1335_v0, %v1339_v1 }
 0x30a   :  { %2804 = vmatpush1.bf16.msra.mxu0 %v7183_v11  ;;  %v1343_v10 = vld [vmem:[#allocation17 + $0x280] sm:$0xff] }
 0x30b   :  { %1005 = vmatprep.mubr.bf16.mxu1 %v588_v8  ;;  %v1347_v11 = vld [vmem:[#allocation17 + $0x2a0] sm:$0xff] }
 0x30c   :  { %1006 = vmatmul.mubr.bf16.vlgmr.msra.gmra.mrb[4].mxu1 %v9524_v17 }
 0x30d   :  { %1015 = vmatpush1.bf16.msra.mxu1 %v8155_v16  ;;  %1046 = vmatprep.mubr.bf16.mxu1 %v588_v8  ;;  %v7192_v8 = vcombine.high %v1287_v14, %v1291_v15  ;;  %v1292_v16 = vld [vmem:[#allocation17 + $0xe8] sm:$0xff] }
 0x30e   :  { %1016 = vmatprep.subr.bf16.mxu1 %v8160_v18  ;;  %v7193_v18 = vcombine.low %v1288_v5, %v1292_v16 }
 0x30f   :  { %2805 = vmatprep.subr.bf16.mxu0 %v7192_v8 }
 0x311   :  { %1017 = vmatpush1.bf16.msra.mxu1 %v8158_v19  ;;  %v7194_v19 = vcombine.high %v1288_v5, %v1292_v16  ;;  %v1351_v16 = vld [vmem:[#allocation17 + $0x2c0] sm:$0xff] }
 0x312   :  { %1018 = vmatprep.subr.bf16.mxu1 %v8163_v20  ;;  %v1295_v20 = vld [vmem:[#allocation17 + $0x100] sm:$0xff] }
 0x315   :  { %1019 = vmatpush1.bf16.msra.mxu1 %v8161_v21  ;;  %v1299_v21 = vld [vmem:[#allocation17 + $0x120] sm:$0xff] }
 0x316   :  { %1020 = vmatprep.subr.bf16.mxu1 %v8166_v22  ;;  %v1296_v22 = vld [vmem:[#allocation17 + $0x108] sm:$0xff] }
 0x319   :  { %1021 = vmatpush1.bf16.msra.mxu1 %v8164_v23  ;;  %v7200_v23 = vcombine.high %v1295_v20, %v1299_v21 }
 0x31a   :  { %1022 = vmatprep.subr.bf16.mxu1 %v8169_v24  ;;  %v1300_v24 = vld [vmem:[#allocation17 + $0x128] sm:$0xff] }
 0x31d   :  { %1023 = vmatpush1.bf16.msra.mxu1 %v8167_v25  ;;  %v7199_v25 = vcombine.low %v1295_v20, %v1299_v21  ;;  %v1356_v20 = vld [vmem:[#allocation17 + $0x2e8] sm:$0xff] }
 0x31e   :  { %1024 = vmatprep.subr.bf16.mxu1 %v8172_v26  ;;  %v7201_v26 = vcombine.low %v1296_v22, %v1300_v24 }
 0x321   :  { %1025 = vmatpush1.bf16.msra.mxu1 %v8170_v27  ;;  %v7202_v27 = vcombine.high %v1296_v22, %v1300_v24  ;;  %v1359_v24 = vld [vmem:[#allocation17 + $0x300] sm:$0xff] }
 0x322   :  { %1026 = vmatprep.subr.bf16.mxu1 %v8175_v28  ;;  %v1303_v28 = vld [vmem:[#allocation17 + $0x140] sm:$0xff] }
 0x325   :  { %1027 = vmatpush1.bf16.msra.mxu1 %v8173_v29  ;;  %v1307_v29 = vld [vmem:[#allocation17 + $0x160] sm:$0xff] }
 0x326   :  { %1028 = vmatprep.subr.bf16.mxu1 %v8178_v30  ;;  %v1304_v30 = vld [vmem:[#allocation17 + $0x148] sm:$0xff] }
 0x329   :  { %1029 = vmatpush1.bf16.msra.mxu1 %v8176_v31  ;;  %v7208_v31 = vcombine.high %v1303_v28, %v1307_v29 }
 0x32a   :  { %1030 = vmatprep.subr.bf16.mxu1 %v8181_v32  ;;  %v1308_v32 = vld [vmem:[#allocation17 + $0x168] sm:$0xff] }
 0x32d   :  { %1031 = vmatpush1.bf16.msra.mxu1 %v8179_v33  ;;  %v7207_v33 = vcombine.low %v1303_v28, %v1307_v29  ;;  %v1364_v28 = vld [vmem:[#allocation17 + $0x328] sm:$0xff] }
 0x32e   :  { %1032 = vmatprep.subr.bf16.mxu1 %v8184_v34  ;;  %v7209_v34 = vcombine.low %v1304_v30, %v1308_v32 }
 0x331   :  { %1033 = vmatpush1.bf16.msra.mxu1 %v8182_v35  ;;  %v7210_v35 = vcombine.high %v1304_v30, %v1308_v32  ;;  %v1367_v32 = vld [vmem:[#allocation17 + $0x340] sm:$0xff] }
 0x332   :  { %1034 = vmatprep.subr.bf16.mxu1 %v8187_v36  ;;  %v1311_v36 = vld [vmem:[#allocation17 + $0x180] sm:$0xff] }
 0x335   :  { %1035 = vmatpush1.bf16.msra.mxu1 %v8185_v37  ;;  %v1315_v37 = vld [vmem:[#allocation17 + $0x1a0] sm:$0xff] }
 0x336   :  { %1036 = vmatprep.subr.bf16.mxu1 %v8190_v38  ;;  %v1312_v38 = vld [vmem:[#allocation17 + $0x188] sm:$0xff] }
 0x339   :  { %1037 = vmatpush1.bf16.msra.mxu1 %v8188_v39  ;;  %v7216_v39 = vcombine.high %v1311_v36, %v1315_v37 }
 0x33a   :  { %1038 = vmatprep.subr.bf16.mxu1 %v8193_v40  ;;  %v1316_v40 = vld [vmem:[#allocation17 + $0x1a8] sm:$0xff] }
 0x33d   :  { %1039 = vmatpush1.bf16.msra.mxu1 %v8191_v41  ;;  %v7215_v41 = vcombine.low %v1311_v36, %v1315_v37  ;;  %v1372_v36 = vld [vmem:[#allocation17 + $0x368] sm:$0xff] }
 0x33e   :  { %1040 = vmatprep.subr.bf16.mxu1 %v8196_v42  ;;  %v7217_v42 = vcombine.low %v1312_v38, %v1316_v40 }
 0x341   :  { %1041 = vmatpush1.bf16.msra.mxu1 %v8194_v43  ;;  %v7218_v43 = vcombine.high %v1312_v38, %v1316_v40  ;;  %v1375_v40 = vld [vmem:[#allocation17 + $0x380] sm:$0xff] }
 0x342   :  { %1042 = vmatprep.subr.bf16.mxu1 %v8199_v44  ;;  %v1319_v44 = vld [vmem:[#allocation17 + $0x1c0] sm:$0xff] }
 0x345   :  { %1043 = vmatpush1.bf16.msra.mxu1 %v8197_v45  ;;  %v1323_v45 = vld [vmem:[#allocation17 + $0x1e0] sm:$0xff] }
 0x346   :  { %1044 = vmatprep.subr.bf16.mxu1 %v8202_v46  ;;  %v1320_v46 = vld [vmem:[#allocation17 + $0x1c8] sm:$0xff]  ;;  %v7223_v50 = vcombine.low %v1319_v44, %v1323_v45 }
 0x347   :  { %v7225_v52 = vcombine.low %v1320_v46, %v1324_v48  ;;  %v7226_v53 = vcombine.high %v1320_v46, %v1324_v48  ;;  %v1383_v48 = vld [vmem:[#allocation17 + $0x3c0] sm:$0xff] }
 0x349   :  { %1045 = vmatpush1.bf16.msra.mxu1 %v8200_v47  ;;  %v7224_v47 = vcombine.high %v1319_v44, %v1323_v45  ;;  %v1380_v44 = vld [vmem:[#allocation17 + $0x3a8] sm:$0xff] }
 0x34a   :  { %2881 = vmatprep.subr.bf16.mxu1 %v7170_v59  ;;  %v7232_v59 = vcombine.high %v1327_v54, %v1331_v55  ;;  %v1388_v55 = vld [vmem:[#allocation17 + $0x3e8] sm:$0xff] }
 0x34c   :  { %1047 = vmatmul.mubr.bf16.vlgmr.msra.gmra.mrb[8].mxu1 %v9524_v17  ;;  %v7191_v17 = vcombine.low %v1287_v14, %v1291_v15  ;;  %v1348_v14 = vld [vmem:[#allocation17 + $0x2a8] sm:$0xff]  ;;  %v7247_v15 = vcombine.low %v1343_v10, %v1347_v11 }
 0x34d   :  { %2882 = vmatpush1.bf16.msra.mxu1 %v7169_v56  ;;  %v1328_v56 = vld [vmem:[#allocation17 + $0x208] sm:$0xff] }
 0x34e   :  { %2883 = vmatprep.subr.bf16.mxu1 %v7178_v3  ;;  %2806 = vmatpush1.bf16.msra.mxu0 %v7191_v17  ;;  %v7233_v62 = vcombine.low %v1328_v56, %v1332_v60  ;;  %v7234_v63 = vcombine.high %v1328_v56, %v1332_v60  ;;  %v7240_v3 = vcombine.high %v1335_v0, %v1339_v1  ;;  %v1355_v17 = vld [vmem:[#allocation17 + $0x2e0] sm:$0xff] }
 0x34f   :  { %2807 = vmatprep.subr.bf16.mxu0 %v7200_v23  ;;  %v7255_v21 = vcombine.low %v1351_v16, %v1355_v17 }
 0x351   :  { %2884 = vmatpush1.bf16.msra.mxu1 %v7177_v2  ;;  %v1336_v2 = vld [vmem:[#allocation17 + $0x248] sm:$0xff] }
 0x352   :  { %2885 = vmatprep.subr.bf16.mxu1 %v7186_v13  ;;  %2808 = vmatpush1.bf16.msra.mxu0 %v7199_v25  ;;  %v7241_v7 = vcombine.low %v1336_v2, %v1340_v4  ;;  %v7242_v9 = vcombine.high %v1336_v2, %v1340_v4  ;;  %v7248_v13 = vcombine.high %v1343_v10, %v1347_v11  ;;  %v1363_v25 = vld [vmem:[#allocation17 + $0x320] sm:$0xff]  ;;  %v9543_v4 = vld [vmem:[#allocation17 + $0x428] sm:$0xff] }
 0x353   :  { %2809 = vmatprep.subr.bf16.mxu0 %v7208_v31  ;;  %v7263_v29 = vcombine.low %v1359_v24, %v1363_v25 }
 0x355   :  { %2886 = vmatpush1.bf16.msra.mxu1 %v7185_v12  ;;  %v1344_v12 = vld [vmem:[#allocation17 + $0x288] sm:$0xff] }
 0x356   :  { %2887 = vmatprep.subr.bf16.mxu1 %v7194_v19  ;;  %2810 = vmatpush1.bf16.msra.mxu0 %v7207_v33  ;;  %v7249_v5 = vcombine.low %v1344_v12, %v1348_v14  ;;  %v7250_v8 = vcombine.high %v1344_v12, %v1348_v14  ;;  %v7256_v19 = vcombine.high %v1351_v16, %v1355_v17  ;;  %v1371_v33 = vld [vmem:[#allocation17 + $0x360] sm:$0xff] }
 0x357   :  { %2811 = vmatprep.subr.bf16.mxu0 %v7216_v39  ;;  %v7271_v37 = vcombine.low %v1367_v32, %v1371_v33 }
 0x359   :  { %2888 = vmatpush1.bf16.msra.mxu1 %v7193_v18  ;;  %v1352_v18 = vld [vmem:[#allocation17 + $0x2c8] sm:$0xff] }
 0x35a   :  { %2889 = vmatprep.subr.bf16.mxu1 %v7202_v27  ;;  %2812 = vmatpush1.bf16.msra.mxu0 %v7215_v41  ;;  %v7257_v22 = vcombine.low %v1352_v18, %v1356_v20  ;;  %v7258_v23 = vcombine.high %v1352_v18, %v1356_v20  ;;  %v7264_v27 = vcombine.high %v1359_v24, %v1363_v25  ;;  %v1379_v41 = vld [vmem:[#allocation17 + $0x3a0] sm:$0xff] }
 0x35b   :  { %2813 = vmatprep.subr.bf16.mxu0 %v7224_v47  ;;  %v7279_v45 = vcombine.low %v1375_v40, %v1379_v41 }
 0x35d   :  { %2890 = vmatpush1.bf16.msra.mxu1 %v7201_v26  ;;  %v1360_v26 = vld [vmem:[#allocation17 + $0x308] sm:$0xff] }
 0x35e   :  { %2891 = vmatprep.subr.bf16.mxu1 %v7210_v35  ;;  %2814 = vmatpush1.bf16.msra.mxu0 %v7223_v50  ;;  %v7265_v30 = vcombine.low %v1360_v26, %v1364_v28  ;;  %v7266_v31 = vcombine.high %v1360_v26, %v1364_v28  ;;  %v7272_v35 = vcombine.high %v1367_v32, %v1371_v33  ;;  %v1387_v50 = vld [vmem:[#allocation17 + $0x3e0] sm:$0xff] }
 0x35f   :  { %2815 = vmatprep.subr.bf16.mxu0 %v7232_v59  ;;  %v7288_v54 = vcombine.high %v1383_v48, %v1387_v50 }
 0x361   :  { %2892 = vmatpush1.bf16.msra.mxu1 %v7209_v34  ;;  %v1368_v34 = vld [vmem:[#allocation17 + $0x348] sm:$0xff] }
 0x362   :  { %2893 = vmatprep.subr.bf16.mxu1 %v7218_v43  ;;  %2816 = vmatpush1.bf16.msra.mxu0 %v7231_v61  ;;  %v7273_v38 = vcombine.low %v1368_v34, %v1372_v36  ;;  %v7274_v39 = vcombine.high %v1368_v34, %v1372_v36  ;;  %v7280_v43 = vcombine.high %v1375_v40, %v1379_v41  ;;  %v9530_v61 = vld [vmem:[#allocation17 + $0x400] sm:$0xff] }
 0x363   :  { %2817 = vmatprep.subr.bf16.mxu0 %v7240_v3 }
 0x365   :  { %2894 = vmatpush1.bf16.msra.mxu1 %v7217_v42  ;;  %v1376_v42 = vld [vmem:[#allocation17 + $0x388] sm:$0xff] }
 0x366   :  { %2895 = vmatprep.subr.bf16.mxu1 %v7226_v53  ;;  %2818 = vmatpush1.bf16.msra.mxu0 %v7239_v6  ;;  %v7281_v46 = vcombine.low %v1376_v42, %v1380_v44  ;;  %v7282_v47 = vcombine.high %v1376_v42, %v1380_v44  ;;  %v7287_v53 = vcombine.low %v1383_v48, %v1387_v50 }
 0x367   :  { %2819 = vmatprep.subr.bf16.mxu0 %v7248_v13 }
 0x369   :  { %2896 = vmatpush1.bf16.msra.mxu1 %v7225_v52  ;;  %v1384_v52 = vld [vmem:[#allocation17 + $0x3c8] sm:$0xff] }
 0x36a   :  { %2897 = vmatprep.subr.bf16.mxu1 %v7234_v63  ;;  %2820 = vmatpush1.bf16.msra.mxu0 %v7247_v15  ;;  %v7289_v56 = vcombine.low %v1384_v52, %v1388_v55  ;;  %v7290_v59 = vcombine.high %v1384_v52, %v1388_v55  ;;  %v9534_v63 = vld [vmem:[#allocation17 + $0x408] sm:$0xff] }
 0x36b   :  { %2821 = vmatprep.subr.bf16.mxu0 %v7256_v19  ;;  %v7297_v11 = vcombine.low %v9534_v63, %v9543_v4  ;;  %v7298_v15 = vcombine.high %v9534_v63, %v9543_v4 }
 0x36d   :  { %2898 = vmatpush1.bf16.msra.mxu1 %v7233_v62  ;;  %v9532_v62 = vld [vmem:[#allocation17 + $0x420] sm:$0xff] }
 0x36e   :  { %2899 = vmatprep.subr.bf16.mxu1 %v7242_v9  ;;  %2822 = vmatpush1.bf16.msra.mxu0 %v7255_v21  ;;  %v7296_v3 = vcombine.high %v9530_v61, %v9532_v62  ;;  %v7295_v10 = vcombine.low %v9530_v61, %v9532_v62 }
 0x36f   :  { %2823 = vmatprep.subr.bf16.mxu0 %v7264_v27 }
 0x371   :  { %2900 = vmatpush1.bf16.msra.mxu1 %v7241_v7 }
 0x372   :  { %2901 = vmatprep.subr.bf16.mxu1 %v7250_v8  ;;  %2824 = vmatpush1.bf16.msra.mxu0 %v7263_v29 }
 0x373   :  { %2825 = vmatprep.subr.bf16.mxu0 %v7272_v35 }
 0x375   :  { %2902 = vmatpush1.bf16.msra.mxu1 %v7249_v5 }
 0x376   :  { %2903 = vmatprep.subr.bf16.mxu1 %v7258_v23  ;;  %2826 = vmatpush1.bf16.msra.mxu0 %v7271_v37 }
 0x377   :  { %2827 = vmatprep.subr.bf16.mxu0 %v7280_v43 }
 0x379   :  { %2904 = vmatpush1.bf16.msra.mxu1 %v7257_v22 }
 0x37a   :  { %2905 = vmatprep.subr.bf16.mxu1 %v7266_v31  ;;  %2828 = vmatpush1.bf16.msra.mxu0 %v7279_v45 }
 0x37b   :  { %2829 = vmatprep.subr.bf16.mxu0 %v7288_v54 }
 0x37d   :  { %2906 = vmatpush1.bf16.msra.mxu1 %v7265_v30 }
 0x37e   :  { %2907 = vmatprep.subr.bf16.mxu1 %v7274_v39  ;;  %2830 = vmatpush1.bf16.msra.mxu0 %v7287_v53 }
 0x37f   :  { %2840 = vmatprep.subr.bf16.mxu0 %v7296_v3 }
 0x381   :  { %2908 = vmatpush1.bf16.msra.mxu1 %v7273_v38 }
 0x382   :  { %2909 = vmatprep.subr.bf16.mxu1 %v7282_v47 }
 0x385   :  { %2910 = vmatpush1.bf16.msra.mxu1 %v7281_v46 }
 0x386   :  { %2911 = vmatprep.subr.bf16.mxu1 %v7290_v59 }
 0x389   :  { %2912 = vmatpush1.bf16.msra.mxu1 %v7289_v56 }
 0x38a   :  { %2922 = vmatprep.subr.bf16.mxu1 %v7298_v15 }
 0x3df   :  { %v9528_v60 = vpop.f32.mrb[4].mxu1 }
 0x3e0   :  { %v1057_v0 = vrot.slane %v9528_v60, 4  ;;  %v1085_v1 = vmul.f32 %v9528_v60, %v9528_v60  ;;  %v9539_v2 = vpop.f32.mrb[5].mxu1 }
 0x3e1   :  { %v1063_v6 = vrot.slane %v9539_v2, 4  ;;  %v1086_v7 = vmul.f32 %v9539_v2, %v9539_v2  ;;  %v1011_v9 = vpop.f32.mrb[6].mxu1 }
 0x3e2   :  { %v1058_v12 = vadd.f32 %v1057_v0, %v9528_v60  ;;  %v1089_v13 = vrot.slane %v1085_v1, 4  ;;  %v1012_v14 = vpop.f32.mrb[7].mxu1 }
 0x3e3   :  { %v1064_v5 = vadd.f32 %v1063_v6, %v9539_v2  ;;  %v1095_v8 = vrot.slane %v1086_v7, 4 }
 0x3e4   :  { %v1059_v16 = vrot.slane %v1058_v12, 2  ;;  %v1090_v17 = vadd.f32 %v1089_v13, %v1085_v1 }
 0x3e5   :  { %v1065_v18 = vrot.slane %v1064_v5, 2  ;;  %v1096_v19 = vadd.f32 %v1095_v8, %v1086_v7 }
 0x3e6   :  { %v1060_v20 = vadd.f32 %v1059_v16, %v1058_v12  ;;  %v1091_v21 = vrot.slane %v1090_v17, 2 }
 0x3e7   :  { %v1066_v22 = vadd.f32 %v1065_v18, %v1064_v5  ;;  %v1097_v23 = vrot.slane %v1096_v19, 2 }
 0x3e8   :  { %v1061_v24 = vrot.slane %v1060_v20, 1  ;;  %v1092_v25 = vadd.f32 %v1091_v21, %v1090_v17 }
 0x3e9   :  { %v1067_v26 = vrot.slane %v1066_v22, 1  ;;  %v1098_v27 = vadd.f32 %v1097_v23, %v1096_v19 }
 0x3ea   :  { %v1062_v28 = vadd.f32 %v1061_v24, %v1060_v20  ;;  %v1093_v29 = vrot.slane %v1092_v25, 1 }
 0x3eb   :  { %v1068_v30 = vadd.f32 %v1067_v26, %v1066_v22  ;;  %v1099_v31 = vrot.slane %v1098_v27, 1 }
 0x3ec   :  { %v9556_v32 = vmul.f32 0.125, %v1062_v28  ;;  %v1094_v33 = vadd.f32 %v1093_v29, %v1092_v25 }
 0x3ed   :  { %v9558_v34 = vmul.f32 0.125, %v1068_v30  ;;  %v1100_v35 = vadd.f32 %v1099_v31, %v1098_v27 }
 0x3ee   :  { %v1113_v36 = vmul.f32 0.125, %v1094_v33  ;;  %v1117_v37 = vmul.f32 %v9556_v32, %v9556_v32 }
 0x3ef   :  { %v1114_v38 = vmul.f32 0.125, %v1100_v35  ;;  %v1118_v39 = vmul.f32 %v9558_v34, %v9558_v34 }
 0x3f0   :  { %v1121_v40 = vsub.f32 %v1113_v36, %v1117_v37 }
 0x3f1   :  { %v1122_v41 = vsub.f32 %v1114_v38, %v1118_v39 }
 0x3f2   :  { %v1125_v42 = vadd.f32 0.8, %v1121_v40 }
 0x3f3   :  { %v1126_v43 = vadd.f32 0.8, %v1122_v41 }
 0x3f4   :  { %8847 = vrsqrt.f32 %v1125_v42 }
 0x3f5   :  { %8849 = vrsqrt.f32 %v1126_v43  ;;  %v1055_v43 = vld [vmem:[#allocation14] sm:$0xf] }
 0x3fe   :  { %v8848_v44 = vpop.eup %8847 }
 0x3ff   :  { %v8850_v45 = vpop.eup %8849 }
 0x400   :  { %v1137_v46 = vcombine.low %v8848_v44, %v8850_v45  ;;  %v9574_v45 = vsub.s32 2, %v9505_v49 }
 0x402   :  { %v1145_v40 = vrot.slane %v1137_v46, %v9508_v51 }
 0x41f   :  { %v9564_v47 = vpop.f32.mrb[8].mxu1 }
 0x420   :  { %v1069_v48 = vrot.slane %v9564_v47, 4  ;;  %v1087_v50 = vmul.f32 %v9564_v47, %v9564_v47  ;;  %v1050_v52 = vpop.f32.mrb[9].mxu1 }
 0x421   :  { %v1075_v53 = vrot.slane %v1050_v52, 4  ;;  %v1088_v54 = vmul.f32 %v1050_v52, %v1050_v52  ;;  %v1052_v55 = vpop.f32.mrb[10].mxu1 }
 0x422   :  { %v1070_v56 = vadd.f32 %v1069_v48, %v9564_v47  ;;  %v1101_v59 = vrot.slane %v1087_v50, 4  ;;  %v1053_v0 = vpop.f32.mrb[11].mxu1  ;;  %v9577_v48 = vsub.s32 3, %v9505_v49 }
 0x423   :  { %v1076_v1 = vadd.f32 %v1075_v53, %v1050_v52  ;;  %v1107_v3 = vrot.slane %v1088_v54, 4 }
 0x424   :  { %v1071_v6 = vrot.slane %v1070_v56, 2  ;;  %v1102_v7 = vadd.f32 %v1101_v59, %v1087_v50 }
 0x425   :  { %v1077_v9 = vrot.slane %v1076_v1, 2  ;;  %v1108_v12 = vadd.f32 %v1107_v3, %v1088_v54 }
 0x426   :  { %v1072_v13 = vadd.f32 %v1071_v6, %v1070_v56  ;;  %v1103_v14 = vrot.slane %v1102_v7, 2 }
 0x427   :  { %v1078_v15 = vadd.f32 %v1077_v9, %v1076_v1  ;;  %v1109_v5 = vrot.slane %v1108_v12, 2 }
 0x428   :  { %v1073_v8 = vrot.slane %v1072_v13, 1  ;;  %v1104_v16 = vadd.f32 %v1103_v14, %v1102_v7 }
 0x429   :  { %v1079_v17 = vrot.slane %v1078_v15, 1  ;;  %v1110_v18 = vadd.f32 %v1109_v5, %v1108_v12 }
 0x42a   :  { %v1074_v19 = vadd.f32 %v1073_v8, %v1072_v13  ;;  %v1105_v20 = vrot.slane %v1104_v16, 1  ;;  %v1056_v8 = vld [vmem:[#allocation16] sm:$0xf] }
 0x42b   :  { %v1080_v21 = vadd.f32 %v1079_v17, %v1078_v15  ;;  %v1111_v22 = vrot.slane %v1110_v18, 1 }
 0x42c   :  { %v1083_v23 = vmul.f32 0.125, %v1074_v19  ;;  %v1106_v24 = vadd.f32 %v1105_v20, %v1104_v16 }
 0x42d   :  { %v1084_v25 = vmul.f32 0.125, %v1080_v21  ;;  %v1112_v26 = vadd.f32 %v1111_v22, %v1110_v18 }
 0x42e   :  { %v1115_v27 = vmul.f32 0.125, %v1106_v24  ;;  %v1119_v28 = vmul.f32 %v1083_v23, %v1083_v23 }
 0x42f   :  { %v1116_v29 = vmul.f32 0.125, %v1112_v26  ;;  %v1120_v30 = vmul.f32 %v1084_v25, %v1084_v25  ;;  %v1403_v26 = vld [vmem:[#allocation17 + $0x460] sm:$0xff] }
 0x430   :  { %v1123_v31 = vsub.f32 %v1115_v27, %v1119_v28  ;;  %v1400_v27 = vld [vmem:[#allocation17 + $0x448] sm:$0xff] }
 0x431   :  { %v1124_v33 = vsub.f32 %v1116_v29, %v1120_v30  ;;  %v1404_v28 = vld [vmem:[#allocation17 + $0x468] sm:$0xff] }
 0x432   :  { %v1127_v35 = vadd.f32 0.8, %v1123_v31 }
 0x433   :  { %v1128_v36 = vadd.f32 0.8, %v1124_v33  ;;  %v1407_v33 = vld [vmem:[#allocation17 + $0x480] sm:$0xff] }
 0x434   :  { %8851 = vrsqrt.f32 %v1127_v35 }
 0x435   :  { %8853 = vrsqrt.f32 %v1128_v36  ;;  %v7306_v36 = vcombine.high %v1400_v27, %v1404_v28 }
 0x43e   :  { %v8852_v37 = vpop.eup %8851 }
 0x43f   :  { %v8854_v38 = vpop.eup %8853 }
 0x440   :  { %v1138_v39 = vcombine.low %v8852_v37, %v8854_v38  ;;  %v1411_v37 = vld [vmem:[#allocation17 + $0x4a0] sm:$0xff]  ;;  %v1408_v38 = vld [vmem:[#allocation17 + $0x488] sm:$0xff] }
 0x441   :  { %v7311_v61 = vcombine.low %v1407_v33, %v1411_v37 }
 0x442   :  { %v1152_v41 = vrot.slane %v1138_v39, %v9508_v51  ;;  %v1412_v39 = vld [vmem:[#allocation17 + $0x4a8] sm:$0xff] }
 0x443   :  { %v7313_v62 = vcombine.low %v1408_v38, %v1412_v39 }
 0x444   :  { %v1153_v42 = vcombine.low %v1145_v40, %v1152_v41 }
 0x446   :  { %v1160_v44 = vrot.slane %v1153_v42, %v9508_v51  ;;  %v7305_v42 = vcombine.low %v1400_v27, %v1404_v28  ;;  %v1459_v27 = vld [vmem:[#allocation17 + $0x620] sm:$0xff]  ;;  %v1456_v28 = vld [vmem:[#allocation17 + $0x608] sm:$0xff] }
 0x448   :  { %v1162_v50 = vmul.f32 %v1160_v44, %v1055_v43  ;;  %v7312_v43 = vcombine.high %v1407_v33, %v1411_v37  ;;  %v7314_v44 = vcombine.high %v1408_v38, %v1412_v39  ;;  %v1463_v38 = vld [vmem:[#allocation17 + $0x640] sm:$0xff] }
 0x449   :  { %v1467_v39 = vld [vmem:[#allocation17 + $0x660] sm:$0xff] }
 0x44a   :  { %v1167_v53 = vrot.slane %v1162_v50, %v9513_v57  ;;  %v1171_v54 = vrot.slane %v1162_v50, %v9516_v58  ;;  %v1175_v55 = vrot.slane %v1162_v50, %v9574_v45  ;;  %v1179_v46 = vrot.slane %v1162_v50, %v9577_v48  ;;  %v1415_v50 = vld [vmem:[#allocation17 + $0x4c0] sm:$0xff] }
 0x44c   :  { %v1184_v56 = vmul.f32 %v1167_v53, %v9556_v32  ;;  %v1185_v59 = vmul.f32 %v1171_v54, %v9558_v34  ;;  %v1186_v0 = vmul.f32 %v1175_v55, %v1083_v23  ;;  %v1187_v1 = vmul.f32 %v1179_v46, %v1084_v25  ;;  %v1399_v23 = vld [vmem:[#allocation17 + $0x440] sm:$0xff] }
 0x44d   :  { %v1221_v3 = vmul.f32 %v1179_v46, %v1050_v52  ;;  %v1219_v6 = vmul.f32 %v1171_v54, %v9539_v2  ;;  %v1218_v7 = vmul.f32 %v1167_v53, %v9528_v60  ;;  %v1220_v9 = vmul.f32 %v1175_v55, %v9564_v47  ;;  %v1419_v53 = vld [vmem:[#allocation17 + $0x4e0] sm:$0xff]  ;;  %v1416_v54 = vld [vmem:[#allocation17 + $0x4c8] sm:$0xff] }
 0x44e   :  { %v1192_v12 = vcombine.low %v1184_v56, %v1185_v59  ;;  %v1193_v13 = vcombine.low %v1186_v0, %v1187_v1  ;;  %v7304_v35 = vcombine.high %v1399_v23, %v1403_v26  ;;  %v7303_v41 = vcombine.low %v1399_v23, %v1403_v26  ;;  %v1420_v55 = vld [vmem:[#allocation17 + $0x4e8] sm:$0xff]  ;;  %v1455_v26 = vld [vmem:[#allocation17 + $0x600] sm:$0xff] }
 0x44f   :  { %v7320_v63 = vcombine.high %v1415_v50, %v1419_v53  ;;  %v7322_v4 = vcombine.high %v1416_v54, %v1420_v55  ;;  %v1424_v46 = vld [vmem:[#allocation17 + $0x508] sm:$0xff]  ;;  %v7319_v59 = vcombine.low %v1415_v50, %v1419_v53  ;;  %v7321_v0 = vcombine.low %v1416_v54, %v1420_v55  ;;  %v1471_v54 = vld [vmem:[#allocation17 + $0x680] sm:$0xff] }
 0x450   :  { %v1200_v14 = vrot.slane %v1192_v12, %v9508_v51  ;;  %v1207_v15 = vrot.slane %v1193_v13, %v9508_v51  ;;  %v1428_v56 = vld [vmem:[#allocation17 + $0x528] sm:$0xff]  ;;  %v7368_v50 = vcombine.high %v1463_v38, %v1467_v39  ;;  %v1475_v55 = vld [vmem:[#allocation17 + $0x6a0] sm:$0xff] }
 0x451   :  { %v1436_v12 = vld [vmem:[#allocation17 + $0x568] sm:$0xff] }
 0x452   :  { %v1208_v5 = vcombine.low %v1200_v14, %v1207_v15  ;;  %v7329_v14 = vcombine.low %v1424_v46, %v1428_v56 }
 0x454   :  { %v1215_v32 = vrot.slane %v1208_v5, %v9508_v51 }
 0x456   :  { %v1217_v34 = vsub.f32 %v1056_v8, %v1215_v32  ;;  %v1439_v8 = vld [vmem:[#allocation17 + $0x580] sm:$0xff] }
 0x457   :  { %v1443_v32 = vld [vmem:[#allocation17 + $0x5a0] sm:$0xff] }
 0x458   :  { %v1238_v16 = vrot.slane %v1217_v34, %v9577_v48  ;;  %v1230_v52 = vrot.slane %v1217_v34, %v9516_v58  ;;  %v1226_v2 = vrot.slane %v1217_v34, %v9513_v57  ;;  %v1234_v60 = vrot.slane %v1217_v34, %v9574_v45  ;;  %v1440_v34 = vld [vmem:[#allocation17 + $0x588] sm:$0xff] }
 0x45a   :  { %v1246_v47 = vadd.f32 %v1238_v16, %v1221_v3  ;;  %v1244_v17 = vadd.f32 %v1230_v52, %v1219_v6  ;;  %v1243_v18 = vadd.f32 %v1226_v2, %v1218_v7  ;;  %v9595_v19 = vadd.f32 %v1234_v60, %v1220_v9  ;;  %v1431_v6 = vld [vmem:[#allocation17 + $0x540] sm:$0xff]  ;;  %v1432_v9 = vld [vmem:[#allocation17 + $0x548] sm:$0xff] }
 0x45b   :  { %v7330_v3 = vcombine.high %v1424_v46, %v1428_v56  ;;  %v1435_v7 = vld [vmem:[#allocation17 + $0x560] sm:$0xff]  ;;  %v7338_v5 = vcombine.high %v1432_v9, %v1436_v12  ;;  %v1444_v16 = vld [vmem:[#allocation17 + $0x5a8] sm:$0xff]  ;;  %v7337_v2 = vcombine.low %v1432_v9, %v1436_v12  ;;  %v7344_v60 = vcombine.high %v1439_v8, %v1443_v32 }
 0x45c   :  { %vm1248_vm4 = vcmp.gt.f32.partialorder %v1244_v17, 0.0  ;;  %v1252_v20 = vmul.f32 0.2, %v1244_v17  ;;  %vm1247_vm5 = vcmp.gt.f32.partialorder %v1243_v18, 0.0  ;;  %v1251_v21 = vmul.f32 0.2, %v1243_v18 }
 0x45d   :  { %vm1250_vm6 = vcmp.gt.f32.partialorder %v1246_v47, 0.0  ;;  %v1254_v22 = vmul.f32 0.2, %v1246_v47  ;;  %v7336_v15 = vcombine.high %v1431_v6, %v1435_v7  ;;  %v7335_v52 = vcombine.low %v1431_v6, %v1435_v7  ;;  %v1479_v46 = vld [vmem:[#allocation17 + $0x6c0] sm:$0xff] }
 0x45e   :  { %v1256_v24 = vsel %vm1248_vm4, %v1244_v17, %v1252_v20  ;;  %v1255_v25 = vsel %vm1247_vm5, %v1243_v18, %v1251_v21  ;;  %v1447_v17 = vld [vmem:[#allocation17 + $0x5c0] sm:$0xff]  ;;  %v1448_v20 = vld [vmem:[#allocation17 + $0x5c8] sm:$0xff]  ;;  %v7345_v23 = vcombine.low %v1440_v34, %v1444_v16  ;;  %vm1249_vm7 = vcmp.gt.f32.partialorder %v9595_v19, 0.0 }
 0x45f   :  { %v9597_v29 = vpack.c.bf16 %v1256_v24, %v1256_v24  ;;  %v9599_v30 = vpack.c.bf16 %v1255_v25, %v1255_v25  ;;  %v1258_v31 = vsel %vm1250_vm6, %v1246_v47, %v1254_v22  ;;  %v7346_v47 = vcombine.high %v1440_v34, %v1444_v16  ;;  %v1451_v18 = vld [vmem:[#allocation17 + $0x5e0] sm:$0xff]  ;;  %v1452_v21 = vld [vmem:[#allocation17 + $0x5e8] sm:$0xff] }
 0x460   :  { %v9605_v40 = vpack.c.bf16 %v1258_v31, %v1258_v31  ;;  %v7343_v22 = vcombine.low %v1439_v8, %v1443_v32  ;;  %v7352_v24 = vcombine.high %v1447_v17, %v1451_v18  ;;  %v7354_v25 = vcombine.high %v1448_v20, %v1452_v21  ;;  %v1460_v31 = vld [vmem:[#allocation17 + $0x628] sm:$0xff]  ;;  %v1483_v56 = vld [vmem:[#allocation17 + $0x6e0] sm:$0xff] }
 0x461   :  { %2831 = vmatprep.mubr.bf16.mxu0 %v9597_v29  ;;  %2913 = vmatprep.mubr.bf16.mxu1 %v9597_v29  ;;  %v7351_v33 = vcombine.low %v1447_v17, %v1451_v18  ;;  %v7362_v37 = vcombine.high %v1456_v28, %v1460_v31  ;;  %v7384_v6 = vcombine.high %v1479_v46, %v1483_v56  ;;  %v1487_v9 = vld [vmem:[#allocation17 + $0x700] sm:$0xff] }
 0x462   :  { %2832 = vmatmul.mubr.bf16.vlgmr.msra.gmra.mrb[4].mxu0 %v9599_v30  ;;  %2914 = vmatmul.mubr.bf16.vlgmr.msra.gmra.mrb[12].mxu1 %v9599_v30  ;;  %v1491_v12 = vld [vmem:[#allocation17 + $0x720] sm:$0xff] }
 0x463   :  { %2841 = vmatpush1.bf16.msra.mxu0 %v7295_v10  ;;  %2923 = vmatpush1.bf16.msra.mxu1 %v7297_v11  ;;  %v1423_v10 = vld [vmem:[#allocation17 + $0x500] sm:$0xff]  ;;  %v7392_v8 = vcombine.high %v1487_v9, %v1491_v12 }
 0x464   :  { %2872 = vmatprep.mubr.bf16.mxu0 %v9605_v40  ;;  %2954 = vmatprep.mubr.bf16.mxu1 %v9605_v40  ;;  %v1427_v11 = vld [vmem:[#allocation17 + $0x520] sm:$0xff] }
 0x465   :  { %2842 = vmatprep.subr.bf16.mxu0 %v7304_v35  ;;  %2924 = vmatprep.subr.bf16.mxu1 %v7306_v36  ;;  %v7328_v1 = vcombine.high %v1423_v10, %v1427_v11  ;;  %v7327_v13 = vcombine.low %v1423_v10, %v1427_v11  ;;  %v7353_v35 = vcombine.low %v1448_v20, %v1452_v21  ;;  %v1495_v34 = vld [vmem:[#allocation17 + $0x740] sm:$0xff] }
 0x466   :  { %v7360_v36 = vcombine.high %v1455_v26, %v1459_v27  ;;  %v7376_v10 = vcombine.high %v1471_v54, %v1475_v55  ;;  %v1499_v16 = vld [vmem:[#allocation17 + $0x760] sm:$0xff] }
 0x467   :  { %2843 = vmatpush1.bf16.msra.mxu0 %v7303_v41  ;;  %2925 = vmatpush1.bf16.msra.mxu1 %v7305_v42  ;;  %v1464_v41 = vld [vmem:[#allocation17 + $0x648] sm:$0xff]  ;;  %v7400_v17 = vcombine.high %v1495_v34, %v1499_v16  ;;  %v1503_v20 = vld [vmem:[#allocation17 + $0x780] sm:$0xff] }
 0x468   :  { %2844 = vmatprep.subr.bf16.mxu0 %v7312_v43  ;;  %2926 = vmatprep.subr.bf16.mxu1 %v7314_v44  ;;  %v1468_v42 = vld [vmem:[#allocation17 + $0x668] sm:$0xff]  ;;  %v7359_v43 = vcombine.low %v1455_v26, %v1459_v27  ;;  %v7361_v44 = vcombine.low %v1456_v28, %v1460_v31  ;;  %v1507_v21 = vld [vmem:[#allocation17 + $0x7a0] sm:$0xff] }
 0x469   :  { %v7370_v53 = vcombine.high %v1464_v41, %v1468_v42  ;;  %v7408_v26 = vcombine.high %v1503_v20, %v1507_v21  ;;  %v1511_v28 = vld [vmem:[#allocation17 + $0x7c0] sm:$0xff] }
 0x46a   :  { %v1515_v31 = vld [vmem:[#allocation17 + $0x7e0] sm:$0xff] }
 0x46b   :  { %2845 = vmatpush1.bf16.msra.mxu0 %v7311_v61  ;;  %2927 = vmatpush1.bf16.msra.mxu1 %v7313_v62  ;;  %v1472_v61 = vld [vmem:[#allocation17 + $0x688] sm:$0xff] }
 0x46c   :  { %2846 = vmatprep.subr.bf16.mxu0 %v7320_v63  ;;  %2928 = vmatprep.subr.bf16.mxu1 %v7322_v4  ;;  %v1476_v62 = vld [vmem:[#allocation17 + $0x6a8] sm:$0xff]  ;;  %v7367_v63 = vcombine.low %v1463_v38, %v1467_v39  ;;  %v7369_v4 = vcombine.low %v1464_v41, %v1468_v42  ;;  %v7416_v38 = vcombine.high %v1511_v28, %v1515_v31  ;;  %v1265_v41 = vld [vmem:[#allocation17 + $0x10] sm:$0xff]  ;;  %v1253_v42 = vmul.f32 0.2, %v9595_v19 }
 0x46d   :  { %v7378_v11 = vcombine.high %v1472_v61, %v1476_v62 }
 0x46f   :  { %2847 = vmatpush1.bf16.msra.mxu0 %v7319_v59  ;;  %2929 = vmatpush1.bf16.msra.mxu1 %v7321_v0  ;;  %v1480_v59 = vld [vmem:[#allocation17 + $0x6c8] sm:$0xff] }
 0x470   :  { %2848 = vmatprep.subr.bf16.mxu0 %v7328_v1  ;;  %2930 = vmatprep.subr.bf16.mxu1 %v7330_v3  ;;  %v1484_v0 = vld [vmem:[#allocation17 + $0x6e8] sm:$0xff]  ;;  %v7375_v1 = vcombine.low %v1471_v54, %v1475_v55  ;;  %v7377_v3 = vcombine.low %v1472_v61, %v1476_v62  ;;  %v1257_v62 = vsel %vm1249_vm7, %v9595_v19, %v1253_v42  ;;  %v1282_v19 = vld [vmem:[#allocation17 + $0x98] sm:$0xff] }
 0x471   :  { %v7386_v7 = vcombine.high %v1480_v59, %v1484_v0 }
 0x473   :  { %2849 = vmatpush1.bf16.msra.mxu0 %v7327_v13  ;;  %2931 = vmatpush1.bf16.msra.mxu1 %v7329_v14  ;;  %v1488_v13 = vld [vmem:[#allocation17 + $0x708] sm:$0xff] }
 0x474   :  { %2850 = vmatprep.subr.bf16.mxu0 %v7336_v15  ;;  %2932 = vmatprep.subr.bf16.mxu1 %v7338_v5  ;;  %v1492_v14 = vld [vmem:[#allocation17 + $0x728] sm:$0xff]  ;;  %v7383_v15 = vcombine.low %v1479_v46, %v1483_v56  ;;  %v7385_v5 = vcombine.low %v1480_v59, %v1484_v0  ;;  %v9618_v56 = vpack.c.bf16 %v1257_v62, %v1257_v62 }
 0x475   :  { %v7394_v32 = vcombine.high %v1488_v13, %v1492_v14 }
 0x477   :  { %2851 = vmatpush1.bf16.msra.mxu0 %v7335_v52  ;;  %2933 = vmatpush1.bf16.msra.mxu1 %v7337_v2  ;;  %v1496_v52 = vld [vmem:[#allocation17 + $0x748] sm:$0xff] }
 0x478   :  { %2852 = vmatprep.subr.bf16.mxu0 %v7344_v60  ;;  %2934 = vmatprep.subr.bf16.mxu1 %v7346_v47  ;;  %v1500_v2 = vld [vmem:[#allocation17 + $0x768] sm:$0xff]  ;;  %v7391_v60 = vcombine.low %v1487_v9, %v1491_v12  ;;  %v7393_v47 = vcombine.low %v1488_v13, %v1492_v14 }
 0x479   :  { %v7402_v18 = vcombine.high %v1496_v52, %v1500_v2 }
 0x47b   :  { %2853 = vmatpush1.bf16.msra.mxu0 %v7343_v22  ;;  %2935 = vmatpush1.bf16.msra.mxu1 %v7345_v23  ;;  %v1504_v22 = vld [vmem:[#allocation17 + $0x788] sm:$0xff] }
 0x47c   :  { %2854 = vmatprep.subr.bf16.mxu0 %v7352_v24  ;;  %2936 = vmatprep.subr.bf16.mxu1 %v7354_v25  ;;  %v1508_v23 = vld [vmem:[#allocation17 + $0x7a8] sm:$0xff]  ;;  %v7399_v24 = vcombine.low %v1495_v34, %v1499_v16  ;;  %v7401_v25 = vcombine.low %v1496_v52, %v1500_v2 }
 0x47d   :  { %v7410_v27 = vcombine.high %v1504_v22, %v1508_v23 }
 0x47f   :  { %2855 = vmatpush1.bf16.msra.mxu0 %v7351_v33  ;;  %2937 = vmatpush1.bf16.msra.mxu1 %v7353_v35  ;;  %v1512_v33 = vld [vmem:[#allocation17 + $0x7c8] sm:$0xff] }
 0x480   :  { %2856 = vmatprep.subr.bf16.mxu0 %v7360_v36  ;;  %2938 = vmatprep.subr.bf16.mxu1 %v7362_v37  ;;  %v1516_v35 = vld [vmem:[#allocation17 + $0x7e8] sm:$0xff]  ;;  %v7407_v36 = vcombine.low %v1503_v20, %v1507_v21  ;;  %v7409_v37 = vcombine.low %v1504_v22, %v1508_v23  ;;  %v1305_v23 = vld [vmem:[#allocation17 + $0x150] sm:$0xff] }
 0x481   :  { %v7418_v39 = vcombine.high %v1512_v33, %v1516_v35  ;;  %v7417_v54 = vcombine.low %v1512_v33, %v1516_v35  ;;  %v1313_v35 = vld [vmem:[#allocation17 + $0x190] sm:$0xff] }
 0x483   :  { %2857 = vmatpush1.bf16.msra.mxu0 %v7359_v43  ;;  %2939 = vmatpush1.bf16.msra.mxu1 %v7361_v44  ;;  %v1269_v43 = vld [vmem:[#allocation17 + $0x30] sm:$0xff]  ;;  %v1266_v44 = vld [vmem:[#allocation17 + $0x18] sm:$0xff] }
 0x484   :  { %2858 = vmatprep.subr.bf16.mxu0 %v7368_v50  ;;  %2940 = vmatprep.subr.bf16.mxu1 %v7370_v53  ;;  %v1270_v50 = vld [vmem:[#allocation17 + $0x38] sm:$0xff]  ;;  %v7415_v53 = vcombine.low %v1511_v28, %v1515_v31  ;;  %v7172_v55 = vcombine.high %v1265_v41, %v1269_v43  ;;  %v7171_v46 = vcombine.low %v1265_v41, %v1269_v43 }
 0x485   :  { %v7174_v61 = vcombine.high %v1266_v44, %v1270_v50  ;;  %v7173_v59 = vcombine.low %v1266_v44, %v1270_v50  ;;  %v1321_v44 = vld [vmem:[#allocation17 + $0x1d0] sm:$0xff] }
 0x486   :  { %v1325_v50 = vld [vmem:[#allocation17 + $0x1f0] sm:$0xff] }
 0x487   :  { %2859 = vmatpush1.bf16.msra.mxu0 %v7367_v63  ;;  %2941 = vmatpush1.bf16.msra.mxu1 %v7369_v4  ;;  %v1273_v63 = vld [vmem:[#allocation17 + $0x50] sm:$0xff]  ;;  %v7228_v62 = vcombine.high %v1321_v44, %v1325_v50 }
 0x488   :  { %2860 = vmatprep.subr.bf16.mxu0 %v7376_v10  ;;  %2942 = vmatprep.subr.bf16.mxu1 %v7378_v11  ;;  %v1277_v4 = vld [vmem:[#allocation17 + $0x70] sm:$0xff]  ;;  %v1274_v10 = vld [vmem:[#allocation17 + $0x58] sm:$0xff] }
 0x489   :  { %v1278_v11 = vld [vmem:[#allocation17 + $0x78] sm:$0xff]  ;;  %v7180_v0 = vcombine.high %v1273_v63, %v1277_v4  ;;  %v7179_v9 = vcombine.low %v1273_v63, %v1277_v4  ;;  %v1329_v4 = vld [vmem:[#allocation17 + $0x210] sm:$0xff] }
 0x48a   :  { %v7181_v12 = vcombine.low %v1274_v10, %v1278_v11 }
 0x48b   :  { %2861 = vmatpush1.bf16.msra.mxu0 %v7375_v1  ;;  %2943 = vmatpush1.bf16.msra.mxu1 %v7377_v3  ;;  %v7182_v1 = vcombine.high %v1274_v10, %v1278_v11  ;;  %v1281_v3 = vld [vmem:[#allocation17 + $0x90] sm:$0xff]  ;;  %v1330_v11 = vld [vmem:[#allocation17 + $0x218] sm:$0xff] }
 0x48c   :  { %2862 = vmatprep.subr.bf16.mxu0 %v7384_v6  ;;  %2944 = vmatprep.subr.bf16.mxu1 %v7386_v7  ;;  %v1285_v6 = vld [vmem:[#allocation17 + $0xb0] sm:$0xff]  ;;  %v1286_v7 = vld [vmem:[#allocation17 + $0xb8] sm:$0xff] }
 0x48d   :  { %v7188_v13 = vcombine.high %v1281_v3, %v1285_v6  ;;  %v7190_v14 = vcombine.high %v1282_v19, %v1286_v7  ;;  %v7187_v34 = vcombine.low %v1281_v3, %v1285_v6  ;;  %v7189_v16 = vcombine.low %v1282_v19, %v1286_v7  ;;  %v1333_v10 = vld [vmem:[#allocation17 + $0x230] sm:$0xff]  ;;  %v1338_v7 = vld [vmem:[#allocation17 + $0x258] sm:$0xff] }
 0x48e   :  { %v1337_v6 = vld [vmem:[#allocation17 + $0x250] sm:$0xff] }
 0x48f   :  { %2863 = vmatpush1.bf16.msra.mxu0 %v7383_v15  ;;  %2945 = vmatpush1.bf16.msra.mxu1 %v7385_v5  ;;  %v1289_v15 = vld [vmem:[#allocation17 + $0xd0] sm:$0xff] }
 0x490   :  { %2864 = vmatprep.subr.bf16.mxu0 %v7392_v8  ;;  %2946 = vmatprep.subr.bf16.mxu1 %v7394_v32  ;;  %v1293_v5 = vld [vmem:[#allocation17 + $0xf0] sm:$0xff]  ;;  %v1290_v8 = vld [vmem:[#allocation17 + $0xd8] sm:$0xff] }
 0x491   :  { %v1294_v32 = vld [vmem:[#allocation17 + $0xf8] sm:$0xff]  ;;  %v7196_v52 = vcombine.high %v1289_v15, %v1293_v5  ;;  %v1341_v19 = vld [vmem:[#allocation17 + $0x270] sm:$0xff] }
 0x492   :  { %v7198_v2 = vcombine.high %v1290_v8, %v1294_v32  ;;  %v7197_v20 = vcombine.low %v1290_v8, %v1294_v32  ;;  %v1349_v8 = vld [vmem:[#allocation17 + $0x2b0] sm:$0xff]  ;;  %v1346_v32 = vld [vmem:[#allocation17 + $0x298] sm:$0xff] }
 0x493   :  { %2865 = vmatpush1.bf16.msra.mxu0 %v7391_v60  ;;  %2947 = vmatpush1.bf16.msra.mxu1 %v7393_v47  ;;  %v1297_v60 = vld [vmem:[#allocation17 + $0x110] sm:$0xff] }
 0x494   :  { %2866 = vmatprep.subr.bf16.mxu0 %v7400_v17  ;;  %2948 = vmatprep.subr.bf16.mxu1 %v7402_v18  ;;  %v1301_v47 = vld [vmem:[#allocation17 + $0x130] sm:$0xff]  ;;  %v1302_v17 = vld [vmem:[#allocation17 + $0x138] sm:$0xff]  ;;  %v7195_v18 = vcombine.low %v1289_v15, %v1293_v5 }
 0x495   :  { %v7204_v21 = vcombine.high %v1297_v60, %v1301_v47  ;;  %v1345_v5 = vld [vmem:[#allocation17 + $0x290] sm:$0xff] }
 0x497   :  { %2867 = vmatpush1.bf16.msra.mxu0 %v7399_v24  ;;  %2949 = vmatpush1.bf16.msra.mxu1 %v7401_v25  ;;  %v1309_v24 = vld [vmem:[#allocation17 + $0x170] sm:$0xff]  ;;  %v1306_v25 = vld [vmem:[#allocation17 + $0x158] sm:$0xff] }
 0x498   :  { %2868 = vmatprep.subr.bf16.mxu0 %v7408_v26  ;;  %2950 = vmatprep.subr.bf16.mxu1 %v7410_v27  ;;  %v1310_v26 = vld [vmem:[#allocation17 + $0x178] sm:$0xff]  ;;  %v7203_v27 = vcombine.low %v1297_v60, %v1301_v47  ;;  %v7212_v31 = vcombine.high %v1305_v23, %v1309_v24  ;;  %v1353_v47 = vld [vmem:[#allocation17 + $0x2d0] sm:$0xff] }
 0x499   :  { %v7214_v33 = vcombine.high %v1306_v25, %v1310_v26  ;;  %v7213_v41 = vcombine.low %v1306_v25, %v1310_v26  ;;  %v1365_v25 = vld [vmem:[#allocation17 + $0x330] sm:$0xff]  ;;  %v1362_v26 = vld [vmem:[#allocation17 + $0x318] sm:$0xff] }
 0x49b   :  { %2869 = vmatpush1.bf16.msra.mxu0 %v7407_v36  ;;  %2951 = vmatpush1.bf16.msra.mxu1 %v7409_v37  ;;  %v1317_v36 = vld [vmem:[#allocation17 + $0x1b0] sm:$0xff]  ;;  %v1314_v37 = vld [vmem:[#allocation17 + $0x198] sm:$0xff] }
 0x49c   :  { %2870 = vmatprep.subr.bf16.mxu0 %v7416_v38  ;;  %2952 = vmatprep.subr.bf16.mxu1 %v7418_v39  ;;  %v1318_v38 = vld [vmem:[#allocation17 + $0x1b8] sm:$0xff]  ;;  %v7211_v39 = vcombine.low %v1305_v23, %v1309_v24  ;;  %v7220_v42 = vcombine.high %v1313_v35, %v1317_v36  ;;  %v1361_v24 = vld [vmem:[#allocation17 + $0x310] sm:$0xff] }
 0x49d   :  { %v7222_v43 = vcombine.high %v1314_v37, %v1318_v38 }
 0x49f   :  { %2871 = vmatpush1.bf16.msra.mxu0 %v7415_v53  ;;  %2953 = vmatpush1.bf16.msra.mxu1 %v7417_v54  ;;  %v1322_v53 = vld [vmem:[#allocation17 + $0x1d8] sm:$0xff] }
 0x4a0   :  { %2963 = vmatprep.subr.bf16.mxu0 %v7172_v55  ;;  %3045 = vmatprep.subr.bf16.mxu1 %v7174_v61  ;;  %v1326_v54 = vld [vmem:[#allocation17 + $0x1f8] sm:$0xff]  ;;  %v7219_v55 = vcombine.low %v1313_v35, %v1317_v36  ;;  %v7221_v61 = vcombine.low %v1314_v37, %v1318_v38  ;;  %v1369_v36 = vld [vmem:[#allocation17 + $0x350] sm:$0xff] }
 0x4a1   :  { %v7230_v63 = vcombine.high %v1322_v53, %v1326_v54  ;;  %v1373_v37 = vld [vmem:[#allocation17 + $0x370] sm:$0xff]  ;;  %v1370_v38 = vld [vmem:[#allocation17 + $0x358] sm:$0xff] }
 0x4a2   :  { %2873 = vmatmul.mubr.bf16.vlgmr.msra.gmra.mrb[4].mxu0 %v9618_v56  ;;  %2955 = vmatmul.mubr.bf16.vlgmr.msra.gmra.mrb[12].mxu1 %v9618_v56 }
 0x4a3   :  { %2964 = vmatpush1.bf16.msra.mxu0 %v7171_v46  ;;  %2995 = vmatprep.mubr.bf16.mxu0 %v9597_v29  ;;  %v1334_v46 = vld [vmem:[#allocation17 + $0x238] sm:$0xff] }
 0x4a4   :  { %3046 = vmatpush1.bf16.msra.mxu1 %v7173_v59  ;;  %3077 = vmatprep.mubr.bf16.mxu1 %v9597_v29  ;;  %v1298_v29 = vld [vmem:[#allocation17 + $0x118] sm:$0xff]  ;;  %v7227_v59 = vcombine.low %v1321_v44, %v1325_v50  ;;  %v7238_v3 = vcombine.high %v1330_v11, %v1334_v46  ;;  %v1377_v50 = vld [vmem:[#allocation17 + $0x390] sm:$0xff] }
 0x4a5   :  { %2965 = vmatprep.subr.bf16.mxu0 %v7180_v0  ;;  %3047 = vmatprep.subr.bf16.mxu1 %v7182_v1  ;;  %v7206_v22 = vcombine.high %v1298_v29, %v1302_v17  ;;  %v7205_v28 = vcombine.low %v1298_v29, %v1302_v17  ;;  %v7229_v0 = vcombine.low %v1322_v53, %v1326_v54  ;;  %v1357_v29 = vld [vmem:[#allocation17 + $0x2f0] sm:$0xff]  ;;  %v1354_v17 = vld [vmem:[#allocation17 + $0x2d8] sm:$0xff] }
 0x4a6   :  { %v7236_v1 = vcombine.high %v1329_v4, %v1333_v10  ;;  %v1381_v53 = vld [vmem:[#allocation17 + $0x3b0] sm:$0xff]  ;;  %v1378_v54 = vld [vmem:[#allocation17 + $0x398] sm:$0xff] }
 0x4a7   :  { %2966 = vmatpush1.bf16.msra.mxu0 %v7179_v9  ;;  %v1342_v9 = vld [vmem:[#allocation17 + $0x278] sm:$0xff] }
 0x4a8   :  { %3048 = vmatpush1.bf16.msra.mxu1 %v7181_v12  ;;  %2967 = vmatprep.subr.bf16.mxu0 %v7188_v13  ;;  %v7235_v12 = vcombine.low %v1329_v4, %v1333_v10  ;;  %v7237_v13 = vcombine.low %v1330_v11, %v1334_v46  ;;  %v7246_v15 = vcombine.high %v1338_v7, %v1342_v9  ;;  %v1385_v10 = vld [vmem:[#allocation17 + $0x3d0] sm:$0xff]  ;;  %v1386_v46 = vld [vmem:[#allocation17 + $0x3d8] sm:$0xff] }
 0x4a9   :  { %3049 = vmatprep.subr.bf16.mxu1 %v7190_v14  ;;  %v7244_v14 = vcombine.high %v1337_v6, %v1341_v19  ;;  %v1389_v11 = vld [vmem:[#allocation17 + $0x3f0] sm:$0xff] }
 0x4ab   :  { %2968 = vmatpush1.bf16.msra.mxu0 %v7187_v34  ;;  %v1350_v34 = vld [vmem:[#allocation17 + $0x2b8] sm:$0xff] }
 0x4ac   :  { %3050 = vmatpush1.bf16.msra.mxu1 %v7189_v16  ;;  %2969 = vmatprep.subr.bf16.mxu0 %v7196_v52  ;;  %v7243_v16 = vcombine.low %v1337_v6, %v1341_v19  ;;  %v7245_v52 = vcombine.low %v1338_v7, %v1342_v9  ;;  %v7254_v60 = vcombine.high %v1346_v32, %v1350_v34  ;;  %v1393_v19 = vld [vmem:[#allocation17 + $0x410] sm:$0xff]  ;;  %v1394_v9 = vld [vmem:[#allocation17 + $0x418] sm:$0xff] }
 0x4ad   :  { %3051 = vmatprep.subr.bf16.mxu1 %v7198_v2  ;;  %v7252_v2 = vcombine.high %v1345_v5, %v1349_v8  ;;  %v1397_v7 = vld [vmem:[#allocation17 + $0x430] sm:$0xff] }
 0x4af   :  { %2970 = vmatpush1.bf16.msra.mxu0 %v7195_v18  ;;  %v1358_v18 = vld [vmem:[#allocation17 + $0x2f8] sm:$0xff] }
 0x4b0   :  { %3052 = vmatpush1.bf16.msra.mxu1 %v7197_v20  ;;  %2971 = vmatprep.subr.bf16.mxu0 %v7204_v21  ;;  %v7251_v20 = vcombine.low %v1345_v5, %v1349_v8  ;;  %v7253_v21 = vcombine.low %v1346_v32, %v1350_v34  ;;  %v7262_v23 = vcombine.high %v1354_v17, %v1358_v18  ;;  %v1401_v8 = vld [vmem:[#allocation17 + $0x450] sm:$0xff] }
 0x4b1   :  { %3053 = vmatprep.subr.bf16.mxu1 %v7206_v22  ;;  %v7260_v22 = vcombine.high %v1353_v47, %v1357_v29  ;;  %v1405_v32 = vld [vmem:[#allocation17 + $0x470] sm:$0xff]  ;;  %v7299_v34 = vcombine.low %v1393_v19, %v1397_v7 }
 0x4b3   :  { %2972 = vmatpush1.bf16.msra.mxu0 %v7203_v27  ;;  %v1366_v27 = vld [vmem:[#allocation17 + $0x338] sm:$0xff] }
 0x4b4   :  { %3054 = vmatpush1.bf16.msra.mxu1 %v7205_v28  ;;  %2973 = vmatprep.subr.bf16.mxu0 %v7212_v31  ;;  %v7259_v28 = vcombine.low %v1353_v47, %v1357_v29  ;;  %v7261_v31 = vcombine.low %v1354_v17, %v1358_v18  ;;  %v7270_v35 = vcombine.high %v1362_v26, %v1366_v27  ;;  %v1409_v47 = vld [vmem:[#allocation17 + $0x490] sm:$0xff]  ;;  %v1410_v18 = vld [vmem:[#allocation17 + $0x498] sm:$0xff] }
 0x4b5   :  { %3055 = vmatprep.subr.bf16.mxu1 %v7214_v33  ;;  %v7268_v33 = vcombine.high %v1361_v24, %v1365_v25  ;;  %v1413_v29 = vld [vmem:[#allocation17 + $0x4b0] sm:$0xff] }
 0x4b7   :  { %2974 = vmatpush1.bf16.msra.mxu0 %v7211_v39  ;;  %v1374_v39 = vld [vmem:[#allocation17 + $0x378] sm:$0xff] }
 0x4b8   :  { %3056 = vmatpush1.bf16.msra.mxu1 %v7213_v41  ;;  %2975 = vmatprep.subr.bf16.mxu0 %v7220_v42  ;;  %v7267_v41 = vcombine.low %v1361_v24, %v1365_v25  ;;  %v7269_v42 = vcombine.low %v1362_v26, %v1366_v27  ;;  %v7278_v44 = vcombine.high %v1370_v38, %v1374_v39  ;;  %v1417_v25 = vld [vmem:[#allocation17 + $0x4d0] sm:$0xff]  ;;  %v1418_v27 = vld [vmem:[#allocation17 + $0x4d8] sm:$0xff] }
 0x4b9   :  { %3057 = vmatprep.subr.bf16.mxu1 %v7222_v43  ;;  %v7276_v43 = vcombine.high %v1369_v36, %v1373_v37  ;;  %v1421_v26 = vld [vmem:[#allocation17 + $0x4f0] sm:$0xff] }
 0x4bb   :  { %2976 = vmatpush1.bf16.msra.mxu0 %v7219_v55  ;;  %v1382_v55 = vld [vmem:[#allocation17 + $0x3b8] sm:$0xff] }
 0x4bc   :  { %3058 = vmatpush1.bf16.msra.mxu1 %v7221_v61  ;;  %2977 = vmatprep.subr.bf16.mxu0 %v7228_v62  ;;  %v7275_v61 = vcombine.low %v1369_v36, %v1373_v37  ;;  %v7277_v62 = vcombine.low %v1370_v38, %v1374_v39  ;;  %v7286_v4 = vcombine.high %v1378_v54, %v1382_v55  ;;  %v1425_v36 = vld [vmem:[#allocation17 + $0x510] sm:$0xff]  ;;  %v1426_v38 = vld [vmem:[#allocation17 + $0x518] sm:$0xff] }
 0x4bd   :  { %3059 = vmatprep.subr.bf16.mxu1 %v7230_v63  ;;  %v7284_v63 = vcombine.high %v1377_v50, %v1381_v53  ;;  %v1429_v37 = vld [vmem:[#allocation17 + $0x530] sm:$0xff]  ;;  %v1430_v39 = vld [vmem:[#allocation17 + $0x538] sm:$0xff] }
 0x4bf   :  { %2978 = vmatpush1.bf16.msra.mxu0 %v7227_v59  ;;  %v1390_v59 = vld [vmem:[#allocation17 + $0x3f8] sm:$0xff] }
 0x4c0   :  { %3060 = vmatpush1.bf16.msra.mxu1 %v7229_v0  ;;  %2979 = vmatprep.subr.bf16.mxu0 %v7236_v1  ;;  %v7283_v0 = vcombine.low %v1377_v50, %v1381_v53  ;;  %v7285_v1 = vcombine.low %v1378_v54, %v1382_v55  ;;  %v7294_v6 = vcombine.high %v1386_v46, %v1390_v59  ;;  %v1437_v50 = vld [vmem:[#allocation17 + $0x570] sm:$0xff]  ;;  %v1434_v53 = vld [vmem:[#allocation17 + $0x558] sm:$0xff] }
 0x4c1   :  { %3061 = vmatprep.subr.bf16.mxu1 %v7238_v3  ;;  %v7292_v3 = vcombine.high %v1385_v10, %v1389_v11  ;;  %v1438_v54 = vld [vmem:[#allocation17 + $0x578] sm:$0xff]  ;;  %v7331_v55 = vcombine.low %v1425_v36, %v1429_v37 }
 0x4c3   :  { %2980 = vmatpush1.bf16.msra.mxu0 %v7235_v12  ;;  %v1398_v12 = vld [vmem:[#allocation17 + $0x438] sm:$0xff] }
 0x4c4   :  { %3062 = vmatpush1.bf16.msra.mxu1 %v7237_v13  ;;  %2981 = vmatprep.subr.bf16.mxu0 %v7244_v14  ;;  %v7291_v13 = vcombine.low %v1385_v10, %v1389_v11  ;;  %v7293_v14 = vcombine.low %v1386_v46, %v1390_v59  ;;  %v7302_v5 = vcombine.high %v1394_v9, %v1398_v12  ;;  %v1445_v10 = vld [vmem:[#allocation17 + $0x5b0] sm:$0xff]  ;;  %v1442_v11 = vld [vmem:[#allocation17 + $0x598] sm:$0xff] }
 0x4c5   :  { %3063 = vmatprep.subr.bf16.mxu1 %v7246_v15  ;;  %v7300_v15 = vcombine.high %v1393_v19, %v1397_v7  ;;  %v1446_v46 = vld [vmem:[#allocation17 + $0x5b8] sm:$0xff]  ;;  %v1453_v19 = vld [vmem:[#allocation17 + $0x5f0] sm:$0xff] }
 0x4c6   :  { %v1450_v7 = vld [vmem:[#allocation17 + $0x5d8] sm:$0xff] }
 0x4c7   :  { %2982 = vmatpush1.bf16.msra.mxu0 %v7243_v16  ;;  %v1402_v16 = vld [vmem:[#allocation17 + $0x458] sm:$0xff] }
 0x4c8   :  { %3064 = vmatpush1.bf16.msra.mxu1 %v7245_v52  ;;  %2983 = vmatprep.subr.bf16.mxu0 %v7252_v2  ;;  %v1406_v52 = vld [vmem:[#allocation17 + $0x478] sm:$0xff]  ;;  %v7301_v2 = vcombine.low %v1394_v9, %v1398_v12 }
 0x4c9   :  { %3065 = vmatprep.subr.bf16.mxu1 %v7254_v60  ;;  %v7308_v60 = vcombine.high %v1401_v8, %v1405_v32  ;;  %v7310_v17 = vcombine.high %v1402_v16, %v1406_v52  ;;  %v1454_v9 = vld [vmem:[#allocation17 + $0x5f8] sm:$0xff] }
 0x4cb   :  { %2984 = vmatpush1.bf16.msra.mxu0 %v7251_v20  ;;  %v1414_v20 = vld [vmem:[#allocation17 + $0x4b8] sm:$0xff] }
 0x4cc   :  { %3066 = vmatpush1.bf16.msra.mxu1 %v7253_v21  ;;  %2985 = vmatprep.subr.bf16.mxu0 %v7260_v22  ;;  %v7307_v21 = vcombine.low %v1401_v8, %v1405_v32  ;;  %v7309_v22 = vcombine.low %v1402_v16, %v1406_v52  ;;  %v7318_v24 = vcombine.high %v1410_v18, %v1414_v20  ;;  %v1461_v8 = vld [vmem:[#allocation17 + $0x630] sm:$0xff]  ;;  %v1458_v32 = vld [vmem:[#allocation17 + $0x618] sm:$0xff] }
 0x4cd   :  { %3067 = vmatprep.subr.bf16.mxu1 %v7262_v23  ;;  %v7316_v23 = vcombine.high %v1409_v47, %v1413_v29  ;;  %v7357_v52 = vcombine.low %v1450_v7, %v1454_v9 }
 0x4cf   :  { %2986 = vmatpush1.bf16.msra.mxu0 %v7259_v28  ;;  %v1422_v28 = vld [vmem:[#allocation17 + $0x4f8] sm:$0xff] }
 0x4d0   :  { %3068 = vmatpush1.bf16.msra.mxu1 %v7261_v31  ;;  %2987 = vmatprep.subr.bf16.mxu0 %v7268_v33  ;;  %v7315_v31 = vcombine.low %v1409_v47, %v1413_v29  ;;  %v7324_v33 = vcombine.high %v1417_v25, %v1421_v26  ;;  %v1465_v47 = vld [vmem:[#allocation17 + $0x650] sm:$0xff] }
 0x4d1   :  { %3069 = vmatprep.subr.bf16.mxu1 %v7270_v35  ;;  %v7326_v35 = vcombine.high %v1418_v27, %v1422_v28  ;;  %v1469_v29 = vld [vmem:[#allocation17 + $0x670] sm:$0xff] }
 0x4d3   :  { %2988 = vmatpush1.bf16.msra.mxu0 %v7267_v41  ;;  %v7325_v41 = vcombine.low %v1418_v27, %v1422_v28  ;;  %v1478_v27 = vld [vmem:[#allocation17 + $0x6b8] sm:$0xff]  ;;  %v7371_v28 = vcombine.low %v1465_v47, %v1469_v29 }
 0x4d4   :  { %3070 = vmatpush1.bf16.msra.mxu1 %v7269_v42  ;;  %2989 = vmatprep.subr.bf16.mxu0 %v7276_v43  ;;  %v7332_v42 = vcombine.high %v1425_v36, %v1429_v37  ;;  %v7334_v43 = vcombine.high %v1426_v38, %v1430_v39  ;;  %v1485_v36 = vld [vmem:[#allocation17 + $0x6f0] sm:$0xff]  ;;  %v1482_v37 = vld [vmem:[#allocation17 + $0x6d8] sm:$0xff] }
 0x4d5   :  { %3071 = vmatprep.subr.bf16.mxu1 %v7278_v44  ;;  %v1433_v44 = vld [vmem:[#allocation17 + $0x550] sm:$0xff] }
 0x4d6   :  { %v7339_v59 = vcombine.low %v1433_v44, %v1437_v50 }
 0x4d7   :  { %2990 = vmatpush1.bf16.msra.mxu0 %v7275_v61  ;;  %v7333_v61 = vcombine.low %v1426_v38, %v1430_v39  ;;  %v1486_v38 = vld [vmem:[#allocation17 + $0x6f8] sm:$0xff] }
 0x4d8   :  { %3072 = vmatpush1.bf16.msra.mxu1 %v7277_v62  ;;  %2991 = vmatprep.subr.bf16.mxu0 %v7284_v63  ;;  %v7340_v62 = vcombine.high %v1433_v44, %v1437_v50  ;;  %v7342_v63 = vcombine.high %v1434_v53, %v1438_v54  ;;  %v1493_v44 = vld [vmem:[#allocation17 + $0x730] sm:$0xff]  ;;  %v1490_v50 = vld [vmem:[#allocation17 + $0x718] sm:$0xff] }
 0x4d9   :  { %3073 = vmatprep.subr.bf16.mxu1 %v7286_v4  ;;  %v1441_v4 = vld [vmem:[#allocation17 + $0x590] sm:$0xff] }
 0x4da   :  { %v7347_v12 = vcombine.low %v1441_v4, %v1445_v10 }
 0x4db   :  { %2992 = vmatpush1.bf16.msra.mxu0 %v7283_v0  ;;  %v7341_v0 = vcombine.low %v1434_v53, %v1438_v54  ;;  %v1494_v53 = vld [vmem:[#allocation17 + $0x738] sm:$0xff] }
 0x4dc   :  { %3074 = vmatpush1.bf16.msra.mxu1 %v7285_v1  ;;  %2993 = vmatprep.subr.bf16.mxu0 %v7292_v3  ;;  %v7348_v1 = vcombine.high %v1441_v4, %v1445_v10  ;;  %v7350_v3 = vcombine.high %v1442_v11, %v1446_v46  ;;  %v1501_v4 = vld [vmem:[#allocation17 + $0x770] sm:$0xff]  ;;  %v1498_v10 = vld [vmem:[#allocation17 + $0x758] sm:$0xff] }
 0x4dd   :  { %3075 = vmatprep.subr.bf16.mxu1 %v7294_v6  ;;  %v1449_v6 = vld [vmem:[#allocation17 + $0x5d0] sm:$0xff] }
 0x4de   :  { %v7355_v16 = vcombine.low %v1449_v6, %v1453_v19 }
 0x4df   :  { %2994 = vmatpush1.bf16.msra.mxu0 %v7291_v13  ;;  %v7349_v13 = vcombine.low %v1442_v11, %v1446_v46  ;;  %v1502_v11 = vld [vmem:[#allocation17 + $0x778] sm:$0xff] }
 0x4e0   :  { %3076 = vmatpush1.bf16.msra.mxu1 %v7293_v14  ;;  %3004 = vmatprep.subr.bf16.mxu0 %v7300_v15  ;;  %v7356_v14 = vcombine.high %v1449_v6, %v1453_v19  ;;  %v7358_v15 = vcombine.high %v1450_v7, %v1454_v9  ;;  %v1509_v6 = vld [vmem:[#allocation17 + $0x7b0] sm:$0xff]  ;;  %v1506_v19 = vld [vmem:[#allocation17 + $0x798] sm:$0xff] }
 0x4e1   :  { %3086 = vmatprep.subr.bf16.mxu1 %v7302_v5  ;;  %v1457_v5 = vld [vmem:[#allocation17 + $0x610] sm:$0xff]  ;;  %v1510_v7 = vld [vmem:[#allocation17 + $0x7b8] sm:$0xff] }
 0x4e2   :  { %2996 = vmatmul.mubr.bf16.vlgmr.msra.gmra.mrb[8].mxu0 %v9599_v30 }
 0x4e3   :  { %3078 = vmatmul.mubr.bf16.vlgmr.msra.gmra.mrb[16].mxu1 %v9599_v30  ;;  %3005 = vmatpush1.bf16.msra.mxu0 %v7299_v34  ;;  %v7317_v30 = vcombine.low %v1410_v18, %v1414_v20  ;;  %v1462_v34 = vld [vmem:[#allocation17 + $0x638] sm:$0xff]  ;;  %v7363_v20 = vcombine.low %v1457_v5, %v1461_v8 }
 0x4e4   :  { %3036 = vmatprep.mubr.bf16.mxu0 %v9605_v40  ;;  %3087 = vmatpush1.bf16.msra.mxu1 %v7301_v2  ;;  %v7364_v2 = vcombine.high %v1457_v5, %v1461_v8  ;;  %v1470_v18 = vld [vmem:[#allocation17 + $0x678] sm:$0xff]  ;;  %v1517_v5 = vld [vmem:[#allocation17 + $0x7f0] sm:$0xff] }
 0x4e5   :  { %3118 = vmatprep.mubr.bf16.mxu1 %v9605_v40  ;;  %3006 = vmatprep.subr.bf16.mxu0 %v7308_v60  ;;  %v7323_v40 = vcombine.low %v1417_v25, %v1421_v26  ;;  %v7366_v60 = vcombine.high %v1458_v32, %v1462_v34  ;;  %v1477_v25 = vld [vmem:[#allocation17 + $0x6b0] sm:$0xff]  ;;  %v1474_v26 = vld [vmem:[#allocation17 + $0x698] sm:$0xff] }
 0x4e6   :  { %3088 = vmatprep.subr.bf16.mxu1 %v7310_v17  ;;  %v1466_v17 = vld [vmem:[#allocation17 + $0x658] sm:$0xff] }
 0x4e7   :  { %3007 = vmatpush1.bf16.msra.mxu0 %v7307_v21  ;;  %v7365_v21 = vcombine.low %v1458_v32, %v1462_v34  ;;  %v1514_v8 = vld [vmem:[#allocation17 + $0x7d8] sm:$0xff] }
 0x4e8   :  { %3089 = vmatpush1.bf16.msra.mxu1 %v7309_v22  ;;  %3008 = vmatprep.subr.bf16.mxu0 %v7316_v23  ;;  %v7372_v22 = vcombine.high %v1465_v47, %v1469_v29  ;;  %v7374_v23 = vcombine.high %v1466_v17, %v1470_v18  ;;  %v1518_v32 = vld [vmem:[#allocation17 + $0x7f8] sm:$0xff] }
 0x4e9   :  { %3090 = vmatprep.subr.bf16.mxu1 %v7318_v24  ;;  %v1473_v24 = vld [vmem:[#allocation17 + $0x690] sm:$0xff]  ;;  %v7421_v47 = vcombine.low %v1514_v8, %v1518_v32 }
 0x4ea   :  { %v7379_v39 = vcombine.low %v1473_v24, %v1477_v25 }
 0x4eb   :  { %3009 = vmatpush1.bf16.msra.mxu0 %v7315_v31  ;;  %v7373_v31 = vcombine.low %v1466_v17, %v1470_v18 }
 0x4ec   :  { %3091 = vmatpush1.bf16.msra.mxu1 %v7317_v30  ;;  %3010 = vmatprep.subr.bf16.mxu0 %v7324_v33  ;;  %v7380_v30 = vcombine.high %v1473_v24, %v1477_v25  ;;  %v7382_v33 = vcombine.high %v1474_v26, %v1478_v27 }
 0x4ed   :  { %3092 = vmatprep.subr.bf16.mxu1 %v7326_v35  ;;  %v1481_v35 = vld [vmem:[#allocation17 + $0x6d0] sm:$0xff] }
 0x4ee   :  { %v7387_v54 = vcombine.low %v1481_v35, %v1485_v36 }
 0x4ef   :  { %3011 = vmatpush1.bf16.msra.mxu0 %v7323_v40  ;;  %v7381_v40 = vcombine.low %v1474_v26, %v1478_v27 }
 0x4f0   :  { %3093 = vmatpush1.bf16.msra.mxu1 %v7325_v41  ;;  %3012 = vmatprep.subr.bf16.mxu0 %v7332_v42  ;;  %v7388_v41 = vcombine.high %v1481_v35, %v1485_v36  ;;  %v7390_v42 = vcombine.high %v1482_v37, %v1486_v38 }
 0x4f1   :  { %3094 = vmatprep.subr.bf16.mxu1 %v7334_v43  ;;  %v1489_v43 = vld [vmem:[#allocation17 + $0x710] sm:$0xff] }
 0x4f2   :  { %v7395_v46 = vcombine.low %v1489_v43, %v1493_v44 }
 0x4f3   :  { %3013 = vmatpush1.bf16.msra.mxu0 %v7331_v55  ;;  %v7389_v55 = vcombine.low %v1482_v37, %v1486_v38 }
 0x4f4   :  { %3095 = vmatpush1.bf16.msra.mxu1 %v7333_v61  ;;  %3014 = vmatprep.subr.bf16.mxu0 %v7340_v62  ;;  %v7396_v61 = vcombine.high %v1489_v43, %v1493_v44  ;;  %v7398_v62 = vcombine.high %v1490_v50, %v1494_v53 }
 0x4f5   :  { %3096 = vmatprep.subr.bf16.mxu1 %v7342_v63  ;;  %v1497_v63 = vld [vmem:[#allocation17 + $0x750] sm:$0xff] }
 0x4f6   :  { %v7403_v9 = vcombine.low %v1497_v63, %v1501_v4 }
 0x4f7   :  { %3015 = vmatpush1.bf16.msra.mxu0 %v7339_v59  ;;  %v7397_v59 = vcombine.low %v1490_v50, %v1494_v53 }
 0x4f8   :  { %3097 = vmatpush1.bf16.msra.mxu1 %v7341_v0  ;;  %3016 = vmatprep.subr.bf16.mxu0 %v7348_v1  ;;  %v7404_v0 = vcombine.high %v1497_v63, %v1501_v4  ;;  %v7406_v1 = vcombine.high %v1498_v10, %v1502_v11 }
 0x4f9   :  { %3098 = vmatprep.subr.bf16.mxu1 %v7350_v3  ;;  %v1505_v3 = vld [vmem:[#allocation17 + $0x790] sm:$0xff] }
 0x4fa   :  { %v7411_v34 = vcombine.low %v1505_v3, %v1509_v6 }
 0x4fb   :  { %3017 = vmatpush1.bf16.msra.mxu0 %v7347_v12  ;;  %v7405_v12 = vcombine.low %v1498_v10, %v1502_v11 }
 0x4fc   :  { %3099 = vmatpush1.bf16.msra.mxu1 %v7349_v13  ;;  %3018 = vmatprep.subr.bf16.mxu0 %v7356_v14  ;;  %v7412_v13 = vcombine.high %v1505_v3, %v1509_v6  ;;  %v7414_v14 = vcombine.high %v1506_v19, %v1510_v7  ;;  %v8205_v3 = vld [vmem:[#allocation22 + $0x4] ss:$28 sps:$4 sm:$0xff]   ;;  %v8208_v6 = vld [vmem:[#allocation22 + $0xc] ss:$28 sps:$4 sm:$0xff]  }
 0x4fd   :  { %3100 = vmatprep.subr.bf16.mxu1 %v7358_v15  ;;  %v1513_v15 = vld [vmem:[#allocation17 + $0x7d0] sm:$0xff] }
 0x4ff   :  { %3019 = vmatpush1.bf16.msra.mxu0 %v7355_v16  ;;  %v7413_v16 = vcombine.low %v1506_v19, %v1510_v7 }
 0x500   :  { %3101 = vmatpush1.bf16.msra.mxu1 %v7357_v52  ;;  %3020 = vmatprep.subr.bf16.mxu0 %v7364_v2  ;;  %v7420_v52 = vcombine.high %v1513_v15, %v1517_v5  ;;  %v7422_v2 = vcombine.high %v1514_v8, %v1518_v32 }
 0x501   :  { %3102 = vmatprep.subr.bf16.mxu1 %v7366_v60  ;;  %v7419_v60 = vcombine.low %v1513_v15, %v1517_v5 }
 0x503   :  { %3021 = vmatpush1.bf16.msra.mxu0 %v7363_v20 }
 0x504   :  { %3103 = vmatpush1.bf16.msra.mxu1 %v7365_v21  ;;  %3022 = vmatprep.subr.bf16.mxu0 %v7372_v22 }
 0x505   :  { %3104 = vmatprep.subr.bf16.mxu1 %v7374_v23 }
 0x507   :  { %3023 = vmatpush1.bf16.msra.mxu0 %v7371_v28 }
 0x508   :  { %3105 = vmatpush1.bf16.msra.mxu1 %v7373_v31  ;;  %3024 = vmatprep.subr.bf16.mxu0 %v7380_v30 }
 0x509   :  { %3106 = vmatprep.subr.bf16.mxu1 %v7382_v33 }
 0x50b   :  { %3025 = vmatpush1.bf16.msra.mxu0 %v7379_v39 }
 0x50c   :  { %3107 = vmatpush1.bf16.msra.mxu1 %v7381_v40  ;;  %3026 = vmatprep.subr.bf16.mxu0 %v7388_v41 }
 0x50d   :  { %3108 = vmatprep.subr.bf16.mxu1 %v7390_v42 }
 0x50f   :  { %3027 = vmatpush1.bf16.msra.mxu0 %v7387_v54 }
 0x510   :  { %3109 = vmatpush1.bf16.msra.mxu1 %v7389_v55  ;;  %3028 = vmatprep.subr.bf16.mxu0 %v7396_v61 }
 0x511   :  { %3110 = vmatprep.subr.bf16.mxu1 %v7398_v62 }
 0x513   :  { %3029 = vmatpush1.bf16.msra.mxu0 %v7395_v46 }
 0x514   :  { %3111 = vmatpush1.bf16.msra.mxu1 %v7397_v59  ;;  %3030 = vmatprep.subr.bf16.mxu0 %v7404_v0 }
 0x515   :  { %3112 = vmatprep.subr.bf16.mxu1 %v7406_v1 }
 0x517   :  { %3031 = vmatpush1.bf16.msra.mxu0 %v7403_v9 }
 0x518   :  { %3113 = vmatpush1.bf16.msra.mxu1 %v7405_v12  ;;  %3032 = vmatprep.subr.bf16.mxu0 %v7412_v13  ;;  %v8203_v13 = vld [vmem:[#allocation22] ss:$28 sps:$4 sm:$0xff]  }
 0x519   :  { %3114 = vmatprep.subr.bf16.mxu1 %v7414_v14  ;;  %v8206_v14 = vld [vmem:[#allocation22 + $0x8] ss:$28 sps:$4 sm:$0xff]  }
 0x51b   :  { %3033 = vmatpush1.bf16.msra.mxu0 %v7411_v34 }
 0x51c   :  { %3115 = vmatpush1.bf16.msra.mxu1 %v7413_v16  ;;  %3034 = vmatprep.subr.bf16.mxu0 %v7420_v52 }
 0x51d   :  { %3116 = vmatprep.subr.bf16.mxu1 %v7422_v2 }
 0x51f   :  { %3035 = vmatpush1.bf16.msra.mxu0 %v7419_v60 }
 0x520   :  { %3117 = vmatpush1.bf16.msra.mxu1 %v7421_v47  ;;  %6390 = vmatprep.subr.bf16.mxu0 %v8205_v3  ;;  %v8224_v3 = vld [vmem:[#allocation22 + $0xb0] ss:$28 sps:$4 sm:$0xff]  }
 0x521   :  { %6554 = vmatprep.subr.bf16.mxu1 %v8208_v6  ;;  %v8226_v6 = vld [vmem:[#allocation22 + $0xb4] ss:$28 sps:$4 sm:$0xff]  }
 0x522   :  { %3037 = vmatmul.mubr.bf16.vlgmr.msra.gmra.mrb[8].mxu0 %v9618_v56 }
 0x523   :  { %3119 = vmatmul.mubr.bf16.vlgmr.msra.gmra.mrb[16].mxu1 %v9618_v56  ;;  %6391 = vmatpush1.bf16.msra.mxu0 %v8203_v13  ;;  %v8235_v13 = vld [vmem:[#allocation22 + $0x11c] ss:$28 sps:$4 sm:$0xff]  }
 0x524   :  { %6555 = vmatpush1.bf16.msra.mxu1 %v8206_v14  ;;  %v8238_v14 = vld [vmem:[#allocation22 + $0x124] ss:$28 sps:$4 sm:$0xff]  }
 0x575   :  { %v9630_v29 = vpop.f32.mrb[4].mxu0  ;;  %v9632_v17 = vpop.f32.mrb[12].mxu1 }
 0x576   :  { %v3129_v18 = vrot.slane %v9630_v29, 4  ;;  %v3185_v20 = vmul.f32 %v9630_v29, %v9630_v29  ;;  %v3141_v21 = vrot.slane %v9632_v17, 4  ;;  %v3187_v22 = vmul.f32 %v9632_v17, %v9632_v17  ;;  %v9640_v23 = vpop.f32.mrb[5].mxu0  ;;  %v9642_v24 = vpop.f32.mrb[13].mxu1 }
 0x577   :  { %v3135_v56 = vrot.slane %v9640_v23, 4  ;;  %v3186_v25 = vmul.f32 %v9640_v23, %v9640_v23  ;;  %v3147_v26 = vrot.slane %v9642_v24, 4  ;;  %v3188_v27 = vmul.f32 %v9642_v24, %v9642_v24  ;;  %v2878_v28 = vpop.f32.mrb[6].mxu0  ;;  %v2960_v31 = vpop.f32.mrb[14].mxu1 }
 0x578   :  { %v3130_v30 = vadd.f32 %v3129_v18, %v9630_v29  ;;  %v3193_v33 = vrot.slane %v3185_v20, 4  ;;  %v3142_v35 = vadd.f32 %v3141_v21, %v9632_v17  ;;  %v3205_v36 = vrot.slane %v3187_v22, 4  ;;  %v2879_v37 = vpop.f32.mrb[7].mxu0  ;;  %v2961_v38 = vpop.f32.mrb[15].mxu1  ;;  %v8211_v21 = vld [vmem:[#allocation22 + $0x3c] ss:$28 sps:$4 sm:$0xff]  }
 0x579   :  { %v3136_v39 = vadd.f32 %v3135_v56, %v9640_v23  ;;  %v3199_v40 = vrot.slane %v3186_v25, 4  ;;  %v3148_v41 = vadd.f32 %v3147_v26, %v9642_v24  ;;  %v3211_v42 = vrot.slane %v3188_v27, 4  ;;  %v8209_v28 = vld [vmem:[#allocation22 + $0x38] ss:$28 sps:$4 sm:$0xff]   ;;  %v8212_v31 = vld [vmem:[#allocation22 + $0x40] ss:$28 sps:$4 sm:$0xff]   ;;  %6392 = vmatprep.subr.bf16.mxu0 %v8211_v21 }
 0x57a   :  { %v3131_v43 = vrot.slane %v3130_v30, 2  ;;  %v3194_v44 = vadd.f32 %v3193_v33, %v3185_v20  ;;  %v3143_v50 = vrot.slane %v3142_v35, 2  ;;  %v3206_v53 = vadd.f32 %v3205_v36, %v3187_v22  ;;  %v8214_v22 = vld [vmem:[#allocation22 + $0x44] ss:$28 sps:$4 sm:$0xff]   ;;  %6393 = vmatpush1.bf16.msra.mxu0 %v8209_v28  ;;  %v8248_v28 = vld [vmem:[#allocation22 + $0x190] ss:$28 sps:$4 sm:$0xff]  }
 0x57b   :  { %v3137_v54 = vrot.slane %v3136_v39, 2  ;;  %v3200_v55 = vadd.f32 %v3199_v40, %v3186_v25  ;;  %v3149_v61 = vrot.slane %v3148_v41, 2  ;;  %v3212_v62 = vadd.f32 %v3211_v42, %v3188_v27  ;;  %6556 = vmatprep.subr.bf16.mxu1 %v8214_v22  ;;  %v8247_v22 = vld [vmem:[#allocation22 + $0x18c] ss:$28 sps:$4 sm:$0xff]  }
 0x57c   :  { %v3132_v63 = vadd.f32 %v3131_v43, %v3130_v30  ;;  %v3195_v4 = vrot.slane %v3194_v44, 2  ;;  %v3144_v10 = vadd.f32 %v3143_v50, %v3142_v35  ;;  %v3207_v11 = vrot.slane %v3206_v53, 2  ;;  %6557 = vmatpush1.bf16.msra.mxu1 %v8212_v31  ;;  %v8217_v50 = vld [vmem:[#allocation22 + $0x74] ss:$28 sps:$4 sm:$0xff]  }
 0x57d   :  { %v3138_v46 = vadd.f32 %v3137_v54, %v3136_v39  ;;  %v3201_v59 = vrot.slane %v3200_v55, 2  ;;  %v3150_v0 = vadd.f32 %v3149_v61, %v3148_v41  ;;  %v3213_v1 = vrot.slane %v3212_v62, 2  ;;  %v8215_v61 = vld [vmem:[#allocation22 + $0x70] ss:$28 sps:$4 sm:$0xff]   ;;  %6394 = vmatprep.subr.bf16.mxu0 %v8217_v50  ;;  %v8268_v50 = vld [vmem:[#allocation22 + $0x23c] ss:$28 sps:$4 sm:$0xff]  }
 0x57e   :  { %v3133_v19 = vrot.slane %v3132_v63, 1  ;;  %v3196_v7 = vadd.f32 %v3195_v4, %v3194_v44  ;;  %v3145_v9 = vrot.slane %v3144_v10, 1  ;;  %v3208_v12 = vadd.f32 %v3207_v11, %v3206_v53  ;;  %v8220_v53 = vld [vmem:[#allocation22 + $0x7c] ss:$28 sps:$4 sm:$0xff]   ;;  %6395 = vmatpush1.bf16.msra.mxu0 %v8215_v61  ;;  %v8250_v31 = vld [vmem:[#allocation22 + $0x194] ss:$28 sps:$4 sm:$0xff]  }
 0x57f   :  { %v3139_v15 = vrot.slane %v3138_v46, 1  ;;  %v3202_v5 = vadd.f32 %v3201_v59, %v3200_v55  ;;  %v3151_v8 = vrot.slane %v3150_v0, 1  ;;  %v3214_v32 = vadd.f32 %v3213_v1, %v3212_v62  ;;  %v8218_v62 = vld [vmem:[#allocation22 + $0x78] ss:$28 sps:$4 sm:$0xff]   ;;  %6558 = vmatprep.subr.bf16.mxu1 %v8220_v53  ;;  %v8221_v1 = vld [vmem:[#allocation22 + $0xa8] ss:$28 sps:$4 sm:$0xff]  }
 0x580   :  { %v3134_v34 = vadd.f32 %v3133_v19, %v3132_v63  ;;  %v3197_v16 = vrot.slane %v3196_v7, 1  ;;  %v3146_v52 = vadd.f32 %v3145_v9, %v3144_v10  ;;  %v3209_v2 = vrot.slane %v3208_v12, 1  ;;  %6559 = vmatpush1.bf16.msra.mxu1 %v8218_v62  ;;  %v8229_v19 = vld [vmem:[#allocation22 + $0xe4] ss:$28 sps:$4 sm:$0xff]   ;;  %v8263_v53 = vld [vmem:[#allocation22 + $0x230] ss:$28 sps:$4 sm:$0xff]  }
 0x581   :  { %v3140_v60 = vadd.f32 %v3139_v15, %v3138_v46  ;;  %v3203_v47 = vrot.slane %v3202_v5, 1  ;;  %v3152_v18 = vadd.f32 %v3151_v8, %v3150_v0  ;;  %v3215_v20 = vrot.slane %v3214_v32, 1  ;;  %v8223_v0 = vld [vmem:[#allocation22 + $0xac] ss:$28 sps:$4 sm:$0xff]   ;;  %6560 = vmatprep.subr.bf16.mxu1 %v8226_v6  ;;  %v8227_v9 = vld [vmem:[#allocation22 + $0xe0] ss:$28 sps:$4 sm:$0xff]  }
 0x582   :  { %v9654_v56 = vmul.f32 0.125, %v3134_v34  ;;  %v3198_v25 = vadd.f32 %v3197_v16, %v3196_v7  ;;  %v9656_v26 = vmul.f32 0.125, %v3146_v52  ;;  %v3210_v27 = vadd.f32 %v3209_v2, %v3208_v12  ;;  %6396 = vmatprep.subr.bf16.mxu0 %v8223_v0  ;;  %v8232_v7 = vld [vmem:[#allocation22 + $0xec] ss:$28 sps:$4 sm:$0xff]   ;;  %v8233_v15 = vld [vmem:[#allocation22 + $0x118] ss:$28 sps:$4 sm:$0xff]  }
 0x583   :  { %v9658_v30 = vmul.f32 0.125, %v3140_v60  ;;  %v3204_v33 = vadd.f32 %v3203_v47, %v3202_v5  ;;  %v9660_v35 = vmul.f32 0.125, %v3152_v18  ;;  %v3216_v36 = vadd.f32 %v3215_v20, %v3214_v32  ;;  %6397 = vmatpush1.bf16.msra.mxu0 %v8221_v1  ;;  %v8230_v12 = vld [vmem:[#allocation22 + $0xe8] ss:$28 sps:$4 sm:$0xff]   ;;  %v8236_v5 = vld [vmem:[#allocation22 + $0x120] ss:$28 sps:$4 sm:$0xff]  }
 0x584   :  { %v3241_v37 = vmul.f32 0.125, %v3198_v25  ;;  %v3249_v38 = vmul.f32 %v9654_v56, %v9654_v56  ;;  %v3243_v39 = vmul.f32 0.125, %v3210_v27  ;;  %v3251_v40 = vmul.f32 %v9656_v26, %v9656_v26  ;;  %6561 = vmatpush1.bf16.msra.mxu1 %v8224_v3  ;;  %6398 = vmatprep.subr.bf16.mxu0 %v8229_v19  ;;  %v8241_v34 = vld [vmem:[#allocation22 + $0x154] ss:$28 sps:$4 sm:$0xff]   ;;  %v8244_v16 = vld [vmem:[#allocation22 + $0x15c] ss:$28 sps:$4 sm:$0xff]  }
 0x585   :  { %v3242_v41 = vmul.f32 0.125, %v3204_v33  ;;  %v3250_v42 = vmul.f32 %v9658_v30, %v9658_v30  ;;  %v3244_v43 = vmul.f32 0.125, %v3216_v36  ;;  %v3252_v44 = vmul.f32 %v9660_v35, %v9660_v35  ;;  %6562 = vmatprep.subr.bf16.mxu1 %v8232_v7  ;;  %v8239_v2 = vld [vmem:[#allocation22 + $0x150] ss:$28 sps:$4 sm:$0xff]   ;;  %v8242_v60 = vld [vmem:[#allocation22 + $0x158] ss:$28 sps:$4 sm:$0xff]  }
 0x586   :  { %v3257_v54 = vsub.f32 %v3241_v37, %v3249_v38  ;;  %v3259_v55 = vsub.f32 %v3243_v39, %v3251_v40  ;;  %v8245_v27 = vld [vmem:[#allocation22 + $0x188] ss:$28 sps:$4 sm:$0xff]   ;;  %v8251_v38 = vld [vmem:[#allocation22 + $0x1c0] ss:$28 sps:$4 sm:$0xff]   ;;  %v8274_v61 = vld [vmem:[#allocation22 + $0x274] ss:$28 sps:$4 sm:$0xff]  }
 0x587   :  { %v3258_v63 = vsub.f32 %v3242_v41, %v3250_v42  ;;  %v3260_v4 = vsub.f32 %v3244_v43, %v3252_v44  ;;  %6399 = vmatpush1.bf16.msra.mxu0 %v8227_v9  ;;  %v8253_v36 = vld [vmem:[#allocation22 + $0x1c4] ss:$28 sps:$4 sm:$0xff]   ;;  %v8256_v37 = vld [vmem:[#allocation22 + $0x1cc] ss:$28 sps:$4 sm:$0xff]   ;;  %v8259_v40 = vld [vmem:[#allocation22 + $0x1fc] ss:$28 sps:$4 sm:$0xff]  }
 0x588   :  { %v3265_v10 = vadd.f32 0.8, %v3257_v54  ;;  %v3267_v11 = vadd.f32 0.8, %v3259_v55  ;;  %6563 = vmatpush1.bf16.msra.mxu1 %v8230_v12  ;;  %6400 = vmatprep.subr.bf16.mxu0 %v8235_v13  ;;  %v8254_v39 = vld [vmem:[#allocation22 + $0x1c8] ss:$28 sps:$4 sm:$0xff]  }
 0x589   :  { %v3266_v46 = vadd.f32 0.8, %v3258_v63  ;;  %v3268_v59 = vadd.f32 0.8, %v3260_v4  ;;  %6564 = vmatprep.subr.bf16.mxu1 %v8238_v14  ;;  %v8262_v41 = vld [vmem:[#allocation22 + $0x204] ss:$28 sps:$4 sm:$0xff]  }
 0x58a   :  { %8855 = vrsqrt.f32 %v3265_v10  ;;  %v8257_v42 = vld [vmem:[#allocation22 + $0x1f8] ss:$28 sps:$4 sm:$0xff]   ;;  %v8260_v43 = vld [vmem:[#allocation22 + $0x200] ss:$28 sps:$4 sm:$0xff]   ;;  %v8271_v55 = vld [vmem:[#allocation22 + $0x26c] ss:$28 sps:$4 sm:$0xff]  }
 0x58b   :  { %8857 = vrsqrt.f32 %v3267_v11  ;;  %6401 = vmatpush1.bf16.msra.mxu0 %v8233_v15  ;;  %v8265_v44 = vld [vmem:[#allocation22 + $0x234] ss:$28 sps:$4 sm:$0xff]   ;;  %v8269_v62 = vld [vmem:[#allocation22 + $0x268] ss:$28 sps:$4 sm:$0xff]   ;;  %v8275_v11 = vld [vmem:[#allocation22 + $0x2a0] ss:$28 sps:$4 sm:$0xff]  }
 0x58c   :  { %8859 = vrsqrt.f32 %v3266_v46  ;;  %6565 = vmatpush1.bf16.msra.mxu1 %v8236_v5  ;;  %6402 = vmatprep.subr.bf16.mxu0 %v8241_v34  ;;  %v8266_v54 = vld [vmem:[#allocation22 + $0x238] ss:$28 sps:$4 sm:$0xff]   ;;  %v8272_v63 = vld [vmem:[#allocation22 + $0x270] ss:$28 sps:$4 sm:$0xff]   ;;  %v8277_v4 = vld [vmem:[#allocation22 + $0x2a4] ss:$28 sps:$4 sm:$0xff]  }
 0x58d   :  { %8861 = vrsqrt.f32 %v3268_v59  ;;  %6566 = vmatprep.subr.bf16.mxu1 %v8244_v16  ;;  %v8280_v10 = vld [vmem:[#allocation22 + $0x2ac] ss:$28 sps:$4 sm:$0xff]   ;;  %v8283_v59 = vld [vmem:[#allocation22 + $0x2dc] ss:$28 sps:$4 sm:$0xff]   ;;  %v8286_v0 = vld [vmem:[#allocation22 + $0x2e4] ss:$28 sps:$4 sm:$0xff]  }
 0x58e   :  { %v8278_v46 = vld [vmem:[#allocation22 + $0x2a8] ss:$28 sps:$4 sm:$0xff]   ;;  %v8281_v1 = vld [vmem:[#allocation22 + $0x2d8] ss:$28 sps:$4 sm:$0xff]   ;;  %v8284_v3 = vld [vmem:[#allocation22 + $0x2e0] ss:$28 sps:$4 sm:$0xff]  }
 0x58f   :  { %6403 = vmatpush1.bf16.msra.mxu0 %v8239_v2  ;;  %v8289_v6 = vld [vmem:[#allocation22 + $0x314] ss:$28 sps:$4 sm:$0xff]   ;;  %v8292_v19 = vld [vmem:[#allocation22 + $0x31c] ss:$28 sps:$4 sm:$0xff]   ;;  %v8295_v12 = vld [vmem:[#allocation22 + $0x34c] ss:$28 sps:$4 sm:$0xff]  }
 0x590   :  { %6567 = vmatpush1.bf16.msra.mxu1 %v8242_v60  ;;  %6404 = vmatprep.subr.bf16.mxu0 %v8247_v22  ;;  %v8287_v7 = vld [vmem:[#allocation22 + $0x310] ss:$28 sps:$4 sm:$0xff]   ;;  %v8290_v9 = vld [vmem:[#allocation22 + $0x318] ss:$28 sps:$4 sm:$0xff]   ;;  %v8293_v13 = vld [vmem:[#allocation22 + $0x348] ss:$28 sps:$4 sm:$0xff]  }
 0x591   :  { %6568 = vmatprep.subr.bf16.mxu1 %v8250_v31  ;;  %v8298_v14 = vld [vmem:[#allocation22 + $0x354] ss:$28 sps:$4 sm:$0xff]   ;;  %v8301_v5 = vld [vmem:[#allocation22 + $0x384] ss:$28 sps:$4 sm:$0xff]  }
 0x592   :  { %v8296_v15 = vld [vmem:[#allocation22 + $0x350] ss:$28 sps:$4 sm:$0xff]  }
 0x593   :  { %6405 = vmatpush1.bf16.msra.mxu0 %v8245_v27 }
 0x594   :  { %v8856_v8 = vpop.eup %8855  ;;  %6569 = vmatpush1.bf16.msra.mxu1 %v8248_v28  ;;  %6406 = vmatprep.subr.bf16.mxu0 %v8253_v36 }
 0x595   :  { %v8858_v32 = vpop.eup %8857  ;;  %6570 = vmatprep.subr.bf16.mxu1 %v8256_v37 }
 0x596   :  { %v8860_v52 = vpop.eup %8859 }
 0x597   :  { %v8862_v47 = vpop.eup %8861  ;;  %v3289_v18 = vcombine.low %v8856_v8, %v8860_v52  ;;  %6407 = vmatpush1.bf16.msra.mxu0 %v8251_v38  ;;  %v8304_v8 = vld [vmem:[#allocation22 + $0x38c] ss:$28 sps:$4 sm:$0xff]  }
 0x598   :  { %v3290_v20 = vcombine.low %v8858_v32, %v8862_v47  ;;  %6571 = vmatpush1.bf16.msra.mxu1 %v8254_v39  ;;  %6408 = vmatprep.subr.bf16.mxu0 %v8259_v40 }
 0x599   :  { %v9671_v21 = vrot.slane %v3289_v18, %v9508_v51  ;;  %6572 = vmatprep.subr.bf16.mxu1 %v8262_v41 }
 0x59a   :  { %v9674_v25 = vrot.slane %v3290_v20, %v9508_v51 }
 0x59b   :  { %6409 = vmatpush1.bf16.msra.mxu0 %v8257_v42 }
 0x59c   :  { %v3321_v33 = vcombine.low %v9671_v21, %v9674_v25  ;;  %6573 = vmatpush1.bf16.msra.mxu1 %v8260_v43  ;;  %6410 = vmatprep.subr.bf16.mxu0 %v8265_v44 }
 0x59d   :  { %6574 = vmatprep.subr.bf16.mxu1 %v8268_v50 }
 0x59f   :  { %6411 = vmatpush1.bf16.msra.mxu0 %v8263_v53 }
 0x5a0   :  { %6575 = vmatpush1.bf16.msra.mxu1 %v8266_v54  ;;  %6412 = vmatprep.subr.bf16.mxu0 %v8271_v55 }
 0x5a1   :  { %6576 = vmatprep.subr.bf16.mxu1 %v8274_v61 }
 0x5a3   :  { %6413 = vmatpush1.bf16.msra.mxu0 %v8269_v62 }
 0x5a4   :  { %6577 = vmatpush1.bf16.msra.mxu1 %v8272_v63  ;;  %6414 = vmatprep.subr.bf16.mxu0 %v8277_v4 }
 0x5a5   :  { %6578 = vmatprep.subr.bf16.mxu1 %v8280_v10 }
 0x5a7   :  { %6415 = vmatpush1.bf16.msra.mxu0 %v8275_v11 }
 0x5a8   :  { %6579 = vmatpush1.bf16.msra.mxu1 %v8278_v46  ;;  %6416 = vmatprep.subr.bf16.mxu0 %v8283_v59 }
 0x5a9   :  { %6580 = vmatprep.subr.bf16.mxu1 %v8286_v0 }
 0x5ab   :  { %6417 = vmatpush1.bf16.msra.mxu0 %v8281_v1 }
 0x5ac   :  { %6581 = vmatpush1.bf16.msra.mxu1 %v8284_v3  ;;  %6418 = vmatprep.subr.bf16.mxu0 %v8289_v6 }
 0x5ad   :  { %6582 = vmatprep.subr.bf16.mxu1 %v8292_v19 }
 0x5af   :  { %6419 = vmatpush1.bf16.msra.mxu0 %v8287_v7 }
 0x5b0   :  { %6583 = vmatpush1.bf16.msra.mxu1 %v8290_v9  ;;  %6420 = vmatprep.subr.bf16.mxu0 %v8295_v12 }
 0x5b1   :  { %6584 = vmatprep.subr.bf16.mxu1 %v8298_v14 }
 0x5b3   :  { %6421 = vmatpush1.bf16.msra.mxu0 %v8293_v13 }
 0x5b4   :  { %6585 = vmatpush1.bf16.msra.mxu1 %v8296_v15  ;;  %6431 = vmatprep.subr.bf16.mxu0 %v8301_v5 }
 0x5b5   :  { %6595 = vmatprep.subr.bf16.mxu1 %v8304_v8 }
 0x5f5   :  { %v9678_v32 = vpop.f32.mrb[8].mxu0 }
 0x5f6   :  { %v3153_v34 = vrot.slane %v9678_v32, 4  ;;  %v3189_v16 = vmul.f32 %v9678_v32, %v9678_v32  ;;  %v9683_v52 = vpop.f32.mrb[16].mxu1  ;;  %v9685_v2 = vpop.f32.mrb[9].mxu0 }
 0x5f7   :  { %v3165_v60 = vrot.slane %v9683_v52, 4  ;;  %v3191_v47 = vmul.f32 %v9683_v52, %v9683_v52  ;;  %v3159_v18 = vrot.slane %v9685_v2, 4  ;;  %v3190_v20 = vmul.f32 %v9685_v2, %v9685_v2  ;;  %v9693_v22 = vpop.f32.mrb[17].mxu1  ;;  %v3042_v27 = vpop.f32.mrb[10].mxu0 }
 0x5f8   :  { %v3154_v28 = vadd.f32 %v3153_v34, %v9678_v32  ;;  %v3217_v31 = vrot.slane %v3189_v16, 4  ;;  %v3171_v36 = vrot.slane %v9693_v22, 4  ;;  %v3192_v37 = vmul.f32 %v9693_v22, %v9693_v22  ;;  %v3124_v38 = vpop.f32.mrb[18].mxu1  ;;  %v3043_v39 = vpop.f32.mrb[11].mxu0 }
 0x5f9   :  { %v3166_v40 = vadd.f32 %v3165_v60, %v9683_v52  ;;  %v3229_v41 = vrot.slane %v3191_v47, 4  ;;  %v3160_v42 = vadd.f32 %v3159_v18, %v9685_v2  ;;  %v3223_v43 = vrot.slane %v3190_v20, 4  ;;  %v3125_v44 = vpop.f32.mrb[19].mxu1 }
 0x5fa   :  { %v3155_v50 = vrot.slane %v3154_v28, 2  ;;  %v3218_v53 = vadd.f32 %v3217_v31, %v3189_v16  ;;  %v3172_v54 = vadd.f32 %v3171_v36, %v9693_v22  ;;  %v3235_v55 = vrot.slane %v3192_v37, 4 }
 0x5fb   :  { %v3167_v61 = vrot.slane %v3166_v40, 2  ;;  %v3230_v62 = vadd.f32 %v3229_v41, %v3191_v47  ;;  %v3161_v63 = vrot.slane %v3160_v42, 2  ;;  %v3224_v4 = vadd.f32 %v3223_v43, %v3190_v20 }
 0x5fc   :  { %v3156_v10 = vadd.f32 %v3155_v50, %v3154_v28  ;;  %v3219_v11 = vrot.slane %v3218_v53, 2  ;;  %v3173_v46 = vrot.slane %v3172_v54, 2  ;;  %v3236_v59 = vadd.f32 %v3235_v55, %v3192_v37 }
 0x5fd   :  { %v3168_v0 = vadd.f32 %v3167_v61, %v3166_v40  ;;  %v3231_v1 = vrot.slane %v3230_v62, 2  ;;  %v3162_v3 = vadd.f32 %v3161_v63, %v3160_v42  ;;  %v3225_v6 = vrot.slane %v3224_v4, 2 }
 0x5fe   :  { %v3157_v19 = vrot.slane %v3156_v10, 1  ;;  %v3220_v7 = vadd.f32 %v3219_v11, %v3218_v53  ;;  %v3174_v9 = vadd.f32 %v3173_v46, %v3172_v54  ;;  %v3237_v12 = vrot.slane %v3236_v59, 2 }
 0x5ff   :  { %v3169_v13 = vrot.slane %v3168_v0, 1  ;;  %v3232_v14 = vadd.f32 %v3231_v1, %v3230_v62  ;;  %v3163_v15 = vrot.slane %v3162_v3, 1  ;;  %v3226_v5 = vadd.f32 %v3225_v6, %v3224_v4 }
 0x600   :  { %v3158_v8 = vadd.f32 %v3157_v19, %v3156_v10  ;;  %v3221_v34 = vrot.slane %v3220_v7, 1  ;;  %v3175_v16 = vrot.slane %v3174_v9, 1  ;;  %v3238_v60 = vadd.f32 %v3237_v12, %v3236_v59 }
 0x601   :  { %v3170_v47 = vadd.f32 %v3169_v13, %v3168_v0  ;;  %v3233_v18 = vrot.slane %v3232_v14, 1  ;;  %v3164_v20 = vadd.f32 %v3163_v15, %v3162_v3  ;;  %v3227_v27 = vrot.slane %v3226_v5, 1 }
 0x602   :  { %v3181_v28 = vmul.f32 0.125, %v3158_v8  ;;  %v3222_v31 = vadd.f32 %v3221_v34, %v3220_v7  ;;  %v3176_v36 = vadd.f32 %v3175_v16, %v3174_v9  ;;  %v3239_v37 = vrot.slane %v3238_v60, 1  ;;  %v3127_v16 = vld [vmem:[#allocation19] sm:$0xff] }
 0x603   :  { %v3183_v38 = vmul.f32 0.125, %v3170_v47  ;;  %v3234_v39 = vadd.f32 %v3233_v18, %v3232_v14  ;;  %v3182_v40 = vmul.f32 0.125, %v3164_v20  ;;  %v3228_v41 = vadd.f32 %v3227_v27, %v3226_v5 }
 0x604   :  { %v3245_v42 = vmul.f32 0.125, %v3222_v31  ;;  %v3253_v43 = vmul.f32 %v3181_v28, %v3181_v28  ;;  %v3184_v44 = vmul.f32 0.125, %v3176_v36  ;;  %v3240_v50 = vadd.f32 %v3239_v37, %v3238_v60 }
 0x605   :  { %v3247_v53 = vmul.f32 0.125, %v3234_v39  ;;  %v3255_v54 = vmul.f32 %v3183_v38, %v3183_v38  ;;  %v3246_v55 = vmul.f32 0.125, %v3228_v41  ;;  %v3254_v61 = vmul.f32 %v3182_v40, %v3182_v40 }
 0x606   :  { %v3261_v62 = vsub.f32 %v3245_v42, %v3253_v43  ;;  %v3248_v63 = vmul.f32 0.125, %v3240_v50  ;;  %v3256_v4 = vmul.f32 %v3184_v44, %v3184_v44  ;;  %v3329_v8 = vrot.slane %v3321_v33, %v9508_v51 }
 0x607   :  { %v3263_v10 = vsub.f32 %v3247_v53, %v3255_v54  ;;  %v3262_v11 = vsub.f32 %v3246_v55, %v3254_v61  ;;  %v9710_v47 = vsub.s32 4, %v9505_v49  ;;  %v9713_v18 = vsub.s32 5, %v9505_v49 }
 0x608   :  { %v3269_v46 = vadd.f32 0.8, %v3261_v62  ;;  %v3264_v59 = vsub.f32 %v3248_v63, %v3256_v4  ;;  %v9716_v20 = vsub.s32 6, %v9505_v49  ;;  %v3371_v27 = vsub.s32 7, %v9505_v49 }
 0x609   :  { %v3271_v0 = vadd.f32 0.8, %v3263_v10  ;;  %v3270_v1 = vadd.f32 0.8, %v3262_v11 }
 0x60a   :  { %8863 = vrsqrt.f32 %v3269_v46  ;;  %v3272_v3 = vadd.f32 0.8, %v3264_v59 }
 0x60b   :  { %8865 = vrsqrt.f32 %v3271_v0 }
 0x60c   :  { %8867 = vrsqrt.f32 %v3270_v1 }
 0x60d   :  { %8869 = vrsqrt.f32 %v3272_v3  ;;  %v3128_v3 = vld [vmem:[#allocation20] sm:$0xff] }
 0x614   :  { %v8864_v6 = vpop.eup %8863 }
 0x615   :  { %v8866_v19 = vpop.eup %8865 }
 0x616   :  { %v8868_v7 = vpop.eup %8867 }
 0x617   :  { %v8870_v9 = vpop.eup %8869  ;;  %v3291_v12 = vcombine.low %v8864_v6, %v8868_v7 }
 0x618   :  { %v3292_v13 = vcombine.low %v8866_v19, %v8870_v9 }
 0x619   :  { %v3313_v14 = vrot.slane %v3291_v12, %v9508_v51 }
 0x61a   :  { %v3320_v15 = vrot.slane %v3292_v13, %v9508_v51 }
 0x61c   :  { %v3322_v5 = vcombine.low %v3313_v14, %v3320_v15 }
 0x61e   :  { %v3336_v34 = vrot.slane %v3322_v5, %v9508_v51 }
 0x620   :  { %v3337_v60 = vcombine.low %v3329_v8, %v3336_v34 }
 0x622   :  { %v3339_v31 = vmul.f32 %v3337_v60, %v3127_v16 }
 0x624   :  { %v3344_v36 = vrot.slane %v3339_v31, %v9513_v57  ;;  %v3348_v21 = vrot.slane %v3339_v31, %v9516_v58  ;;  %v3352_v25 = vrot.slane %v3339_v31, %v9574_v45  ;;  %v3356_v33 = vrot.slane %v3339_v31, %v9577_v48 }
 0x625   :  { %v3360_v37 = vrot.slane %v3339_v31, %v9710_v47  ;;  %v3364_v39 = vrot.slane %v3339_v31, %v9713_v18  ;;  %v3368_v41 = vrot.slane %v3339_v31, %v9716_v20  ;;  %v3372_v42 = vrot.slane %v3339_v31, %v3371_v27 }
 0x626   :  { %v3381_v43 = vmul.f32 %v3344_v36, %v9654_v56  ;;  %v3382_v49 = vmul.f32 %v3348_v21, %v9658_v30  ;;  %v3383_v50 = vmul.f32 %v3352_v25, %v9656_v26  ;;  %v3384_v53 = vmul.f32 %v3356_v33, %v9660_v35 }
 0x627   :  { %v3385_v54 = vmul.f32 %v3360_v37, %v3181_v28  ;;  %v3386_v55 = vmul.f32 %v3364_v39, %v3182_v40  ;;  %v3387_v61 = vmul.f32 %v3368_v41, %v3183_v38  ;;  %v3388_v62 = vmul.f32 %v3372_v42, %v3184_v44 }
 0x628   :  { %v3397_v63 = vcombine.low %v3381_v43, %v3382_v49  ;;  %v3398_v4 = vcombine.low %v3383_v50, %v3384_v53  ;;  %v3455_v10 = vmul.f32 %v3372_v42, %v9693_v22  ;;  %v3449_v11 = vmul.f32 %v3348_v21, %v9640_v23  ;;  %v8307_v43 = vld [vmem:[#allocation22 + $0x3bc] ss:$28 sps:$4 sm:$0xff]   ;;  %v8310_v49 = vld [vmem:[#allocation22 + $0x3c4] ss:$28 sps:$4 sm:$0xff]  }
 0x629   :  { %v3399_v46 = vcombine.low %v3385_v54, %v3386_v55  ;;  %v3400_v59 = vcombine.low %v3387_v61, %v3388_v62  ;;  %v3448_v56 = vmul.f32 %v3344_v36, %v9630_v29  ;;  %v3451_v30 = vmul.f32 %v3356_v33, %v9642_v24  ;;  %v8305_v53 = vld [vmem:[#allocation22 + $0x3b8] ss:$28 sps:$4 sm:$0xff]   ;;  %v8308_v54 = vld [vmem:[#allocation22 + $0x3c0] ss:$28 sps:$4 sm:$0xff]   ;;  %v8311_v62 = vld [vmem:[#allocation22 + $0x3f0] ss:$28 sps:$4 sm:$0xff]  }
 0x62a   :  { %v3407_v26 = vrot.slane %v3397_v63, %v9508_v51  ;;  %v3414_v35 = vrot.slane %v3398_v4, %v9508_v51  ;;  %v3450_v28 = vmul.f32 %v3352_v25, %v9632_v17  ;;  %v3453_v38 = vmul.f32 %v3364_v39, %v9685_v2  ;;  %v8302_v39 = vld [vmem:[#allocation22 + $0x388] ss:$28 sps:$4 sm:$0xff]   ;;  %v8313_v55 = vld [vmem:[#allocation22 + $0x3f4] ss:$28 sps:$4 sm:$0xff]   ;;  %v8316_v61 = vld [vmem:[#allocation22 + $0x3fc] ss:$28 sps:$4 sm:$0xff]  }
 0x62b   :  { %v3421_v40 = vrot.slane %v3399_v46, %v9508_v51  ;;  %v3428_v22 = vrot.slane %v3400_v59, %v9508_v51  ;;  %v3452_v23 = vmul.f32 %v3360_v37, %v9678_v32  ;;  %v3454_v44 = vmul.f32 %v3368_v41, %v9683_v52  ;;  %v8299_v37 = vld [vmem:[#allocation22 + $0x380] ss:$28 sps:$4 sm:$0xff]   ;;  %v8314_v63 = vld [vmem:[#allocation22 + $0x3f8] ss:$28 sps:$4 sm:$0xff]   ;;  %v8319_v4 = vld [vmem:[#allocation22 + $0x42c] ss:$28 sps:$4 sm:$0xff]  }
 0x62c   :  { %v3429_v0 = vcombine.low %v3407_v26, %v3414_v35  ;;  %v8320_v46 = vld [vmem:[#allocation22 + $0x430] ss:$28 sps:$4 sm:$0xff]   ;;  %v8325_v59 = vld [vmem:[#allocation22 + $0x464] ss:$28 sps:$4 sm:$0xff]   ;;  %v8331_v35 = vld [vmem:[#allocation22 + $0x49c] ss:$28 sps:$4 sm:$0xff]  }
 0x62d   :  { %v3430_v29 = vcombine.low %v3421_v40, %v3428_v22  ;;  %v8326_v26 = vld [vmem:[#allocation22 + $0x468] ss:$28 sps:$4 sm:$0xff]   ;;  %v8332_v40 = vld [vmem:[#allocation22 + $0x4a0] ss:$28 sps:$4 sm:$0xff]   ;;  %v8337_v22 = vld [vmem:[#allocation22 + $0x4d4] ss:$28 sps:$4 sm:$0xff]  }
 0x62e   :  { %v3437_v24 = vrot.slane %v3429_v0, %v9508_v51  ;;  %v8338_v0 = vld [vmem:[#allocation22 + $0x4d8] ss:$28 sps:$4 sm:$0xff]  }
 0x62f   :  { %v3444_v1 = vrot.slane %v3430_v29, %v9508_v51  ;;  %v8343_v29 = vld [vmem:[#allocation22 + $0x50c] ss:$28 sps:$4 sm:$0xff]  }
 0x631   :  { %v3445_v6 = vcombine.low %v3437_v24, %v3444_v1  ;;  %v8346_v24 = vld [vmem:[#allocation22 + $0x514] ss:$28 sps:$4 sm:$0xff]   ;;  %v8341_v1 = vld [vmem:[#allocation22 + $0x508] ss:$28 sps:$4 sm:$0xff]  }
 0x633   :  { %v3447_v19 = vsub.f32 %v3128_v3, %v3445_v6  ;;  %v8344_v3 = vld [vmem:[#allocation22 + $0x510] ss:$28 sps:$4 sm:$0xff]   ;;  %v8349_v6 = vld [vmem:[#allocation22 + $0x544] ss:$28 sps:$4 sm:$0xff]  }
 0x635   :  { %v3488_v17 = vrot.slane %v3447_v19, %v3371_v27  ;;  %v3464_v2 = vrot.slane %v3447_v19, %v9516_v58  ;;  %v3460_v7 = vrot.slane %v3447_v19, %v9513_v57  ;;  %v3472_v9 = vrot.slane %v3447_v19, %v9577_v48 }
 0x636   :  { %v3468_v32 = vrot.slane %v3447_v19, %v9574_v45  ;;  %v3480_v52 = vrot.slane %v3447_v19, %v9713_v18  ;;  %v3476_v12 = vrot.slane %v3447_v19, %v9710_v47  ;;  %v3484_v13 = vrot.slane %v3447_v19, %v9716_v20  ;;  %v8352_v19 = vld [vmem:[#allocation22 + $0x54c] ss:$28 sps:$4 sm:$0xff]  }
 0x637   :  { %v9751_v14 = vadd.f32 %v3488_v17, %v3455_v10  ;;  %v3498_v51 = vadd.f32 %v3464_v2, %v3449_v11  ;;  %v3497_v15 = vadd.f32 %v3460_v7, %v3448_v56  ;;  %v3500_v5 = vadd.f32 %v3472_v9, %v3451_v30  ;;  %v8322_v10 = vld [vmem:[#allocation22 + $0x434] ss:$28 sps:$4 sm:$0xff]   ;;  %v8317_v11 = vld [vmem:[#allocation22 + $0x428] ss:$28 sps:$4 sm:$0xff]   ;;  %v8323_v30 = vld [vmem:[#allocation22 + $0x460] ss:$28 sps:$4 sm:$0xff]  }
 0x638   :  { %v9753_v8 = vadd.f32 %v3468_v32, %v3450_v28  ;;  %v9755_v34 = vadd.f32 %v3480_v52, %v3453_v38  ;;  %v9757_v16 = vadd.f32 %v3476_v12, %v3452_v23  ;;  %v9759_v60 = vadd.f32 %v3484_v13, %v3454_v44  ;;  %v8328_v56 = vld [vmem:[#allocation22 + $0x46c] ss:$28 sps:$4 sm:$0xff]   ;;  %v8334_v28 = vld [vmem:[#allocation22 + $0x4a4] ss:$28 sps:$4 sm:$0xff]   ;;  %v8329_v38 = vld [vmem:[#allocation22 + $0x498] ss:$28 sps:$4 sm:$0xff]  }
 0x639   :  { %vm3506_vm8 = vcmp.gt.f32.partialorder %v3498_v51, 0.0  ;;  %v3514_v27 = vmul.f32 0.2, %v3498_v51  ;;  %vm3505_vm9 = vcmp.gt.f32.partialorder %v3497_v15, 0.0  ;;  %v3513_v31 = vmul.f32 0.2, %v3497_v15 }
 0x63a   :  { %vm3508_vm10 = vcmp.gt.f32.partialorder %v3500_v5, 0.0  ;;  %v3516_v36 = vmul.f32 0.2, %v3500_v5  ;;  %v8340_v23 = vld [vmem:[#allocation22 + $0x4dc] ss:$28 sps:$4 sm:$0xff]   ;;  %vm3507_vm11 = vcmp.gt.f32.partialorder %v9753_v8, 0.0 }
 0x63b   :  { %v3522_v21 = vsel %vm3506_vm8, %v3498_v51, %v3514_v27  ;;  %v3521_v25 = vsel %vm3505_vm9, %v3497_v15, %v3513_v31  ;;  %v8335_v44 = vld [vmem:[#allocation22 + $0x4d0] ss:$28 sps:$4 sm:$0xff]   ;;  %v8347_v17 = vld [vmem:[#allocation22 + $0x540] ss:$28 sps:$4 sm:$0xff]   ;;  %v8350_v2 = vld [vmem:[#allocation22 + $0x548] ss:$28 sps:$4 sm:$0xff]  }
 0x63c   :  { %v9761_v33 = vpack.c.bf16 %v3522_v21, %v3522_v21  ;;  %v9763_v41 = vpack.c.bf16 %v3521_v25, %v3521_v25  ;;  %v3524_v42 = vsel %vm3508_vm10, %v3500_v5, %v3516_v36  ;;  %v8355_v7 = vld [vmem:[#allocation22 + $0x57c] ss:$28 sps:$4 sm:$0xff]   ;;  %v8358_v9 = vld [vmem:[#allocation22 + $0x584] ss:$28 sps:$4 sm:$0xff]   ;;  %v8361_v12 = vld [vmem:[#allocation22 + $0x5b4] ss:$28 sps:$4 sm:$0xff]  }
 0x63d   :  { %v9769_v50 = vpack.c.bf16 %v3524_v42, %v3524_v42  ;;  %v8353_v32 = vld [vmem:[#allocation22 + $0x578] ss:$28 sps:$4 sm:$0xff]   ;;  %v8356_v52 = vld [vmem:[#allocation22 + $0x580] ss:$28 sps:$4 sm:$0xff]   ;;  %v8359_v51 = vld [vmem:[#allocation22 + $0x5b0] ss:$28 sps:$4 sm:$0xff]  }
 0x63e   :  { %6422 = vmatprep.mubr.bf16.mxu0 %v9761_v33  ;;  %6586 = vmatprep.mubr.bf16.mxu1 %v9761_v33  ;;  %v8364_v13 = vld [vmem:[#allocation22 + $0x5bc] ss:$28 sps:$4 sm:$0xff]   ;;  %v8367_v5 = vld [vmem:[#allocation22 + $0x5ec] ss:$28 sps:$4 sm:$0xff]   ;;  %v8370_v27 = vld [vmem:[#allocation22 + $0x5f4] ss:$28 sps:$4 sm:$0xff]  }
 0x63f   :  { %6423 = vmatmul.mubr.bf16.vlgmr.msra.gmra.mrb[12].mxu0 %v9763_v41  ;;  %6587 = vmatmul.mubr.bf16.vlgmr.msra.gmra.mrb[20].mxu1 %v9763_v41  ;;  %v8362_v15 = vld [vmem:[#allocation22 + $0x5b8] ss:$28 sps:$4 sm:$0xff]   ;;  %v8365_v31 = vld [vmem:[#allocation22 + $0x5e8] ss:$28 sps:$4 sm:$0xff]   ;;  %v8368_v36 = vld [vmem:[#allocation22 + $0x5f0] ss:$28 sps:$4 sm:$0xff]  }
 0x640   :  { %6432 = vmatpush1.bf16.msra.mxu0 %v8299_v37  ;;  %6596 = vmatpush1.bf16.msra.mxu1 %v8302_v39  ;;  %v8373_v21 = vld [vmem:[#allocation22 + $0x624] ss:$28 sps:$4 sm:$0xff]   ;;  %v8376_v25 = vld [vmem:[#allocation22 + $0x62c] ss:$28 sps:$4 sm:$0xff]   ;;  %v8379_v42 = vld [vmem:[#allocation22 + $0x65c] ss:$28 sps:$4 sm:$0xff]  }
 0x641   :  { %6463 = vmatprep.mubr.bf16.mxu0 %v9769_v50  ;;  %6627 = vmatprep.mubr.bf16.mxu1 %v9769_v50  ;;  %v8371_v37 = vld [vmem:[#allocation22 + $0x620] ss:$28 sps:$4 sm:$0xff]   ;;  %v8374_v39 = vld [vmem:[#allocation22 + $0x628] ss:$28 sps:$4 sm:$0xff]   ;;  %vm3510_vm12 = vcmp.gt.f32.partialorder %v9755_v34, 0.0  ;;  %vm3509_vm13 = vcmp.gt.f32.partialorder %v9757_v16, 0.0 }
 0x642   :  { %6433 = vmatprep.subr.bf16.mxu0 %v8307_v43  ;;  %6597 = vmatprep.subr.bf16.mxu1 %v8310_v49  ;;  %v8382_v43 = vld [vmem:[#allocation22 + $0x664] ss:$28 sps:$4 sm:$0xff]   ;;  %v8377_v49 = vld [vmem:[#allocation22 + $0x658] ss:$28 sps:$4 sm:$0xff]   ;;  %vm3512_vm14 = vcmp.gt.f32.partialorder %v9751_v14, 0.0  ;;  %vm3511_vm15 = vcmp.gt.f32.partialorder %v9759_v60, 0.0 }
 0x644   :  { %6434 = vmatpush1.bf16.msra.mxu0 %v8305_v53  ;;  %6598 = vmatpush1.bf16.msra.mxu1 %v8308_v54  ;;  %v8380_v53 = vld [vmem:[#allocation22 + $0x660] ss:$28 sps:$4 sm:$0xff]   ;;  %v8385_v54 = vld [vmem:[#allocation22 + $0x694] ss:$28 sps:$4 sm:$0xff]  }
 0x645   :  { %6435 = vmatprep.subr.bf16.mxu0 %v8313_v55  ;;  %6599 = vmatprep.subr.bf16.mxu1 %v8316_v61  ;;  %v8388_v55 = vld [vmem:[#allocation22 + $0x69c] ss:$28 sps:$4 sm:$0xff]   ;;  %v8383_v61 = vld [vmem:[#allocation22 + $0x690] ss:$28 sps:$4 sm:$0xff]  }
 0x648   :  { %6436 = vmatpush1.bf16.msra.mxu0 %v8311_v62  ;;  %6600 = vmatpush1.bf16.msra.mxu1 %v8314_v63  ;;  %v8386_v62 = vld [vmem:[#allocation22 + $0x698] ss:$28 sps:$4 sm:$0xff]   ;;  %v8391_v63 = vld [vmem:[#allocation22 + $0x6cc] ss:$28 sps:$4 sm:$0xff]  }
 0x649   :  { %6437 = vmatprep.subr.bf16.mxu0 %v8319_v4  ;;  %6601 = vmatprep.subr.bf16.mxu1 %v8322_v10  ;;  %v8394_v4 = vld [vmem:[#allocation22 + $0x6d4] ss:$28 sps:$4 sm:$0xff]   ;;  %v3515_v10 = vmul.f32 0.2, %v9753_v8 }
 0x64c   :  { %6438 = vmatpush1.bf16.msra.mxu0 %v8317_v11  ;;  %6602 = vmatpush1.bf16.msra.mxu1 %v8320_v46  ;;  %v3518_v11 = vmul.f32 0.2, %v9755_v34  ;;  %v8389_v46 = vld [vmem:[#allocation22 + $0x6c8] ss:$28 sps:$4 sm:$0xff]  }
 0x64d   :  { %6439 = vmatprep.subr.bf16.mxu0 %v8325_v59  ;;  %6603 = vmatprep.subr.bf16.mxu1 %v8328_v56  ;;  %v8392_v59 = vld [vmem:[#allocation22 + $0x6d0] ss:$28 sps:$4 sm:$0xff]   ;;  %v8397_v56 = vld [vmem:[#allocation22 + $0x704] ss:$28 sps:$4 sm:$0xff]  }
 0x650   :  { %6440 = vmatpush1.bf16.msra.mxu0 %v8323_v30  ;;  %6604 = vmatpush1.bf16.msra.mxu1 %v8326_v26  ;;  %v8400_v30 = vld [vmem:[#allocation22 + $0x70c] ss:$28 sps:$4 sm:$0xff]   ;;  %v3523_v26 = vsel %vm3507_vm11, %v9753_v8, %v3515_v10  ;;  %v8401_v8 = vld [vmem:[#allocation22 + $0x738] ss:$28 sps:$4 sm:$0xff]  }
 0x651   :  { %6441 = vmatprep.subr.bf16.mxu0 %v8331_v35  ;;  %6605 = vmatprep.subr.bf16.mxu1 %v8334_v28  ;;  %v3526_v35 = vsel %vm3510_vm12, %v9755_v34, %v3518_v11  ;;  %v8395_v28 = vld [vmem:[#allocation22 + $0x700] ss:$28 sps:$4 sm:$0xff]   ;;  %v8458_v10 = vld [vmem:[#allocation22 + $0x938] ss:$28 sps:$4 sm:$0xff]   ;;  %v8463_v11 = vld [vmem:[#allocation22 + $0x96c] ss:$28 sps:$4 sm:$0xff]  }
 0x652   :  { %v8404_v34 = vld [vmem:[#allocation22 + $0x740] ss:$28 sps:$4 sm:$0xff]  }
 0x654   :  { %6442 = vmatpush1.bf16.msra.mxu0 %v8329_v38  ;;  %6606 = vmatpush1.bf16.msra.mxu1 %v8332_v40  ;;  %v9779_v38 = vpack.c.bf16 %v3523_v26, %v3523_v26  ;;  %v8398_v40 = vld [vmem:[#allocation22 + $0x708] ss:$28 sps:$4 sm:$0xff]  }
 0x655   :  { %6443 = vmatprep.subr.bf16.mxu0 %v8337_v22  ;;  %6607 = vmatprep.subr.bf16.mxu1 %v8340_v23  ;;  %v9781_v22 = vpack.c.bf16 %v3526_v35, %v3526_v35  ;;  %v8403_v23 = vld [vmem:[#allocation22 + $0x73c] ss:$28 sps:$4 sm:$0xff]   ;;  %v8472_v26 = vld [vmem:[#allocation22 + $0x9ac] ss:$28 sps:$4 sm:$0xff]  }
 0x656   :  { %v8467_v35 = vld [vmem:[#allocation22 + $0x9a0] ss:$28 sps:$4 sm:$0xff]  }
 0x658   :  { %6444 = vmatpush1.bf16.msra.mxu0 %v8335_v44  ;;  %6608 = vmatpush1.bf16.msra.mxu1 %v8338_v0  ;;  %v8406_v44 = vld [vmem:[#allocation22 + $0x744] ss:$28 sps:$4 sm:$0xff]   ;;  %v8409_v0 = vld [vmem:[#allocation22 + $0x774] ss:$28 sps:$4 sm:$0xff]  }
 0x659   :  { %6445 = vmatprep.subr.bf16.mxu0 %v8343_v29  ;;  %6609 = vmatprep.subr.bf16.mxu1 %v8346_v24  ;;  %v8412_v29 = vld [vmem:[#allocation22 + $0x77c] ss:$28 sps:$4 sm:$0xff]   ;;  %v8407_v24 = vld [vmem:[#allocation22 + $0x770] ss:$28 sps:$4 sm:$0xff]  }
 0x65c   :  { %6446 = vmatpush1.bf16.msra.mxu0 %v8341_v1  ;;  %6610 = vmatpush1.bf16.msra.mxu1 %v8344_v3  ;;  %v8410_v1 = vld [vmem:[#allocation22 + $0x778] ss:$28 sps:$4 sm:$0xff]   ;;  %v8415_v3 = vld [vmem:[#allocation22 + $0x7ac] ss:$28 sps:$4 sm:$0xff]  }
 0x65d   :  { %6447 = vmatprep.subr.bf16.mxu0 %v8349_v6  ;;  %6611 = vmatprep.subr.bf16.mxu1 %v8352_v19  ;;  %v8418_v6 = vld [vmem:[#allocation22 + $0x7b4] ss:$28 sps:$4 sm:$0xff]   ;;  %v8413_v19 = vld [vmem:[#allocation22 + $0x7a8] ss:$28 sps:$4 sm:$0xff]  }
 0x660   :  { %6448 = vmatpush1.bf16.msra.mxu0 %v8347_v17  ;;  %6612 = vmatpush1.bf16.msra.mxu1 %v8350_v2  ;;  %v8416_v17 = vld [vmem:[#allocation22 + $0x7b0] ss:$28 sps:$4 sm:$0xff]   ;;  %v8421_v2 = vld [vmem:[#allocation22 + $0x7e4] ss:$28 sps:$4 sm:$0xff]  }
 0x661   :  { %6449 = vmatprep.subr.bf16.mxu0 %v8355_v7  ;;  %6613 = vmatprep.subr.bf16.mxu1 %v8358_v9  ;;  %v8424_v7 = vld [vmem:[#allocation22 + $0x7ec] ss:$28 sps:$4 sm:$0xff]   ;;  %v8419_v9 = vld [vmem:[#allocation22 + $0x7e0] ss:$28 sps:$4 sm:$0xff]  }
 0x664   :  { %6450 = vmatpush1.bf16.msra.mxu0 %v8353_v32  ;;  %6614 = vmatpush1.bf16.msra.mxu1 %v8356_v52  ;;  %v8422_v32 = vld [vmem:[#allocation22 + $0x7e8] ss:$28 sps:$4 sm:$0xff]   ;;  %v8427_v52 = vld [vmem:[#allocation22 + $0x81c] ss:$28 sps:$4 sm:$0xff]  }
 0x665   :  { %6451 = vmatprep.subr.bf16.mxu0 %v8361_v12  ;;  %6615 = vmatprep.subr.bf16.mxu1 %v8364_v13  ;;  %v8430_v12 = vld [vmem:[#allocation22 + $0x824] ss:$28 sps:$4 sm:$0xff]   ;;  %v8425_v13 = vld [vmem:[#allocation22 + $0x818] ss:$28 sps:$4 sm:$0xff]  }
 0x668   :  { %6452 = vmatpush1.bf16.msra.mxu0 %v8359_v51  ;;  %6616 = vmatpush1.bf16.msra.mxu1 %v8362_v15  ;;  %v8428_v51 = vld [vmem:[#allocation22 + $0x820] ss:$28 sps:$4 sm:$0xff]   ;;  %v8433_v15 = vld [vmem:[#allocation22 + $0x854] ss:$28 sps:$4 sm:$0xff]  }
 0x669   :  { %6453 = vmatprep.subr.bf16.mxu0 %v8367_v5  ;;  %6617 = vmatprep.subr.bf16.mxu1 %v8370_v27  ;;  %v8436_v5 = vld [vmem:[#allocation22 + $0x85c] ss:$28 sps:$4 sm:$0xff]   ;;  %v8431_v27 = vld [vmem:[#allocation22 + $0x850] ss:$28 sps:$4 sm:$0xff]  }
 0x66c   :  { %6454 = vmatpush1.bf16.msra.mxu0 %v8365_v31  ;;  %6618 = vmatpush1.bf16.msra.mxu1 %v8368_v36  ;;  %v8434_v31 = vld [vmem:[#allocation22 + $0x858] ss:$28 sps:$4 sm:$0xff]   ;;  %v8439_v36 = vld [vmem:[#allocation22 + $0x88c] ss:$28 sps:$4 sm:$0xff]  }
 0x66d   :  { %6455 = vmatprep.subr.bf16.mxu0 %v8373_v21  ;;  %6619 = vmatprep.subr.bf16.mxu1 %v8376_v25  ;;  %v8442_v21 = vld [vmem:[#allocation22 + $0x894] ss:$28 sps:$4 sm:$0xff]   ;;  %v8437_v25 = vld [vmem:[#allocation22 + $0x888] ss:$28 sps:$4 sm:$0xff]  }
 0x670   :  { %6456 = vmatpush1.bf16.msra.mxu0 %v8371_v37  ;;  %6620 = vmatpush1.bf16.msra.mxu1 %v8374_v39  ;;  %v8440_v37 = vld [vmem:[#allocation22 + $0x890] ss:$28 sps:$4 sm:$0xff]   ;;  %v8445_v39 = vld [vmem:[#allocation22 + $0x8c4] ss:$28 sps:$4 sm:$0xff]  }
 0x671   :  { %6457 = vmatprep.subr.bf16.mxu0 %v8379_v42  ;;  %6621 = vmatprep.subr.bf16.mxu1 %v8382_v43  ;;  %v8448_v42 = vld [vmem:[#allocation22 + $0x8cc] ss:$28 sps:$4 sm:$0xff]   ;;  %v8443_v43 = vld [vmem:[#allocation22 + $0x8c0] ss:$28 sps:$4 sm:$0xff]  }
 0x674   :  { %6458 = vmatpush1.bf16.msra.mxu0 %v8377_v49  ;;  %6622 = vmatpush1.bf16.msra.mxu1 %v8380_v53  ;;  %v8446_v49 = vld [vmem:[#allocation22 + $0x8c8] ss:$28 sps:$4 sm:$0xff]   ;;  %v8451_v53 = vld [vmem:[#allocation22 + $0x8fc] ss:$28 sps:$4 sm:$0xff]  }
 0x675   :  { %6459 = vmatprep.subr.bf16.mxu0 %v8385_v54  ;;  %6623 = vmatprep.subr.bf16.mxu1 %v8388_v55  ;;  %v8454_v54 = vld [vmem:[#allocation22 + $0x904] ss:$28 sps:$4 sm:$0xff]   ;;  %v8449_v55 = vld [vmem:[#allocation22 + $0x8f8] ss:$28 sps:$4 sm:$0xff]  }
 0x678   :  { %6460 = vmatpush1.bf16.msra.mxu0 %v8383_v61  ;;  %6624 = vmatpush1.bf16.msra.mxu1 %v8386_v62  ;;  %v8452_v61 = vld [vmem:[#allocation22 + $0x900] ss:$28 sps:$4 sm:$0xff]   ;;  %v8457_v62 = vld [vmem:[#allocation22 + $0x934] ss:$28 sps:$4 sm:$0xff]  }
 0x679   :  { %6461 = vmatprep.subr.bf16.mxu0 %v8391_v63  ;;  %6625 = vmatprep.subr.bf16.mxu1 %v8394_v4  ;;  %v8460_v63 = vld [vmem:[#allocation22 + $0x93c] ss:$28 sps:$4 sm:$0xff]   ;;  %v8455_v4 = vld [vmem:[#allocation22 + $0x930] ss:$28 sps:$4 sm:$0xff]  }
 0x67c   :  { %6462 = vmatpush1.bf16.msra.mxu0 %v8389_v46  ;;  %6626 = vmatpush1.bf16.msra.mxu1 %v8392_v59  ;;  %v8466_v46 = vld [vmem:[#allocation22 + $0x974] ss:$28 sps:$4 sm:$0xff]   ;;  %v8461_v59 = vld [vmem:[#allocation22 + $0x968] ss:$28 sps:$4 sm:$0xff]  }
 0x67d   :  { %6472 = vmatprep.subr.bf16.mxu0 %v8397_v56  ;;  %6636 = vmatprep.subr.bf16.mxu1 %v8400_v30  ;;  %v8464_v56 = vld [vmem:[#allocation22 + $0x970] ss:$28 sps:$4 sm:$0xff]   ;;  %v8469_v30 = vld [vmem:[#allocation22 + $0x9a4] ss:$28 sps:$4 sm:$0xff]  }
 0x67f   :  { %6464 = vmatmul.mubr.bf16.vlgmr.msra.gmra.mrb[12].mxu0 %v9779_v38  ;;  %6628 = vmatmul.mubr.bf16.vlgmr.msra.gmra.mrb[20].mxu1 %v9779_v38 }
 0x680   :  { %6473 = vmatpush1.bf16.msra.mxu0 %v8395_v28  ;;  %6504 = vmatprep.mubr.bf16.mxu0 %v9781_v22  ;;  %v8470_v28 = vld [vmem:[#allocation22 + $0x9a8] ss:$28 sps:$4 sm:$0xff]  }
 0x681   :  { %6637 = vmatpush1.bf16.msra.mxu1 %v8398_v40  ;;  %6668 = vmatprep.mubr.bf16.mxu1 %v9781_v22  ;;  %v8475_v40 = vld [vmem:[#allocation22 + $0x9dc] ss:$28 sps:$4 sm:$0xff]  }
 0x682   :  { %6474 = vmatprep.subr.bf16.mxu0 %v8403_v23  ;;  %6638 = vmatprep.subr.bf16.mxu1 %v8406_v44  ;;  %v8478_v23 = vld [vmem:[#allocation22 + $0x9e4] ss:$28 sps:$4 sm:$0xff]   ;;  %v8473_v44 = vld [vmem:[#allocation22 + $0x9d8] ss:$28 sps:$4 sm:$0xff]  }
 0x684   :  { %6475 = vmatpush1.bf16.msra.mxu0 %v8401_v8  ;;  %v8476_v8 = vld [vmem:[#allocation22 + $0x9e0] ss:$28 sps:$4 sm:$0xff]  }
 0x685   :  { %6639 = vmatpush1.bf16.msra.mxu1 %v8404_v34  ;;  %6476 = vmatprep.subr.bf16.mxu0 %v8409_v0  ;;  %v8481_v34 = vld [vmem:[#allocation22 + $0xa14] ss:$28 sps:$4 sm:$0xff]   ;;  %v8484_v0 = vld [vmem:[#allocation22 + $0xa1c] ss:$28 sps:$4 sm:$0xff]  }
 0x686   :  { %6640 = vmatprep.subr.bf16.mxu1 %v8412_v29  ;;  %v8479_v29 = vld [vmem:[#allocation22 + $0xa10] ss:$28 sps:$4 sm:$0xff]  }
 0x688   :  { %6477 = vmatpush1.bf16.msra.mxu0 %v8407_v24  ;;  %v8482_v24 = vld [vmem:[#allocation22 + $0xa18] ss:$28 sps:$4 sm:$0xff]  }
 0x689   :  { %6641 = vmatpush1.bf16.msra.mxu1 %v8410_v1  ;;  %6478 = vmatprep.subr.bf16.mxu0 %v8415_v3  ;;  %v8487_v1 = vld [vmem:[#allocation22 + $0xa4c] ss:$28 sps:$4 sm:$0xff]   ;;  %v8490_v3 = vld [vmem:[#allocation22 + $0xa54] ss:$28 sps:$4 sm:$0xff]  }
 0x68a   :  { %6642 = vmatprep.subr.bf16.mxu1 %v8418_v6  ;;  %v3517_v6 = vmul.f32 0.2, %v9757_v16 }
 0x68c   :  { %6479 = vmatpush1.bf16.msra.mxu0 %v8413_v19  ;;  %v8485_v19 = vld [vmem:[#allocation22 + $0xa48] ss:$28 sps:$4 sm:$0xff]  }
 0x68d   :  { %6643 = vmatpush1.bf16.msra.mxu1 %v8416_v17  ;;  %6480 = vmatprep.subr.bf16.mxu0 %v8421_v2  ;;  %v3520_v17 = vmul.f32 0.2, %v9751_v14  ;;  %v8488_v2 = vld [vmem:[#allocation22 + $0xa50] ss:$28 sps:$4 sm:$0xff]  }
 0x68e   :  { %6644 = vmatprep.subr.bf16.mxu1 %v8424_v7  ;;  %v8493_v7 = vld [vmem:[#allocation22 + $0xa84] ss:$28 sps:$4 sm:$0xff]  }
 0x690   :  { %6481 = vmatpush1.bf16.msra.mxu0 %v8419_v9  ;;  %v3525_v9 = vsel %vm3509_vm13, %v9757_v16, %v3517_v6  ;;  %v8497_v16 = vld [vmem:[#allocation22 + $0xab8] ss:$28 sps:$4 sm:$0xff]  }
 0x691   :  { %6645 = vmatpush1.bf16.msra.mxu1 %v8422_v32  ;;  %6482 = vmatprep.subr.bf16.mxu0 %v8427_v52  ;;  %v8496_v32 = vld [vmem:[#allocation22 + $0xa8c] ss:$28 sps:$4 sm:$0xff]   ;;  %v8491_v52 = vld [vmem:[#allocation22 + $0xa80] ss:$28 sps:$4 sm:$0xff]   ;;  %v8554_v6 = vld [vmem:[#allocation22 + $0xcb8] ss:$28 sps:$4 sm:$0xff]  }
 0x692   :  { %6646 = vmatprep.subr.bf16.mxu1 %v8430_v12  ;;  %v3528_v12 = vsel %vm3512_vm14, %v9751_v14, %v3520_v17  ;;  %v8500_v14 = vld [vmem:[#allocation22 + $0xac0] ss:$28 sps:$4 sm:$0xff]   ;;  %v8562_v17 = vld [vmem:[#allocation22 + $0xcf4] ss:$28 sps:$4 sm:$0xff]  }
 0x694   :  { %6483 = vmatpush1.bf16.msra.mxu0 %v8425_v13  ;;  %v9793_v13 = vpack.c.bf16 %v3525_v9, %v3525_v9  ;;  %v8565_v9 = vld [vmem:[#allocation22 + $0xd24] ss:$28 sps:$4 sm:$0xff]  }
 0x695   :  { %6647 = vmatpush1.bf16.msra.mxu1 %v8428_v51  ;;  %6484 = vmatprep.subr.bf16.mxu0 %v8433_v15  ;;  %v8494_v51 = vld [vmem:[#allocation22 + $0xa88] ss:$28 sps:$4 sm:$0xff]   ;;  %v8499_v15 = vld [vmem:[#allocation22 + $0xabc] ss:$28 sps:$4 sm:$0xff]  }
 0x696   :  { %6648 = vmatprep.subr.bf16.mxu1 %v8436_v5  ;;  %v9796_v5 = vpack.c.bf16 %v3528_v12, %v3528_v12  ;;  %v8566_v12 = vld [vmem:[#allocation22 + $0xd28] ss:$28 sps:$4 sm:$0xff]  }
 0x698   :  { %6485 = vmatpush1.bf16.msra.mxu0 %v8431_v27  ;;  %v8502_v27 = vld [vmem:[#allocation22 + $0xac4] ss:$28 sps:$4 sm:$0xff]  }
 0x699   :  { %6649 = vmatpush1.bf16.msra.mxu1 %v8434_v31  ;;  %6486 = vmatprep.subr.bf16.mxu0 %v8439_v36  ;;  %v8505_v31 = vld [vmem:[#allocation22 + $0xaf4] ss:$28 sps:$4 sm:$0xff]   ;;  %v8508_v36 = vld [vmem:[#allocation22 + $0xafc] ss:$28 sps:$4 sm:$0xff]  }
 0x69a   :  { %6650 = vmatprep.subr.bf16.mxu1 %v8442_v21  ;;  %v8503_v21 = vld [vmem:[#allocation22 + $0xaf0] ss:$28 sps:$4 sm:$0xff]  }
 0x69c   :  { %6487 = vmatpush1.bf16.msra.mxu0 %v8437_v25  ;;  %v8506_v25 = vld [vmem:[#allocation22 + $0xaf8] ss:$28 sps:$4 sm:$0xff]  }
 0x69d   :  { %6651 = vmatpush1.bf16.msra.mxu1 %v8440_v37  ;;  %6488 = vmatprep.subr.bf16.mxu0 %v8445_v39  ;;  %v8511_v37 = vld [vmem:[#allocation22 + $0xb2c] ss:$28 sps:$4 sm:$0xff]   ;;  %v8514_v39 = vld [vmem:[#allocation22 + $0xb34] ss:$28 sps:$4 sm:$0xff]  }
 0x69e   :  { %6652 = vmatprep.subr.bf16.mxu1 %v8448_v42  ;;  %v8509_v42 = vld [vmem:[#allocation22 + $0xb28] ss:$28 sps:$4 sm:$0xff]  }
 0x6a0   :  { %6489 = vmatpush1.bf16.msra.mxu0 %v8443_v43  ;;  %v8512_v43 = vld [vmem:[#allocation22 + $0xb30] ss:$28 sps:$4 sm:$0xff]  }
 0x6a1   :  { %6653 = vmatpush1.bf16.msra.mxu1 %v8446_v49  ;;  %6490 = vmatprep.subr.bf16.mxu0 %v8451_v53  ;;  %v8517_v49 = vld [vmem:[#allocation22 + $0xb64] ss:$28 sps:$4 sm:$0xff]   ;;  %v8520_v53 = vld [vmem:[#allocation22 + $0xb6c] ss:$28 sps:$4 sm:$0xff]  }
 0x6a2   :  { %6654 = vmatprep.subr.bf16.mxu1 %v8454_v54  ;;  %v8515_v54 = vld [vmem:[#allocation22 + $0xb60] ss:$28 sps:$4 sm:$0xff]  }
 0x6a4   :  { %6491 = vmatpush1.bf16.msra.mxu0 %v8449_v55  ;;  %v8518_v55 = vld [vmem:[#allocation22 + $0xb68] ss:$28 sps:$4 sm:$0xff]  }
 0x6a5   :  { %6655 = vmatpush1.bf16.msra.mxu1 %v8452_v61  ;;  %6492 = vmatprep.subr.bf16.mxu0 %v8457_v62  ;;  %v8523_v61 = vld [vmem:[#allocation22 + $0xb9c] ss:$28 sps:$4 sm:$0xff]   ;;  %v8526_v62 = vld [vmem:[#allocation22 + $0xba4] ss:$28 sps:$4 sm:$0xff]  }
 0x6a6   :  { %6656 = vmatprep.subr.bf16.mxu1 %v8460_v63  ;;  %v8521_v63 = vld [vmem:[#allocation22 + $0xb98] ss:$28 sps:$4 sm:$0xff]  }
 0x6a8   :  { %6493 = vmatpush1.bf16.msra.mxu0 %v8455_v4  ;;  %v8524_v4 = vld [vmem:[#allocation22 + $0xba0] ss:$28 sps:$4 sm:$0xff]  }
 0x6a9   :  { %6657 = vmatpush1.bf16.msra.mxu1 %v8458_v10  ;;  %6494 = vmatprep.subr.bf16.mxu0 %v8463_v11  ;;  %v8529_v10 = vld [vmem:[#allocation22 + $0xbd4] ss:$28 sps:$4 sm:$0xff]   ;;  %v8532_v11 = vld [vmem:[#allocation22 + $0xbdc] ss:$28 sps:$4 sm:$0xff]  }
 0x6aa   :  { %6658 = vmatprep.subr.bf16.mxu1 %v8466_v46  ;;  %v8527_v46 = vld [vmem:[#allocation22 + $0xbd0] ss:$28 sps:$4 sm:$0xff]  }
 0x6ac   :  { %6495 = vmatpush1.bf16.msra.mxu0 %v8461_v59  ;;  %v8530_v59 = vld [vmem:[#allocation22 + $0xbd8] ss:$28 sps:$4 sm:$0xff]  }
 0x6ad   :  { %6659 = vmatpush1.bf16.msra.mxu1 %v8464_v56  ;;  %6496 = vmatprep.subr.bf16.mxu0 %v8469_v30  ;;  %v8535_v56 = vld [vmem:[#allocation22 + $0xc0c] ss:$28 sps:$4 sm:$0xff]   ;;  %v8538_v30 = vld [vmem:[#allocation22 + $0xc14] ss:$28 sps:$4 sm:$0xff]  }
 0x6ae   :  { %6660 = vmatprep.subr.bf16.mxu1 %v8472_v26  ;;  %v8533_v26 = vld [vmem:[#allocation22 + $0xc08] ss:$28 sps:$4 sm:$0xff]  }
 0x6b0   :  { %6497 = vmatpush1.bf16.msra.mxu0 %v8467_v35  ;;  %v8536_v35 = vld [vmem:[#allocation22 + $0xc10] ss:$28 sps:$4 sm:$0xff]  }
 0x6b1   :  { %6661 = vmatpush1.bf16.msra.mxu1 %v8470_v28  ;;  %6498 = vmatprep.subr.bf16.mxu0 %v8475_v40  ;;  %v8541_v28 = vld [vmem:[#allocation22 + $0xc44] ss:$28 sps:$4 sm:$0xff]   ;;  %v8544_v40 = vld [vmem:[#allocation22 + $0xc4c] ss:$28 sps:$4 sm:$0xff]  }
 0x6b2   :  { %6662 = vmatprep.subr.bf16.mxu1 %v8478_v23  ;;  %v8539_v23 = vld [vmem:[#allocation22 + $0xc40] ss:$28 sps:$4 sm:$0xff]  }
 0x6b4   :  { %6499 = vmatpush1.bf16.msra.mxu0 %v8473_v44  ;;  %v8542_v44 = vld [vmem:[#allocation22 + $0xc48] ss:$28 sps:$4 sm:$0xff]  }
 0x6b5   :  { %6663 = vmatpush1.bf16.msra.mxu1 %v8476_v8  ;;  %6500 = vmatprep.subr.bf16.mxu0 %v8481_v34  ;;  %v8547_v8 = vld [vmem:[#allocation22 + $0xc7c] ss:$28 sps:$4 sm:$0xff]   ;;  %v8550_v34 = vld [vmem:[#allocation22 + $0xc84] ss:$28 sps:$4 sm:$0xff]  }
 0x6b6   :  { %6664 = vmatprep.subr.bf16.mxu1 %v8484_v0  ;;  %v8545_v0 = vld [vmem:[#allocation22 + $0xc78] ss:$28 sps:$4 sm:$0xff]  }
 0x6b8   :  { %6501 = vmatpush1.bf16.msra.mxu0 %v8479_v29  ;;  %v8548_v29 = vld [vmem:[#allocation22 + $0xc80] ss:$28 sps:$4 sm:$0xff]  }
 0x6b9   :  { %6665 = vmatpush1.bf16.msra.mxu1 %v8482_v24  ;;  %6502 = vmatprep.subr.bf16.mxu0 %v8487_v1  ;;  %v8553_v24 = vld [vmem:[#allocation22 + $0xcb4] ss:$28 sps:$4 sm:$0xff]   ;;  %v8556_v1 = vld [vmem:[#allocation22 + $0xcbc] ss:$28 sps:$4 sm:$0xff]  }
 0x6ba   :  { %6666 = vmatprep.subr.bf16.mxu1 %v8490_v3  ;;  %v8551_v3 = vld [vmem:[#allocation22 + $0xcb0] ss:$28 sps:$4 sm:$0xff]  }
 0x6bc   :  { %6503 = vmatpush1.bf16.msra.mxu0 %v8485_v19  ;;  %v8559_v19 = vld [vmem:[#allocation22 + $0xcec] ss:$28 sps:$4 sm:$0xff]  }
 0x6bd   :  { %6667 = vmatpush1.bf16.msra.mxu1 %v8488_v2  ;;  %6513 = vmatprep.subr.bf16.mxu0 %v8493_v7  ;;  %v8557_v2 = vld [vmem:[#allocation22 + $0xce8] ss:$28 sps:$4 sm:$0xff]   ;;  %v8560_v7 = vld [vmem:[#allocation22 + $0xcf0] ss:$28 sps:$4 sm:$0xff]  }
 0x6be   :  { %6677 = vmatprep.subr.bf16.mxu1 %v8496_v32  ;;  %v8568_v32 = vld [vmem:[#allocation22 + $0xd2c] ss:$28 sps:$4 sm:$0xff]  }
 0x6bf   :  { %6505 = vmatmul.mubr.bf16.vlgmr.msra.gmra.mrb[12].mxu0 %v9793_v13 }
 0x6c0   :  { %6669 = vmatmul.mubr.bf16.vlgmr.msra.gmra.mrb[20].mxu1 %v9793_v13  ;;  %6514 = vmatpush1.bf16.msra.mxu0 %v8491_v52  ;;  %v8563_v52 = vld [vmem:[#allocation22 + $0xd20] ss:$28 sps:$4 sm:$0xff]  }
 0x6c1   :  { %6545 = vmatprep.mubr.bf16.mxu0 %v9796_v5  ;;  %6678 = vmatpush1.bf16.msra.mxu1 %v8494_v51  ;;  %v8571_v51 = vld [vmem:[#allocation22 + $0xd5c] ss:$28 sps:$4 sm:$0xff]  }
 0x6c2   :  { %6709 = vmatprep.mubr.bf16.mxu1 %v9796_v5  ;;  %6515 = vmatprep.subr.bf16.mxu0 %v8499_v15  ;;  %v8574_v15 = vld [vmem:[#allocation22 + $0xd64] ss:$28 sps:$4 sm:$0xff]  }
 0x6c3   :  { %6679 = vmatprep.subr.bf16.mxu1 %v8502_v27  ;;  %v8569_v27 = vld [vmem:[#allocation22 + $0xd58] ss:$28 sps:$4 sm:$0xff]  }
 0x6c4   :  { %6516 = vmatpush1.bf16.msra.mxu0 %v8497_v16  ;;  %v8572_v16 = vld [vmem:[#allocation22 + $0xd60] ss:$28 sps:$4 sm:$0xff]  }
 0x6c5   :  { %6680 = vmatpush1.bf16.msra.mxu1 %v8500_v14  ;;  %6517 = vmatprep.subr.bf16.mxu0 %v8505_v31  ;;  %v8577_v14 = vld [vmem:[#allocation22 + $0xd94] ss:$28 sps:$4 sm:$0xff]   ;;  %v8580_v31 = vld [vmem:[#allocation22 + $0xd9c] ss:$28 sps:$4 sm:$0xff]  }
 0x6c6   :  { %6681 = vmatprep.subr.bf16.mxu1 %v8508_v36  ;;  %v8575_v36 = vld [vmem:[#allocation22 + $0xd90] ss:$28 sps:$4 sm:$0xff]  }
 0x6c8   :  { %6518 = vmatpush1.bf16.msra.mxu0 %v8503_v21  ;;  %v8578_v21 = vld [vmem:[#allocation22 + $0xd98] ss:$28 sps:$4 sm:$0xff]  }
 0x6c9   :  { %6682 = vmatpush1.bf16.msra.mxu1 %v8506_v25  ;;  %6519 = vmatprep.subr.bf16.mxu0 %v8511_v37  ;;  %v8583_v25 = vld [vmem:[#allocation22 + $0xdcc] ss:$28 sps:$4 sm:$0xff]   ;;  %v8586_v37 = vld [vmem:[#allocation22 + $0xdd4] ss:$28 sps:$4 sm:$0xff]  }
 0x6ca   :  { %6683 = vmatprep.subr.bf16.mxu1 %v8514_v39  ;;  %v3519_v39 = vmul.f32 0.2, %v9759_v60 }
 0x6cc   :  { %6520 = vmatpush1.bf16.msra.mxu0 %v8509_v42  ;;  %v8581_v42 = vld [vmem:[#allocation22 + $0xdc8] ss:$28 sps:$4 sm:$0xff]  }
 0x6cd   :  { %6684 = vmatpush1.bf16.msra.mxu1 %v8512_v43  ;;  %6521 = vmatprep.subr.bf16.mxu0 %v8517_v49  ;;  %v8584_v43 = vld [vmem:[#allocation22 + $0xdd0] ss:$28 sps:$4 sm:$0xff]  }
 0x6ce   :  { %6685 = vmatprep.subr.bf16.mxu1 %v8520_v53  ;;  %v8589_v49 = vld [vmem:[#allocation22 + $0x14] ss:$28 sps:$4 sm:$0xff]   ;;  %v3527_v53 = vsel %vm3511_vm15, %v9759_v60, %v3519_v39 }
 0x6cf   :  { %v8596_v60 = vld [vmem:[#allocation22 + $0x50] ss:$28 sps:$4 sm:$0xff]   ;;  %v8642_v39 = vld [vmem:[#allocation22 + $0x278] ss:$28 sps:$4 sm:$0xff]  }
 0x6d0   :  { %6522 = vmatpush1.bf16.msra.mxu0 %v8515_v54  ;;  %v8590_v54 = vld [vmem:[#allocation22 + $0x1d8] ss:$28 sps:$4 sm:$0xff]  }
 0x6d1   :  { %6686 = vmatpush1.bf16.msra.mxu1 %v8518_v55  ;;  %6523 = vmatprep.subr.bf16.mxu0 %v8523_v61  ;;  %v8587_v55 = vld [vmem:[#allocation22 + $0x10] ss:$28 sps:$4 sm:$0xff]   ;;  %v9804_v61 = vpack.c.bf16 %v3527_v53, %v3527_v53 }
 0x6d2   :  { %6687 = vmatprep.subr.bf16.mxu1 %v8526_v62  ;;  %v8591_v62 = vld [vmem:[#allocation22 + $0x18] ss:$28 sps:$4 sm:$0xff]   ;;  %v8647_v53 = vld [vmem:[#allocation22 + $0x2b0] ss:$28 sps:$4 sm:$0xff]  }
 0x6d4   :  { %6524 = vmatpush1.bf16.msra.mxu0 %v8521_v63  ;;  %v8594_v63 = vld [vmem:[#allocation22 + $0x4c] ss:$28 sps:$4 sm:$0xff]  }
 0x6d5   :  { %6688 = vmatpush1.bf16.msra.mxu1 %v8524_v4  ;;  %6525 = vmatprep.subr.bf16.mxu0 %v8529_v10  ;;  %v8595_v4 = vld [vmem:[#allocation22 + $0x210] ss:$28 sps:$4 sm:$0xff]   ;;  %v8592_v10 = vld [vmem:[#allocation22 + $0x48] ss:$28 sps:$4 sm:$0xff]  }
 0x6d6   :  { %6689 = vmatprep.subr.bf16.mxu1 %v8532_v11  ;;  %v8599_v11 = vld [vmem:[#allocation22 + $0x84] ss:$28 sps:$4 sm:$0xff]  }
 0x6d8   :  { %6526 = vmatpush1.bf16.msra.mxu0 %v8527_v46  ;;  %v8600_v46 = vld [vmem:[#allocation22 + $0x248] ss:$28 sps:$4 sm:$0xff]  }
 0x6d9   :  { %6690 = vmatpush1.bf16.msra.mxu1 %v8530_v59  ;;  %6527 = vmatprep.subr.bf16.mxu0 %v8535_v56  ;;  %v8597_v59 = vld [vmem:[#allocation22 + $0x80] ss:$28 sps:$4 sm:$0xff]   ;;  %v8601_v56 = vld [vmem:[#allocation22 + $0x88] ss:$28 sps:$4 sm:$0xff]  }
 0x6da   :  { %6691 = vmatprep.subr.bf16.mxu1 %v8538_v30  ;;  %v8604_v30 = vld [vmem:[#allocation22 + $0xbc] ss:$28 sps:$4 sm:$0xff]  }
 0x6dc   :  { %6528 = vmatpush1.bf16.msra.mxu0 %v8533_v26  ;;  %v8605_v26 = vld [vmem:[#allocation22 + $0x280] ss:$28 sps:$4 sm:$0xff]  }
 0x6dd   :  { %6692 = vmatpush1.bf16.msra.mxu1 %v8536_v35  ;;  %6529 = vmatprep.subr.bf16.mxu0 %v8541_v28  ;;  %v8602_v35 = vld [vmem:[#allocation22 + $0xb8] ss:$28 sps:$4 sm:$0xff]   ;;  %v8606_v28 = vld [vmem:[#allocation22 + $0xc0] ss:$28 sps:$4 sm:$0xff]  }
 0x6de   :  { %6693 = vmatprep.subr.bf16.mxu1 %v8544_v40  ;;  %v8609_v40 = vld [vmem:[#allocation22 + $0xf4] ss:$28 sps:$4 sm:$0xff]  }
 0x6e0   :  { %6530 = vmatpush1.bf16.msra.mxu0 %v8539_v23  ;;  %v8610_v23 = vld [vmem:[#allocation22 + $0x2b8] ss:$28 sps:$4 sm:$0xff]  }
 0x6e1   :  { %6694 = vmatpush1.bf16.msra.mxu1 %v8542_v44  ;;  %6531 = vmatprep.subr.bf16.mxu0 %v8547_v8  ;;  %v8611_v44 = vld [vmem:[#allocation22 + $0xf8] ss:$28 sps:$4 sm:$0xff]   ;;  %v8614_v8 = vld [vmem:[#allocation22 + $0x12c] ss:$28 sps:$4 sm:$0xff]  }
 0x6e2   :  { %6695 = vmatprep.subr.bf16.mxu1 %v8550_v34  ;;  %v8615_v34 = vld [vmem:[#allocation22 + $0x2f0] ss:$28 sps:$4 sm:$0xff]  }
 0x6e4   :  { %6532 = vmatpush1.bf16.msra.mxu0 %v8545_v0  ;;  %v8612_v0 = vld [vmem:[#allocation22 + $0x128] ss:$28 sps:$4 sm:$0xff]  }
 0x6e5   :  { %6696 = vmatpush1.bf16.msra.mxu1 %v8548_v29  ;;  %6533 = vmatprep.subr.bf16.mxu0 %v8553_v24  ;;  %v8616_v29 = vld [vmem:[#allocation22 + $0x130] ss:$28 sps:$4 sm:$0xff]   ;;  %v8619_v24 = vld [vmem:[#allocation22 + $0x164] ss:$28 sps:$4 sm:$0xff]  }
 0x6e6   :  { %6697 = vmatprep.subr.bf16.mxu1 %v8556_v1  ;;  %v8620_v1 = vld [vmem:[#allocation22 + $0x328] ss:$28 sps:$4 sm:$0xff]  }
 0x6e8   :  { %6534 = vmatpush1.bf16.msra.mxu0 %v8551_v3  ;;  %v8617_v3 = vld [vmem:[#allocation22 + $0x160] ss:$28 sps:$4 sm:$0xff]  }
 0x6e9   :  { %6698 = vmatpush1.bf16.msra.mxu1 %v8554_v6  ;;  %6535 = vmatprep.subr.bf16.mxu0 %v8559_v19  ;;  %v8621_v6 = vld [vmem:[#allocation22 + $0x168] ss:$28 sps:$4 sm:$0xff]   ;;  %v8624_v19 = vld [vmem:[#allocation22 + $0x19c] ss:$28 sps:$4 sm:$0xff]  }
 0x6ea   :  { %6699 = vmatprep.subr.bf16.mxu1 %v8562_v17  ;;  %v8625_v17 = vld [vmem:[#allocation22 + $0x360] ss:$28 sps:$4 sm:$0xff]  }
 0x6ec   :  { %6536 = vmatpush1.bf16.msra.mxu0 %v8557_v2  ;;  %v8622_v2 = vld [vmem:[#allocation22 + $0x198] ss:$28 sps:$4 sm:$0xff]  }
 0x6ed   :  { %6700 = vmatpush1.bf16.msra.mxu1 %v8560_v7  ;;  %6537 = vmatprep.subr.bf16.mxu0 %v8565_v9  ;;  %v8626_v7 = vld [vmem:[#allocation22 + $0x1a0] ss:$28 sps:$4 sm:$0xff]   ;;  %v8629_v9 = vld [vmem:[#allocation22 + $0x1d4] ss:$28 sps:$4 sm:$0xff]  }
 0x6ee   :  { %6701 = vmatprep.subr.bf16.mxu1 %v8568_v32  ;;  %v8630_v32 = vld [vmem:[#allocation22 + $0x558] ss:$28 sps:$4 sm:$0xff]  }
 0x6f0   :  { %6538 = vmatpush1.bf16.msra.mxu0 %v8563_v52  ;;  %v8627_v52 = vld [vmem:[#allocation22 + $0x1d0] ss:$28 sps:$4 sm:$0xff]  }
 0x6f1   :  { %6702 = vmatpush1.bf16.msra.mxu1 %v8566_v12  ;;  %6539 = vmatprep.subr.bf16.mxu0 %v8571_v51  ;;  %v8631_v12 = vld [vmem:[#allocation22 + $0x398] ss:$28 sps:$4 sm:$0xff]   ;;  %v8634_v51 = vld [vmem:[#allocation22 + $0x20c] ss:$28 sps:$4 sm:$0xff]  }
 0x6f2   :  { %6703 = vmatprep.subr.bf16.mxu1 %v8574_v15  ;;  %v8635_v15 = vld [vmem:[#allocation22 + $0x590] ss:$28 sps:$4 sm:$0xff]  }
 0x6f4   :  { %6540 = vmatpush1.bf16.msra.mxu0 %v8569_v27  ;;  %v8632_v27 = vld [vmem:[#allocation22 + $0x208] ss:$28 sps:$4 sm:$0xff]  }
 0x6f5   :  { %6704 = vmatpush1.bf16.msra.mxu1 %v8572_v16  ;;  %6541 = vmatprep.subr.bf16.mxu0 %v8577_v14  ;;  %v8636_v16 = vld [vmem:[#allocation22 + $0x3d0] ss:$28 sps:$4 sm:$0xff]   ;;  %v8639_v14 = vld [vmem:[#allocation22 + $0x244] ss:$28 sps:$4 sm:$0xff]  }
 0x6f6   :  { %6705 = vmatprep.subr.bf16.mxu1 %v8580_v31  ;;  %v8640_v31 = vld [vmem:[#allocation22 + $0x5c8] ss:$28 sps:$4 sm:$0xff]  }
 0x6f8   :  { %6542 = vmatpush1.bf16.msra.mxu0 %v8575_v36  ;;  %v8637_v36 = vld [vmem:[#allocation22 + $0x240] ss:$28 sps:$4 sm:$0xff]  }
 0x6f9   :  { %6706 = vmatpush1.bf16.msra.mxu1 %v8578_v21  ;;  %6543 = vmatprep.subr.bf16.mxu0 %v8583_v25  ;;  %v8641_v21 = vld [vmem:[#allocation22 + $0x408] ss:$28 sps:$4 sm:$0xff]   ;;  %v8644_v25 = vld [vmem:[#allocation22 + $0x27c] ss:$28 sps:$4 sm:$0xff]  }
 0x6fa   :  { %6707 = vmatprep.subr.bf16.mxu1 %v8586_v37  ;;  %v8645_v37 = vld [vmem:[#allocation22 + $0x600] ss:$28 sps:$4 sm:$0xff]  }
 0x6fc   :  { %6544 = vmatpush1.bf16.msra.mxu0 %v8581_v42  ;;  %v8646_v42 = vld [vmem:[#allocation22 + $0x440] ss:$28 sps:$4 sm:$0xff]  }
 0x6fd   :  { %6708 = vmatpush1.bf16.msra.mxu1 %v8584_v43  ;;  %6718 = vmatprep.subr.bf16.mxu0 %v8589_v49  ;;  %v8649_v43 = vld [vmem:[#allocation22 + $0x2b4] ss:$28 sps:$4 sm:$0xff]  }
 0x6fe   :  { %7880 = vmatprep.subr.bf16.mxu1 %v8590_v54  ;;  %v8650_v49 = vld [vmem:[#allocation22 + $0x638] ss:$28 sps:$4 sm:$0xff]  }
 0x6ff   :  { %6546 = vmatmul.mubr.bf16.vlgmr.msra.gmra.mrb[12].mxu0 %v9804_v61  ;;  %v8651_v54 = vld [vmem:[#allocation22 + $0x478] ss:$28 sps:$4 sm:$0xff]  }
 0x700   :  { %6710 = vmatmul.mubr.bf16.vlgmr.msra.gmra.mrb[20].mxu1 %v9804_v61  ;;  %6719 = vmatpush1.bf16.msra.mxu0 %v8587_v55  ;;  %v8654_v55 = vld [vmem:[#allocation22 + $0x2ec] ss:$28 sps:$4 sm:$0xff]  }
 0x701   :  { %6750 = vmatprep.mubr.bf16.mxu0 %v9761_v33  ;;  %7881 = vmatpush3.bf16.msra.mxu1 %v8591_v62  ;;  %v8655_v62 = vld [vmem:[#allocation22 + $0x670] ss:$28 sps:$4 sm:$0xff]  }
 0x702   :  { %6914 = vmatprep.mubr.bf16.mxu1 %v9761_v33  ;;  %6720 = vmatprep.subr.bf16.mxu0 %v8594_v63  ;;  %v8607_v33 = vld [vmem:[#allocation22 + $0xf0] ss:$28 sps:$4 sm:$0xff]   ;;  %v8652_v63 = vld [vmem:[#allocation22 + $0x2e8] ss:$28 sps:$4 sm:$0xff]  }
 0x703   :  { %7882 = vmatprep.subr.bf16.mxu1 %v8595_v4  ;;  %v8656_v4 = vld [vmem:[#allocation22 + $0x4b0] ss:$28 sps:$4 sm:$0xff]  }
 0x704   :  { %6721 = vmatpush1.bf16.msra.mxu0 %v8592_v10  ;;  %v8659_v10 = vld [vmem:[#allocation22 + $0x324] ss:$28 sps:$4 sm:$0xff]  }
 0x705   :  { %7883 = vmatpush3.bf16.msra.mxu1 %v8596_v60  ;;  %6722 = vmatprep.subr.bf16.mxu0 %v8599_v11  ;;  %v8660_v60 = vld [vmem:[#allocation22 + $0x6a8] ss:$28 sps:$4 sm:$0xff]   ;;  %v8657_v11 = vld [vmem:[#allocation22 + $0x320] ss:$28 sps:$4 sm:$0xff]  }
 0x706   :  { %7884 = vmatprep.subr.bf16.mxu1 %v8600_v46  ;;  %v8661_v46 = vld [vmem:[#allocation22 + $0x4e8] ss:$28 sps:$4 sm:$0xff]  }
 0x708   :  { %6723 = vmatpush1.bf16.msra.mxu0 %v8597_v59  ;;  %v8664_v59 = vld [vmem:[#allocation22 + $0x35c] ss:$28 sps:$4 sm:$0xff]  }
 0x709   :  { %7885 = vmatpush3.bf16.msra.mxu1 %v8601_v56  ;;  %6724 = vmatprep.subr.bf16.mxu0 %v8604_v30  ;;  %v8665_v56 = vld [vmem:[#allocation22 + $0x6e0] ss:$28 sps:$4 sm:$0xff]   ;;  %v8662_v30 = vld [vmem:[#allocation22 + $0x358] ss:$28 sps:$4 sm:$0xff]  }
 0x70a   :  { %7886 = vmatprep.subr.bf16.mxu1 %v8605_v26  ;;  %v8666_v26 = vld [vmem:[#allocation22 + $0x520] ss:$28 sps:$4 sm:$0xff]  }
 0x70c   :  { %6725 = vmatpush1.bf16.msra.mxu0 %v8602_v35  ;;  %v8669_v35 = vld [vmem:[#allocation22 + $0x394] ss:$28 sps:$4 sm:$0xff]  }
 0x70d   :  { %7887 = vmatpush3.bf16.msra.mxu1 %v8606_v28  ;;  %6726 = vmatprep.subr.bf16.mxu0 %v8609_v40  ;;  %v8670_v28 = vld [vmem:[#allocation22 + $0x8d8] ss:$28 sps:$4 sm:$0xff]   ;;  %v8667_v40 = vld [vmem:[#allocation22 + $0x390] ss:$28 sps:$4 sm:$0xff]  }
 0x70e   :  { %7888 = vmatprep.subr.bf16.mxu1 %v8610_v23  ;;  %v8671_v23 = vld [vmem:[#allocation22 + $0x718] ss:$28 sps:$4 sm:$0xff]  }
 0x710   :  { %6727 = vmatpush1.bf16.msra.mxu0 %v8607_v33  ;;  %v8674_v33 = vld [vmem:[#allocation22 + $0x3cc] ss:$28 sps:$4 sm:$0xff]  }
 0x711   :  { %7889 = vmatpush3.bf16.msra.mxu1 %v8611_v44  ;;  %6728 = vmatprep.subr.bf16.mxu0 %v8614_v8  ;;  %v8675_v44 = vld [vmem:[#allocation22 + $0x910] ss:$28 sps:$4 sm:$0xff]   ;;  %v8672_v8 = vld [vmem:[#allocation22 + $0x3c8] ss:$28 sps:$4 sm:$0xff]  }
 0x712   :  { %7890 = vmatprep.subr.bf16.mxu1 %v8615_v34  ;;  %v8676_v34 = vld [vmem:[#allocation22 + $0x750] ss:$28 sps:$4 sm:$0xff]  }
 0x714   :  { %6729 = vmatpush1.bf16.msra.mxu0 %v8612_v0  ;;  %v8679_v0 = vld [vmem:[#allocation22 + $0x404] ss:$28 sps:$4 sm:$0xff]  }
 0x715   :  { %7891 = vmatpush3.bf16.msra.mxu1 %v8616_v29  ;;  %6730 = vmatprep.subr.bf16.mxu0 %v8619_v24  ;;  %v8680_v29 = vld [vmem:[#allocation22 + $0x948] ss:$28 sps:$4 sm:$0xff]   ;;  %v8677_v24 = vld [vmem:[#allocation22 + $0x400] ss:$28 sps:$4 sm:$0xff]  }
 0x716   :  { %7892 = vmatprep.subr.bf16.mxu1 %v8620_v1  ;;  %v8684_v1 = vld [vmem:[#allocation22 + $0x43c] ss:$28 sps:$4 sm:$0xff]  }
 0x718   :  { %6731 = vmatpush1.bf16.msra.mxu0 %v8617_v3  ;;  %v8685_v3 = vld [vmem:[#allocation22 + $0x980] ss:$28 sps:$4 sm:$0xff]  }
 0x719   :  { %7893 = vmatpush3.bf16.msra.mxu1 %v8621_v6  ;;  %6732 = vmatprep.subr.bf16.mxu0 %v8624_v19  ;;  %v8682_v6 = vld [vmem:[#allocation22 + $0x438] ss:$28 sps:$4 sm:$0xff]  }
 0x71a   :  { %7894 = vmatprep.subr.bf16.mxu1 %v8625_v17  ;;  %v8689_v19 = vld [vmem:[#allocation22 + $0x474] ss:$28 sps:$4 sm:$0xff]  }
 0x71b   :  { %v8690_v17 = vld [vmem:[#allocation22 + $0x9b8] ss:$28 sps:$4 sm:$0xff]  }
 0x71c   :  { %6733 = vmatpush1.bf16.msra.mxu0 %v8622_v2  ;;  %v8687_v2 = vld [vmem:[#allocation22 + $0x470] ss:$28 sps:$4 sm:$0xff]  }
 0x71d   :  { %7895 = vmatpush3.bf16.msra.mxu1 %v8626_v7  ;;  %6734 = vmatprep.subr.bf16.mxu0 %v8629_v9  ;;  %v8691_v7 = vld [vmem:[#allocation22 + $0x7f8] ss:$28 sps:$4 sm:$0xff]   ;;  %v8694_v9 = vld [vmem:[#allocation22 + $0x4ac] ss:$28 sps:$4 sm:$0xff]  }
 0x71e   :  { %7902 = vmatprep.subr.bf16.mxu1 %v8630_v32  ;;  %v8695_v32 = vld [vmem:[#allocation22 + $0x9f0] ss:$28 sps:$4 sm:$0xff]  }
 0x720   :  { %6915 = vmatmul.mubr.bf16.vlgmr.msra.gmra.mrb[24].mxu1 %v9763_v41  ;;  %6735 = vmatpush1.bf16.msra.mxu0 %v8627_v52  ;;  %v8692_v52 = vld [vmem:[#allocation22 + $0x4a8] ss:$28 sps:$4 sm:$0xff]  }
 0x721   :  { %7903 = vmatpush3.bf16.msra.mxu1 %v8631_v12  ;;  %6954 = vmatprep.mubr.bf16.mxu1 %v9769_v50  ;;  %v8696_v12 = vld [vmem:[#allocation22 + $0x830] ss:$28 sps:$4 sm:$0xff]  }
 0x722   :  { %6736 = vmatprep.subr.bf16.mxu0 %v8634_v51  ;;  %7904 = vmatprep.subr.bf16.mxu1 %v8635_v15  ;;  %v8699_v51 = vld [vmem:[#allocation22 + $0x4e4] ss:$28 sps:$4 sm:$0xff]  }
 0x723   :  { %v8700_v15 = vld [vmem:[#allocation22 + $0xa28] ss:$28 sps:$4 sm:$0xff]  }
 0x724   :  { %6737 = vmatpush1.bf16.msra.mxu0 %v8632_v27  ;;  %v8697_v27 = vld [vmem:[#allocation22 + $0x4e0] ss:$28 sps:$4 sm:$0xff]  }
 0x725   :  { %7905 = vmatpush3.bf16.msra.mxu1 %v8636_v16  ;;  %6738 = vmatprep.subr.bf16.mxu0 %v8639_v14  ;;  %v8701_v16 = vld [vmem:[#allocation22 + $0x868] ss:$28 sps:$4 sm:$0xff]   ;;  %v8704_v14 = vld [vmem:[#allocation22 + $0x51c] ss:$28 sps:$4 sm:$0xff]  }
 0x726   :  { %7906 = vmatprep.subr.bf16.mxu1 %v8640_v31  ;;  %v8705_v31 = vld [vmem:[#allocation22 + $0xa60] ss:$28 sps:$4 sm:$0xff]  }
 0x728   :  { %6739 = vmatpush1.bf16.msra.mxu0 %v8637_v36  ;;  %v8702_v36 = vld [vmem:[#allocation22 + $0x518] ss:$28 sps:$4 sm:$0xff]  }
 0x729   :  { %7907 = vmatpush3.bf16.msra.mxu1 %v8641_v21  ;;  %6740 = vmatprep.subr.bf16.mxu0 %v8644_v25  ;;  %v8706_v21 = vld [vmem:[#allocation22 + $0x8a0] ss:$28 sps:$4 sm:$0xff]   ;;  %v8709_v25 = vld [vmem:[#allocation22 + $0x554] ss:$28 sps:$4 sm:$0xff]  }
 0x72a   :  { %7908 = vmatprep.subr.bf16.mxu1 %v8645_v37  ;;  %v8710_v37 = vld [vmem:[#allocation22 + $0xc58] ss:$28 sps:$4 sm:$0xff]  }
 0x72c   :  { %6741 = vmatpush1.bf16.msra.mxu0 %v8642_v39  ;;  %v8707_v39 = vld [vmem:[#allocation22 + $0x550] ss:$28 sps:$4 sm:$0xff]  }
 0x72d   :  { %7909 = vmatpush3.bf16.msra.mxu1 %v8646_v42  ;;  %6742 = vmatprep.subr.bf16.mxu0 %v8649_v43  ;;  %v8711_v42 = vld [vmem:[#allocation22 + $0xa98] ss:$28 sps:$4 sm:$0xff]   ;;  %v8714_v43 = vld [vmem:[#allocation22 + $0x58c] ss:$28 sps:$4 sm:$0xff]  }
 0x72e   :  { %7910 = vmatprep.subr.bf16.mxu1 %v8650_v49  ;;  %v8715_v49 = vld [vmem:[#allocation22 + $0xc90] ss:$28 sps:$4 sm:$0xff]  }
 0x730   :  { %6743 = vmatpush1.bf16.msra.mxu0 %v8647_v53  ;;  %v8712_v53 = vld [vmem:[#allocation22 + $0x588] ss:$28 sps:$4 sm:$0xff]  }
 0x731   :  { %7911 = vmatpush3.bf16.msra.mxu1 %v8651_v54  ;;  %6744 = vmatprep.subr.bf16.mxu0 %v8654_v55  ;;  %v8716_v54 = vld [vmem:[#allocation22 + $0xad0] ss:$28 sps:$4 sm:$0xff]   ;;  %v8719_v55 = vld [vmem:[#allocation22 + $0x5c4] ss:$28 sps:$4 sm:$0xff]  }
 0x732   :  { %7912 = vmatprep.subr.bf16.mxu1 %v8655_v62  ;;  %v8720_v62 = vld [vmem:[#allocation22 + $0xcc8] ss:$28 sps:$4 sm:$0xff]  }
 0x734   :  { %6745 = vmatpush1.bf16.msra.mxu0 %v8652_v63  ;;  %v8717_v63 = vld [vmem:[#allocation22 + $0x5c0] ss:$28 sps:$4 sm:$0xff]  }
 0x735   :  { %7913 = vmatpush3.bf16.msra.mxu1 %v8656_v4  ;;  %6746 = vmatprep.subr.bf16.mxu0 %v8659_v10  ;;  %v8721_v4 = vld [vmem:[#allocation22 + $0xb08] ss:$28 sps:$4 sm:$0xff]   ;;  %v8724_v10 = vld [vmem:[#allocation22 + $0x5fc] ss:$28 sps:$4 sm:$0xff]  }
 0x736   :  { %7914 = vmatprep.subr.bf16.mxu1 %v8660_v60  ;;  %v8725_v60 = vld [vmem:[#allocation22 + $0xd00] ss:$28 sps:$4 sm:$0xff]  }
 0x738   :  { %6747 = vmatpush1.bf16.msra.mxu0 %v8657_v11  ;;  %v8722_v11 = vld [vmem:[#allocation22 + $0x5f8] ss:$28 sps:$4 sm:$0xff]  }
 0x739   :  { %7915 = vmatpush3.bf16.msra.mxu1 %v8661_v46  ;;  %6748 = vmatprep.subr.bf16.mxu0 %v8664_v59  ;;  %v8726_v46 = vld [vmem:[#allocation22 + $0xb40] ss:$28 sps:$4 sm:$0xff]   ;;  %v8729_v59 = vld [vmem:[#allocation22 + $0x634] ss:$28 sps:$4 sm:$0xff]  }
 0x73a   :  { %7916 = vmatprep.subr.bf16.mxu1 %v8665_v56  ;;  %v8730_v56 = vld [vmem:[#allocation22 + $0xd38] ss:$28 sps:$4 sm:$0xff]  }
 0x73c   :  { %6749 = vmatpush1.bf16.msra.mxu0 %v8662_v30  ;;  %v8727_v30 = vld [vmem:[#allocation22 + $0x630] ss:$28 sps:$4 sm:$0xff]  }
 0x73d   :  { %7917 = vmatpush3.bf16.msra.mxu1 %v8666_v26  ;;  %6759 = vmatprep.subr.bf16.mxu0 %v8669_v35  ;;  %v8731_v26 = vld [vmem:[#allocation22 + $0xb78] ss:$28 sps:$4 sm:$0xff]   ;;  %v8734_v35 = vld [vmem:[#allocation22 + $0x66c] ss:$28 sps:$4 sm:$0xff]  }
 0x73e   :  { %7924 = vmatprep.subr.bf16.mxu1 %v8670_v28  ;;  %v8735_v28 = vld [vmem:[#allocation22 + $0xd70] ss:$28 sps:$4 sm:$0xff]  }
 0x73f   :  { %6751 = vmatmul.mubr.bf16.vlgmr.msra.gmra.mrb[16].mxu0 %v9763_v41  ;;  %v8681_v41 = vld [vmem:[#allocation22 + $0x788] ss:$28 sps:$4 sm:$0xff]  }
 0x740   :  { %6955 = vmatmul.mubr.bf16.vlgmr.msra.gmra.mrb[28].mxu1 %v9779_v38  ;;  %6760 = vmatpush1.bf16.msra.mxu0 %v8667_v40  ;;  %v8732_v40 = vld [vmem:[#allocation22 + $0x668] ss:$28 sps:$4 sm:$0xff]  }
 0x741   :  { %6791 = vmatprep.mubr.bf16.mxu0 %v9769_v50  ;;  %7925 = vmatpush3.bf16.msra.mxu1 %v8671_v23  ;;  %v8686_v50 = vld [vmem:[#allocation22 + $0x7c0] ss:$28 sps:$4 sm:$0xff]   ;;  %v8736_v23 = vld [vmem:[#allocation22 + $0xbb0] ss:$28 sps:$4 sm:$0xff]  }
 0x742   :  { %6994 = vmatprep.mubr.bf16.mxu1 %v9781_v22  ;;  %6761 = vmatprep.subr.bf16.mxu0 %v8674_v33  ;;  %v8739_v33 = vld [vmem:[#allocation22 + $0x6a4] ss:$28 sps:$4 sm:$0xff]  }
 0x743   :  { %7926 = vmatprep.subr.bf16.mxu1 %v8675_v44  ;;  %v8740_v44 = vld [vmem:[#allocation22 + $0xda8] ss:$28 sps:$4 sm:$0xff]  }
 0x744   :  { %6762 = vmatpush1.bf16.msra.mxu0 %v8672_v8  ;;  %v8737_v8 = vld [vmem:[#allocation22 + $0x6a0] ss:$28 sps:$4 sm:$0xff]  }
 0x745   :  { %7927 = vmatpush3.bf16.msra.mxu1 %v8676_v34  ;;  %6763 = vmatprep.subr.bf16.mxu0 %v8679_v0  ;;  %v8741_v34 = vld [vmem:[#allocation22 + $0xbe8] ss:$28 sps:$4 sm:$0xff]   ;;  %v8744_v0 = vld [vmem:[#allocation22 + $0x6dc] ss:$28 sps:$4 sm:$0xff]  }
 0x746   :  { %7928 = vmatprep.subr.bf16.mxu1 %v8680_v29  ;;  %v8745_v29 = vld [vmem:[#allocation22 + $0xde0] ss:$28 sps:$4 sm:$0xff]  }
 0x748   :  { %6764 = vmatpush1.bf16.msra.mxu0 %v8677_v24  ;;  %v8742_v24 = vld [vmem:[#allocation22 + $0x6d8] ss:$28 sps:$4 sm:$0xff]  }
 0x749   :  { %7929 = vmatpush3.bf16.msra.mxu1 %v8681_v41  ;;  %6765 = vmatprep.subr.bf16.mxu0 %v8684_v1  ;;  %v8746_v41 = vld [vmem:[#allocation22 + $0xc20] ss:$28 sps:$4 sm:$0xff]   ;;  %v8749_v1 = vld [vmem:[#allocation22 + $0x714] ss:$28 sps:$4 sm:$0xff]  }
 0x74a   :  { %7930 = vmatprep.subr.bf16.mxu1 %v8685_v3  ;;  %v8747_v3 = vld [vmem:[#allocation22 + $0x710] ss:$28 sps:$4 sm:$0xff]  }
 0x74c   :  { %6766 = vmatpush1.bf16.msra.mxu0 %v8682_v6  ;;  %v8752_v6 = vld [vmem:[#allocation22 + $0x74c] ss:$28 sps:$4 sm:$0xff]  }
 0x74d   :  { %7931 = vmatpush3.bf16.msra.mxu1 %v8686_v50  ;;  %6767 = vmatprep.subr.bf16.mxu0 %v8689_v19  ;;  %v8750_v50 = vld [vmem:[#allocation22 + $0x748] ss:$28 sps:$4 sm:$0xff]  }
 0x74e   :  { %7932 = vmatprep.subr.bf16.mxu1 %v8690_v17  ;;  %v8755_v19 = vld [vmem:[#allocation22 + $0x784] ss:$28 sps:$4 sm:$0xff]  }
 0x74f   :  { %v8753_v17 = vld [vmem:[#allocation22 + $0x780] ss:$28 sps:$4 sm:$0xff]  }
 0x750   :  { %6768 = vmatpush1.bf16.msra.mxu0 %v8687_v2  ;;  %v8758_v2 = vld [vmem:[#allocation22 + $0x7bc] ss:$28 sps:$4 sm:$0xff]  }
 0x751   :  { %7933 = vmatpush3.bf16.msra.mxu1 %v8691_v7  ;;  %6769 = vmatprep.subr.bf16.mxu0 %v8694_v9  ;;  %v8756_v7 = vld [vmem:[#allocation22 + $0x7b8] ss:$28 sps:$4 sm:$0xff]  }
 0x752   :  { %7934 = vmatprep.subr.bf16.mxu1 %v8695_v32  ;;  %v8761_v9 = vld [vmem:[#allocation22 + $0x7f4] ss:$28 sps:$4 sm:$0xff]  }
 0x753   :  { %v8759_v32 = vld [vmem:[#allocation22 + $0x7f0] ss:$28 sps:$4 sm:$0xff]  }
 0x754   :  { %6770 = vmatpush1.bf16.msra.mxu0 %v8692_v52  ;;  %v8762_v52 = vld [vmem:[#allocation22 + $0x828] ss:$28 sps:$4 sm:$0xff]  }
 0x755   :  { %7935 = vmatpush3.bf16.msra.mxu1 %v8696_v12  ;;  %6771 = vmatprep.subr.bf16.mxu0 %v8699_v51  ;;  %v8767_v12 = vld [vmem:[#allocation22 + $0x864] ss:$28 sps:$4 sm:$0xff]   ;;  %v8770_v51 = vld [vmem:[#allocation22 + $0x89c] ss:$28 sps:$4 sm:$0xff]  }
 0x756   :  { %7936 = vmatprep.subr.bf16.mxu1 %v8700_v15  ;;  %v8768_v15 = vld [vmem:[#allocation22 + $0x898] ss:$28 sps:$4 sm:$0xff]  }
 0x758   :  { %6772 = vmatpush1.bf16.msra.mxu0 %v8697_v27  ;;  %v8773_v27 = vld [vmem:[#allocation22 + $0x8d4] ss:$28 sps:$4 sm:$0xff]  }
 0x759   :  { %7937 = vmatpush3.bf16.msra.mxu1 %v8701_v16  ;;  %6773 = vmatprep.subr.bf16.mxu0 %v8704_v14  ;;  %v8771_v16 = vld [vmem:[#allocation22 + $0x8d0] ss:$28 sps:$4 sm:$0xff]  }
 0x75a   :  { %7938 = vmatprep.subr.bf16.mxu1 %v8705_v31  ;;  %v8776_v14 = vld [vmem:[#allocation22 + $0x90c] ss:$28 sps:$4 sm:$0xff]  }
 0x75b   :  { %v8774_v31 = vld [vmem:[#allocation22 + $0x908] ss:$28 sps:$4 sm:$0xff]  }
 0x75c   :  { %6774 = vmatpush1.bf16.msra.mxu0 %v8702_v36  ;;  %v8779_v36 = vld [vmem:[#allocation22 + $0x944] ss:$28 sps:$4 sm:$0xff]  }
 0x75d   :  { %7939 = vmatpush3.bf16.msra.mxu1 %v8706_v21  ;;  %6775 = vmatprep.subr.bf16.mxu0 %v8709_v25  ;;  %v8777_v21 = vld [vmem:[#allocation22 + $0x940] ss:$28 sps:$4 sm:$0xff]  }
 0x75e   :  { %7946 = vmatprep.subr.bf16.mxu1 %v8710_v37  ;;  %v8782_v25 = vld [vmem:[#allocation22 + $0x97c] ss:$28 sps:$4 sm:$0xff]  }
 0x75f   :  { %v8780_v37 = vld [vmem:[#allocation22 + $0x978] ss:$28 sps:$4 sm:$0xff]  }
 0x760   :  { %6995 = vmatmul.mubr.bf16.vlgmr.msra.gmra.mrb[32].mxu1 %v9793_v13  ;;  %6776 = vmatpush1.bf16.msra.mxu0 %v8707_v39  ;;  %v8785_v39 = vld [vmem:[#allocation22 + $0x9b4] ss:$28 sps:$4 sm:$0xff]  }
 0x761   :  { %7947 = vmatpush3.bf16.msra.mxu1 %v8711_v42  ;;  %7034 = vmatprep.mubr.bf16.mxu1 %v9796_v5  ;;  %v8783_v42 = vld [vmem:[#allocation22 + $0x9b0] ss:$28 sps:$4 sm:$0xff]  }
 0x762   :  { %6777 = vmatprep.subr.bf16.mxu0 %v8714_v43  ;;  %7948 = vmatprep.subr.bf16.mxu1 %v8715_v49  ;;  %v8788_v43 = vld [vmem:[#allocation22 + $0x9ec] ss:$28 sps:$4 sm:$0xff]  }
 0x763   :  { %v8786_v49 = vld [vmem:[#allocation22 + $0x9e8] ss:$28 sps:$4 sm:$0xff]  }
 0x764   :  { %6778 = vmatpush1.bf16.msra.mxu0 %v8712_v53  ;;  %v8791_v53 = vld [vmem:[#allocation22 + $0xa24] ss:$28 sps:$4 sm:$0xff]  }
 0x765   :  { %7949 = vmatpush3.bf16.msra.mxu1 %v8716_v54  ;;  %6779 = vmatprep.subr.bf16.mxu0 %v8719_v55  ;;  %v8789_v54 = vld [vmem:[#allocation22 + $0xa20] ss:$28 sps:$4 sm:$0xff]  }
 0x766   :  { %7950 = vmatprep.subr.bf16.mxu1 %v8720_v62  ;;  %v8794_v55 = vld [vmem:[#allocation22 + $0xa5c] ss:$28 sps:$4 sm:$0xff]  }
 0x767   :  { %v8792_v62 = vld [vmem:[#allocation22 + $0xa58] ss:$28 sps:$4 sm:$0xff]  }
 0x768   :  { %6780 = vmatpush1.bf16.msra.mxu0 %v8717_v63  ;;  %v8797_v63 = vld [vmem:[#allocation22 + $0xa94] ss:$28 sps:$4 sm:$0xff]  }
 0x769   :  { %7951 = vmatpush3.bf16.msra.mxu1 %v8721_v4  ;;  %6781 = vmatprep.subr.bf16.mxu0 %v8724_v10  ;;  %v8795_v4 = vld [vmem:[#allocation22 + $0xa90] ss:$28 sps:$4 sm:$0xff]  }
 0x76a   :  { %7952 = vmatprep.subr.bf16.mxu1 %v8725_v60  ;;  %v8800_v10 = vld [vmem:[#allocation22 + $0xacc] ss:$28 sps:$4 sm:$0xff]  }
 0x76b   :  { %v8798_v60 = vld [vmem:[#allocation22 + $0xac8] ss:$28 sps:$4 sm:$0xff]  }
 0x76c   :  { %6782 = vmatpush1.bf16.msra.mxu0 %v8722_v11  ;;  %v8803_v11 = vld [vmem:[#allocation22 + $0xb04] ss:$28 sps:$4 sm:$0xff]  }
 0x76d   :  { %7953 = vmatpush3.bf16.msra.mxu1 %v8726_v46  ;;  %6783 = vmatprep.subr.bf16.mxu0 %v8729_v59  ;;  %v8801_v46 = vld [vmem:[#allocation22 + $0xb00] ss:$28 sps:$4 sm:$0xff]  }
 0x76e   :  { %7954 = vmatprep.subr.bf16.mxu1 %v8730_v56  ;;  %v8806_v59 = vld [vmem:[#allocation22 + $0xb3c] ss:$28 sps:$4 sm:$0xff]  }
 0x76f   :  { %v8804_v56 = vld [vmem:[#allocation22 + $0xb38] ss:$28 sps:$4 sm:$0xff]  }
 0x770   :  { %6784 = vmatpush1.bf16.msra.mxu0 %v8727_v30  ;;  %v8809_v30 = vld [vmem:[#allocation22 + $0xb74] ss:$28 sps:$4 sm:$0xff]  }
 0x771   :  { %7955 = vmatpush3.bf16.msra.mxu1 %v8731_v26  ;;  %6785 = vmatprep.subr.bf16.mxu0 %v8734_v35  ;;  %v8807_v26 = vld [vmem:[#allocation22 + $0xb70] ss:$28 sps:$4 sm:$0xff]   ;;  %v9823_v35 = vld [vmem:[#allocation23] sm:$0xff] }
 0x772   :  { %7956 = vmatprep.subr.bf16.mxu1 %v8735_v28  ;;  %v4062_v28 = vrot.slane %v9823_v35, %v9574_v45 }
 0x774   :  { %6786 = vmatpush1.bf16.msra.mxu0 %v8732_v40  ;;  %v4058_v40 = vrot.slane %v9823_v35, %v9516_v58 }
 0x775   :  { %7957 = vmatpush3.bf16.msra.mxu1 %v8736_v23  ;;  %6787 = vmatprep.subr.bf16.mxu0 %v8739_v33  ;;  %v8810_v23 = vld [vmem:[#allocation22 + $0xba8] ss:$28 sps:$4 sm:$0xff]   ;;  %v4066_v33 = vrot.slane %v9823_v35, %v9577_v48 }
 0x776   :  { %7958 = vmatprep.subr.bf16.mxu1 %v8740_v44  ;;  %v8815_v44 = vld [vmem:[#allocation22 + $0xbe4] ss:$28 sps:$4 sm:$0xff]  }
 0x778   :  { %6788 = vmatpush1.bf16.msra.mxu0 %v8737_v8 }
 0x779   :  { %7959 = vmatpush3.bf16.msra.mxu1 %v8741_v34  ;;  %6789 = vmatprep.subr.bf16.mxu0 %v8744_v0 }
 0x77a   :  { %7960 = vmatprep.subr.bf16.mxu1 %v8745_v29 }
 0x77c   :  { %6790 = vmatpush1.bf16.msra.mxu0 %v8742_v24 }
 0x77d   :  { %7961 = vmatpush3.bf16.msra.mxu1 %v8746_v41  ;;  %6800 = vmatprep.subr.bf16.mxu0 %v8749_v1 }
 0x77f   :  { %6792 = vmatmul.mubr.bf16.vlgmr.msra.gmra.mrb[16].mxu0 %v9779_v38  ;;  %v8764_v38 = vld [vmem:[#allocation22 + $0x82c] ss:$28 sps:$4 sm:$0xff]  }
 0x780   :  { %7035 = vmatmul.mubr.bf16.vlgmr.msra.gmra.mrb[36].mxu1 %v9804_v61  ;;  %6801 = vmatpush1.bf16.msra.mxu0 %v8747_v3  ;;  %v8813_v3 = vld [vmem:[#allocation22 + $0xbe0] ss:$28 sps:$4 sm:$0xff]  }
 0x781   :  { %6832 = vmatprep.mubr.bf16.mxu0 %v9781_v22  ;;  %6802 = vmatprep.subr.bf16.mxu0 %v8752_v6  ;;  %v8765_v22 = vld [vmem:[#allocation22 + $0x860] ss:$28 sps:$4 sm:$0xff]  }
 0x784   :  { %6803 = vmatpush1.bf16.msra.mxu0 %v8750_v50  ;;  %v8818_v50 = vld [vmem:[#allocation22 + $0xc1c] ss:$28 sps:$4 sm:$0xff]  }
 0x785   :  { %6804 = vmatprep.subr.bf16.mxu0 %v8755_v19  ;;  %v8816_v19 = vld [vmem:[#allocation22 + $0xc18] ss:$28 sps:$4 sm:$0xff]  }
 0x788   :  { %6805 = vmatpush1.bf16.msra.mxu0 %v8753_v17  ;;  %v8821_v17 = vld [vmem:[#allocation22 + $0xc54] ss:$28 sps:$4 sm:$0xff]  }
 0x789   :  { %6806 = vmatprep.subr.bf16.mxu0 %v8758_v2  ;;  %v8819_v2 = vld [vmem:[#allocation22 + $0xc50] ss:$28 sps:$4 sm:$0xff]  }
 0x78c   :  { %6807 = vmatpush1.bf16.msra.mxu0 %v8756_v7  ;;  %v8824_v7 = vld [vmem:[#allocation22 + $0xc8c] ss:$28 sps:$4 sm:$0xff]  }
 0x78d   :  { %6808 = vmatprep.subr.bf16.mxu0 %v8761_v9 }
 0x790   :  { %6809 = vmatpush1.bf16.msra.mxu0 %v8759_v32 }
 0x791   :  { %6810 = vmatprep.subr.bf16.mxu0 %v8764_v38  ;;  %v8822_v38 = vld [vmem:[#allocation22 + $0xc88] ss:$28 sps:$4 sm:$0xff]  }
 0x794   :  { %6811 = vmatpush1.bf16.msra.mxu0 %v8762_v52 }
 0x795   :  { %6812 = vmatprep.subr.bf16.mxu0 %v8767_v12  ;;  %v8827_v12 = vld [vmem:[#allocation22 + $0xcc4] ss:$28 sps:$4 sm:$0xff]  }
 0x798   :  { %6813 = vmatpush1.bf16.msra.mxu0 %v8765_v22 }
 0x799   :  { %6814 = vmatprep.subr.bf16.mxu0 %v8770_v51  ;;  %v8825_v51 = vld [vmem:[#allocation22 + $0xcc0] ss:$28 sps:$4 sm:$0xff]  }
 0x79c   :  { %6815 = vmatpush1.bf16.msra.mxu0 %v8768_v15  ;;  %v8830_v15 = vld [vmem:[#allocation22 + $0xcfc] ss:$28 sps:$4 sm:$0xff]  }
 0x79d   :  { %6816 = vmatprep.subr.bf16.mxu0 %v8773_v27  ;;  %v8828_v27 = vld [vmem:[#allocation22 + $0xcf8] ss:$28 sps:$4 sm:$0xff]  }
 0x7a0   :  { %6817 = vmatpush1.bf16.msra.mxu0 %v8771_v16  ;;  %v8833_v16 = vld [vmem:[#allocation22 + $0xd34] ss:$28 sps:$4 sm:$0xff]  }
 0x7a1   :  { %6818 = vmatprep.subr.bf16.mxu0 %v8776_v14  ;;  %v8831_v14 = vld [vmem:[#allocation22 + $0xd30] ss:$28 sps:$4 sm:$0xff]  }
 0x7a4   :  { %6819 = vmatpush1.bf16.msra.mxu0 %v8774_v31  ;;  %v8836_v31 = vld [vmem:[#allocation22 + $0xd6c] ss:$28 sps:$4 sm:$0xff]  }
 0x7a5   :  { %6820 = vmatprep.subr.bf16.mxu0 %v8779_v36  ;;  %v8834_v36 = vld [vmem:[#allocation22 + $0xd68] ss:$28 sps:$4 sm:$0xff]  }
 0x7a8   :  { %6821 = vmatpush1.bf16.msra.mxu0 %v8777_v21  ;;  %v8839_v21 = vld [vmem:[#allocation22 + $0xda4] ss:$28 sps:$4 sm:$0xff]  }
 0x7a9   :  { %6822 = vmatprep.subr.bf16.mxu0 %v8782_v25 }
 0x7ac   :  { %6823 = vmatpush1.bf16.msra.mxu0 %v8780_v37 }
 0x7ad   :  { %6824 = vmatprep.subr.bf16.mxu0 %v8785_v39  ;;  %v8837_v39 = vld [vmem:[#allocation22 + $0xda0] ss:$28 sps:$4 sm:$0xff]  }
 0x7b0   :  { %6825 = vmatpush1.bf16.msra.mxu0 %v8783_v42 }
 0x7b1   :  { %6826 = vmatprep.subr.bf16.mxu0 %v8788_v43 }
 0x7b4   :  { %6827 = vmatpush1.bf16.msra.mxu0 %v8786_v49  ;;  %v8842_v49 = vld [vmem:[#allocation22 + $0xddc] ss:$28 sps:$4 sm:$0xff]  }
 0x7b5   :  { %6828 = vmatprep.subr.bf16.mxu0 %v8791_v53 }
 0x7b8   :  { %6829 = vmatpush1.bf16.msra.mxu0 %v8789_v54  ;;  %v8840_v54 = vld [vmem:[#allocation22 + $0xdd8] ss:$28 sps:$4 sm:$0xff]  }
 0x7b9   :  { %6830 = vmatprep.subr.bf16.mxu0 %v8794_v55  ;;  %v4078_v55 = vrot.slane %v9823_v35, %v9716_v20 }
 0x7bc   :  { %6831 = vmatpush1.bf16.msra.mxu0 %v8792_v62 }
 0x7bd   :  { %6841 = vmatprep.subr.bf16.mxu0 %v8797_v63 }
 0x7bf   :  { %6833 = vmatmul.mubr.bf16.vlgmr.msra.gmra.mrb[16].mxu0 %v9793_v13  ;;  %v8812_v13 = vld [vmem:[#allocation22 + $0xbac] ss:$28 sps:$4 sm:$0xff]  }
 0x7c0   :  { %6842 = vmatpush1.bf16.msra.mxu0 %v8795_v4  ;;  %6873 = vmatprep.mubr.bf16.mxu0 %v9796_v5  ;;  %v4054_v5 = vrot.slane %v9823_v35, %v9513_v57 }
 0x7c1   :  { %6843 = vmatprep.subr.bf16.mxu0 %v8800_v10 }
 0x7c4   :  { %6844 = vmatpush1.bf16.msra.mxu0 %v8798_v60 }
 0x7c5   :  { %6845 = vmatprep.subr.bf16.mxu0 %v8803_v11 }
 0x7c8   :  { %6846 = vmatpush1.bf16.msra.mxu0 %v8801_v46 }
 0x7c9   :  { %6847 = vmatprep.subr.bf16.mxu0 %v8806_v59 }
 0x7cc   :  { %6848 = vmatpush1.bf16.msra.mxu0 %v8804_v56 }
 0x7cd   :  { %6849 = vmatprep.subr.bf16.mxu0 %v8809_v30 }
 0x7d0   :  { %6850 = vmatpush1.bf16.msra.mxu0 %v8807_v26 }
 0x7d1   :  { %6851 = vmatprep.subr.bf16.mxu0 %v8812_v13 }
 0x7d2   :  { %v6547_v8 = vpop.f32.mrb[12].mxu0 }
 0x7d3   :  { %v7988_v34 = vadd.f32 %v6547_v8, %v4054_v5  ;;  %v6711_v0 = vpop.f32.mrb[20].mxu1  ;;  %v6549_v29 = vpop.f32.mrb[13].mxu0  ;;  %v4070_v8 = vrot.slane %v9823_v35, %v9710_v47 }
 0x7d4   :  { %v7990_v24 = vadd.f32 %v6711_v0, %v4062_v28  ;;  %v7989_v41 = vadd.f32 %v6549_v29, %v4058_v40  ;;  %v6713_v57 = vpop.f32.mrb[21].mxu1  ;;  %v6551_v1 = vpop.f32.mrb[14].mxu0  ;;  %6852 = vmatpush1.bf16.msra.mxu0 %v8810_v23 }
 0x7d5   :  { %8871 = vtanh.f32 %v7988_v34  ;;  %v7991_v45 = vadd.f32 %v6713_v57, %v4066_v33  ;;  %v6715_v6 = vpop.f32.mrb[22].mxu1  ;;  %v6552_v58 = vpop.f32.mrb[15].mxu0  ;;  %6853 = vmatprep.subr.bf16.mxu0 %v8815_v44  ;;  %v4074_v34 = vrot.slane %v9823_v35, %v9713_v18 }
 0x7d6   :  { %8873 = vtanh.f32 %v7990_v24  ;;  %v6716_v48 = vpop.f32.mrb[23].mxu1 }
 0x7d7   :  { %8875 = vtanh.f32 %v7989_v41 }
 0x7d8   :  { %8877 = vtanh.f32 %v7991_v45  ;;  %6854 = vmatpush1.bf16.msra.mxu0 %v8813_v3 }
 0x7d9   :  { %6855 = vmatprep.subr.bf16.mxu0 %v8818_v50 }
 0x7dc   :  { %6856 = vmatpush1.bf16.msra.mxu0 %v8816_v19 }
 0x7dd   :  { %6857 = vmatprep.subr.bf16.mxu0 %v8821_v17 }
 0x7df   :  { %v8872_v9 = vpop.eup %8871 }
 0x7e0   :  { %v8874_v32 = vpop.eup %8873  ;;  %7049 = vst [vmem:[#allocation25] sm:$0xff] %v8872_v9  ;;  %6858 = vmatpush1.bf16.msra.mxu0 %v8819_v2 }
 0x7e1   :  { %v8876_v52 = vpop.eup %8875  ;;  %7051 = vst [vmem:[#allocation25 + $0x10] sm:$0xff] %v8874_v32  ;;  %6859 = vmatprep.subr.bf16.mxu0 %v8824_v7 }
 0x7e2   :  { %v8878_v22 = vpop.eup %8877  ;;  %7050 = vst [vmem:[#allocation25 + $0x8] sm:$0xff] %v8876_v52 }
 0x7e3   :  { %7052 = vst [vmem:[#allocation25 + $0x18] sm:$0xff] %v8878_v22 }
 0x7e4   :  { %6860 = vmatpush1.bf16.msra.mxu0 %v8822_v38 }
 0x7e5   :  { %6861 = vmatprep.subr.bf16.mxu0 %v8827_v12 }
 0x7e8   :  { %6862 = vmatpush1.bf16.msra.mxu0 %v8825_v51 }
 0x7e9   :  { %6863 = vmatprep.subr.bf16.mxu0 %v8830_v15 }
 0x7ec   :  { %6864 = vmatpush1.bf16.msra.mxu0 %v8828_v27 }
 0x7ed   :  { %6865 = vmatprep.subr.bf16.mxu0 %v8833_v16 }
 0x7f0   :  { %6866 = vmatpush1.bf16.msra.mxu0 %v8831_v14 }
 0x7f1   :  { %6867 = vmatprep.subr.bf16.mxu0 %v8836_v31 }
 0x7f3   :  { %v7896_v25 = vpop.f32.mrb[24].mxu1 }
 0x7f4   :  { %v7897_v37 = vpop.f32.mrb[25].mxu1  ;;  %6868 = vmatpush1.bf16.msra.mxu0 %v8834_v36 }
 0x7f5   :  { %v7898_v42 = vadd.f32 %v7897_v37, %v7896_v25  ;;  %v7899_v43 = vpop.f32.mrb[26].mxu1  ;;  %6869 = vmatprep.subr.bf16.mxu0 %v8839_v21 }
 0x7f6   :  { %v7900_v53 = vpop.f32.mrb[27].mxu1 }
 0x7f7   :  { %v6917_v4 = vadd.f32 %v7898_v42, %v4078_v55 }
 0x7f8   :  { %6870 = vmatpush1.bf16.msra.mxu0 %v8837_v39 }
 0x7f9   :  { %6871 = vmatprep.subr.bf16.mxu0 %v8842_v49 }
 0x7fc   :  { %6872 = vmatpush1.bf16.msra.mxu0 %v8840_v54 }
 0x7ff   :  { %6874 = vmatmul.mubr.bf16.vlgmr.msra.gmra.mrb[16].mxu0 %v9804_v61 }
 0x813   :  { %v7918_v62 = vpop.f32.mrb[28].mxu1 }
 0x814   :  { %v7919_v63 = vpop.f32.mrb[29].mxu1 }
 0x815   :  { %v7920_v10 = vadd.f32 %v7919_v63, %v7918_v62  ;;  %v7921_v60 = vpop.f32.mrb[30].mxu1 }
 0x816   :  { %v7922_v11 = vpop.f32.mrb[31].mxu1 }
 0x817   :  { %v6957_v46 = vadd.f32 %v7920_v10, %v6917_v4 }
 0x833   :  { %v7940_v59 = vpop.f32.mrb[32].mxu1 }
 0x834   :  { %v7941_v56 = vpop.f32.mrb[33].mxu1 }
 0x835   :  { %v7942_v30 = vadd.f32 %v7941_v56, %v7940_v59  ;;  %v7943_v26 = vpop.f32.mrb[34].mxu1 }
 0x836   :  { %v7944_v13 = vpop.f32.mrb[35].mxu1 }
 0x837   :  { %v6997_v5 = vadd.f32 %v7942_v30, %v6957_v46 }
 0x853   :  { %v7962_v28 = vpop.f32.mrb[36].mxu1 }
 0x854   :  { %v7963_v40 = vpop.f32.mrb[37].mxu1 }
 0x855   :  { %v7964_v23 = vadd.f32 %v7963_v40, %v7962_v28  ;;  %v7965_v61 = vpop.f32.mrb[38].mxu1 }
 0x856   :  { %v7966_v33 = vpop.f32.mrb[39].mxu1 }
 0x857   :  { %v7037_v44 = vadd.f32 %v7964_v23, %v6997_v5 }
 0x859   :  { %8879 = vtanh.f32 %v7037_v44 }
 0x863   :  { %v8880_v20 = vpop.eup %8879 }
 0x864   :  { %7055 = vst [vmem:[#allocation25 + $0x30] sm:$0xff] %v8880_v20 }
 0x8d2   :  { %v6875_v0 = vpop.f32.mrb[16].mxu0 }
 0x8d3   :  { %v7992_v29 = vadd.f32 %v6875_v0, %v4070_v8  ;;  %v6877_v24 = vpop.f32.mrb[17].mxu0 }
 0x8d4   :  { %v7993_v41 = vadd.f32 %v6877_v24, %v4074_v34  ;;  %v6879_v57 = vpop.f32.mrb[18].mxu0 }
 0x8d5   :  { %8881 = vtanh.f32 %v7992_v29  ;;  %v6880_v1 = vpop.f32.mrb[19].mxu0 }
 0x8d6   :  { %8883 = vtanh.f32 %v7993_v41 }
 0x8df   :  { %v8882_v3 = vpop.eup %8881 }
 0x8e0   :  { %v8884_v45 = vpop.eup %8883  ;;  %7053 = vst [vmem:[#allocation25 + $0x20] sm:$0xff] %v8882_v3 }
 0x8e1   :  { %7054 = vst [vmem:[#allocation25 + $0x28] sm:$0xff] %v8884_v45 }
 0x8e2   :  { %9204 = shalt.err (!%p9201_p4)
}
 0x8e3   :  { %s9205_s21 = scalar_lea.hbm %s9866_s14, 896 }
 0x8e4   :  { %p9206_p5 = scmp.ne.s32.totalorder %s9866_s14, %s9205_s21  ;;  %p9209_p6 = scmp.lt.u32.totalorder %s9205_s21, %s9866_s14 }
 0x8e6   :  { %p9211_p7 = pnand %p9209_p6, %p9206_p5 }
 0x8e8   :  { %9214 = shalt.err (!%p9211_p7)
}
 0x8e9   :  { %7065 = dma.vmem_to_hbm [thread:$0]  %s7063_s8, 896, %s9866_s14, [#allocation4]  }
 0x8ea   :  { %9231 = dma.done.wait [#allocation4], 896  }
 0x8eb   :  { %9232 = vsyncadd [#allocation4], 4294966400 }
 0x8ec   :  { %7069 = vsyncpa [#allocation3], 1 }
 0x8ed   :  { %7070 = vsyncpa [#allocation6], 1 }
 0x8ee   :  { %7071 = vsyncpa [#allocation9], 1 }
 0x8ef   :  { %7072 = vsyncpa [#allocation12], 1 }
 0x8f0   :  { %7073 = vsyncpa [#allocation15], 1 }
 0x8f1   :  { %7074 = vsyncpa [#allocation18], 1 }
 0x8f2   :  { %7075 = vsyncpa [#allocation21], 1 }
 0x8f3   :  { %7076 = vsyncpa [#allocation24], 1 }
 0x8f4   :  { %7077 = vsyncpa [#allocation4], 1 }

</bundles_post_ra>
